<compile_context>
chip_gen: v6e
topology: v6e:2x2x1
jax: 0.10.0
libtpu: 0.0.40
codegen_flags: <defaults>
</compile_context>

<pallas_src>
import functools

import jax
import jax.numpy as jnp
from jax import lax
from jax.experimental import pallas as pl
from jax.experimental.pallas import tpu as pltpu


# ----------------------------------------------------------------------------
# Fused Pallas kernel: whole ResBlockNN forward, everything VMEM-resident.
# ----------------------------------------------------------------------------

def _resblock_kernel(x_ref, idx1_ref, idx2_ref, idx4_ref,
                     w1_ref, b1_ref, w2_ref, b2_ref,
                     ew_ref, eb_ref,
                     g1_ref, a1_ref, g2_ref, a2_ref, g3_ref, a3_ref,
                     o_ref, *, B, Cin, Cout, N_in, N_out, k, k_pool, eps):
    f32 = jnp.float32
    x2d = x_ref[...]                                        # (B*Cin, N_in)

    # one-hot row-selection bases (location index varies along sublanes)
    iota_in = lax.broadcasted_iota(jnp.int32, (N_in, N_out), 0)
    iota_out = lax.broadcasted_iota(jnp.int32, (N_out, N_out), 0)

    def knn_conv(src2d, src_c, idx_ref, w_ref_, iota, kk):
        """kNN continuous conv.

        src2d : (B*src_c, N_src)  features, location axis on lanes
        idx   : (kk, N_out)       neighbour indices into N_src
        w     : (kk*src_c*Cout, N_out) per-location generated weights
        returns (B, Cout, N_out)
        """
        acc = jnp.zeros((B, Cout, N_out), f32)
        for j in range(kk):
            # in-kernel gather: one-hot selection matmul on the MXU
            sel = (iota == idx_ref[j:j + 1, :]).astype(f32)          # (N_src, N_out)
            xg = jnp.dot(src2d, sel, preferred_element_type=f32)     # (B*src_c, N_out)
            xg = xg.reshape(B, src_c, N_out)
            wj = w_ref_[j * src_c * Cout:(j + 1) * src_c * Cout, :]  # (src_c*Cout, N_out)
            wj = wj.reshape(src_c, Cout, N_out)
            # per-location weighted reduce on the VPU (N on lanes)
            acc = acc + jnp.sum(xg[:, :, None, :] * wj[None, :, :, :], axis=1)
        return acc

    def bn_scale_shift(y, gamma, beta):
        """Training-mode BatchNorm1d: batch stats over (B, N), biased variance."""
        cnt = y.shape[0] * y.shape[2]
        s = jnp.sum(jnp.sum(y, axis=2, keepdims=True), axis=0, keepdims=True)
        s2 = jnp.sum(jnp.sum(y * y, axis=2, keepdims=True), axis=0, keepdims=True)
        mean = s / cnt
        var = s2 / cnt - mean * mean
        scale = gamma[None, :, :] * lax.rsqrt(var + eps)             # (1, C, 1)
        shift = beta[None, :, :] - mean * scale
        return scale, shift

    # ---- main branch: conv1 -> bn1 -> relu -> conv2 -------------------------
    out1 = knn_conv(x2d, Cin, idx1_ref, w1_ref, iota_in, k)
    out1 = out1 + b1_ref[...][None, :, :]                            # (B, Cout, N_out)
    s1, t1 = bn_scale_shift(out1, g1_ref[...], a1_ref[...])
    h1 = jnp.maximum(out1 * s1 + t1, 0.0)

    out2 = knn_conv(h1.reshape(B * Cout, N_out), Cout, idx2_ref, w2_ref,
                    iota_out, k)
    out2 = out2 + b2_ref[...][None, :, :]

    # ---- identity branch: AvgPoolNN(k=4) -> 1x1 expand conv -> bn3 ----------
    pooled = jnp.zeros((B * Cin, N_out), f32)
    for j in range(k_pool):
        sel = (iota_in == idx4_ref[j:j + 1, :]).astype(f32)
        pooled = pooled + jnp.dot(x2d, sel, preferred_element_type=f32)
    pooled = (pooled * (1.0 / k_pool)).reshape(B, Cin, N_out)
    # 1x1 conv as a channel broadcast-reduce (ew: (Cin, Cout, 1))
    ident = jnp.sum(pooled[:, :, None, :] * ew_ref[...][None, :, :, :], axis=1)
    ident = ident + eb_ref[...][None, :, :]
    s3, t3 = bn_scale_shift(ident, g3_ref[...], a3_ref[...])
    ident = ident * s3 + t3

    # ---- bn2 + residual add + relu ------------------------------------------
    s2, t2 = bn_scale_shift(out2, g2_ref[...], a2_ref[...])
    out = jnp.maximum(out2 * s2 + t2 + ident, 0.0)
    o_ref[...] = out.reshape(B * Cout, N_out)                        # lane-dense store


# ----------------------------------------------------------------------------
# Plain-JAX glue: kNN indices, weight-generation MLP, parameter init.
# ----------------------------------------------------------------------------

def knn_indices(locs_q, locs_ref, kk):
    d2 = jnp.sum((locs_q[:, None, :] - locs_ref[None, :, :]) ** 2, axis=-1)
    _, idx = lax.top_k(-d2, kk)
    return idx                                                        # (Nq, kk)


def init_convnn_params(key, cin, cout, hidden, d=3):
    k1, k2, k3 = jax.random.split(key, 3)
    return dict(
        w1=jax.random.normal(k1, (d, hidden), jnp.float32) * 0.5,
        b1=jnp.zeros((hidden,), jnp.float32),
        w2=jax.random.normal(k2, (hidden, cin * cout), jnp.float32) / hidden,
        b2=jax.random.normal(k3, (cin * cout,), jnp.float32) * 0.05,
        bias=jnp.zeros((cout, 1), jnp.float32),
    )


def gen_conv_weights(cparams, locs_src, locs_dst, cin, cout, kk):
    """Per-location weight generation (MLP on relative offsets), plain-JAX glue.

    Returns weights laid out (kk*cin*cout, N_dst) (lane-dense on N) and the
    neighbour index table laid out (kk, N_dst).
    """
    idx = knn_indices(locs_dst, locs_src, kk)                         # (N_dst, kk)
    delta = locs_src[idx] - locs_dst[:, None, :]                      # (N_dst, kk, d)
    h = jax.nn.relu(delta @ cparams["w1"] + cparams["b1"])            # (N_dst, kk, hidden)
    wflat = h @ cparams["w2"] + cparams["b2"]                         # (N_dst, kk, cin*cout)
    n_dst = locs_dst.shape[0]
    w = jnp.transpose(wflat.reshape(n_dst, kk * cin * cout), (1, 0))  # (kk*cin*cout, N_dst)
    return w, jnp.transpose(idx, (1, 0)).astype(jnp.int32)            # (kk, N_dst)


def resblock_forward(x_bcn, params, locs_in, locs_out, *, k=9, k_pool=4, eps=1e-5):
    """ResBlockNN.forward.  x_bcn: (B, C_in, N_in) -> (B, C_out, N_out)."""
    B, Cin, N_in = x_bcn.shape
    N_out = locs_out.shape[0]
    Cout = params["bn1_g"].shape[0]

    w1, idx1 = gen_conv_weights(params["conv1"], locs_in, locs_out, Cin, Cout, k)
    w2, idx2 = gen_conv_weights(params["conv2"], locs_out, locs_out, Cout, Cout, k)
    idx4 = jnp.transpose(knn_indices(locs_out, locs_in, k_pool), (1, 0)).astype(jnp.int32)

    x2d = x_bcn.reshape(B * Cin, N_in).astype(jnp.float32)            # lane-dense layout

    kernel = functools.partial(
        _resblock_kernel, B=B, Cin=Cin, Cout=Cout, N_in=N_in, N_out=N_out,
        k=k, k_pool=k_pool, eps=eps)

    vmem = pl.BlockSpec(memory_space=pltpu.MemorySpace.VMEM)          # whole-array, VMEM
    out2d = pl.pallas_call(
        kernel,
        out_shape=jax.ShapeDtypeStruct((B * Cout, N_out), jnp.float32),
        in_specs=[vmem] * 16,
        out_specs=vmem,
    )(x2d, idx1, idx2, idx4,
      w1, params["conv1"]["bias"], w2, params["conv2"]["bias"],
      params["expand_w"], params["expand_b"],
      params["bn1_g"], params["bn1_b"],
      params["bn2_g"], params["bn2_b"],
      params["bn3_g"], params["bn3_b"])
    return out2d.reshape(B, Cout, N_out)                              # PyTorch (B, C, N) layout


# ----------------------------------------------------------------------------
# Main
# ----------------------------------------------------------------------------

if __name__ == "__main__":
    B, Cin, Cout = 2, 4, 8
    N_in, N_out, hidden, d = 256, 128, 9, 3      # N multiple of 128 -> lane-dense

    key = jax.random.PRNGKey(0)
    keys = jax.random.split(key, 6)
    locs_in = jax.random.uniform(keys[0], (N_in, d), jnp.float32)
    locs_out = jax.random.uniform(keys[1], (N_out, d), jnp.float32)
    x = jax.random.normal(keys[2], (B, Cin, N_in), jnp.float32)

    params = dict(
        conv1=init_convnn_params(keys[3], Cin, Cout, hidden, d),
        conv2=init_convnn_params(keys[4], Cout, Cout, hidden, d),
        expand_w=jax.random.normal(keys[5], (Cin, Cout, 1), jnp.float32) * 0.3,
        expand_b=jnp.zeros((Cout, 1), jnp.float32),
        bn1_g=jnp.ones((Cout, 1), jnp.float32), bn1_b=jnp.zeros((Cout, 1), jnp.float32),
        bn2_g=jnp.ones((Cout, 1), jnp.float32), bn2_b=jnp.zeros((Cout, 1), jnp.float32),
        bn3_g=jnp.ones((Cout, 1), jnp.float32), bn3_b=jnp.zeros((Cout, 1), jnp.float32),
    )

    forward = jax.jit(resblock_forward)
    y = forward(x, params, locs_in, locs_out)
    jax.block_until_ready(y)
    assert y.shape == (B, Cout, N_out), y.shape
    assert bool(jnp.all(y >= 0.0))  # final ReLU
    print("KERNEL_OK")
</pallas_src>

<mosaic_0001>
module attributes {stable_mosaic.version = 11 : i64} {
  func.func @_resblock_kernel(%arg0: memref<8x256xf32, #tpu.memory_space<vmem>>, %arg1: memref<9x128xi32, #tpu.memory_space<vmem>>, %arg2: memref<9x128xi32, #tpu.memory_space<vmem>>, %arg3: memref<4x128xi32, #tpu.memory_space<vmem>>, %arg4: memref<288x128xf32, #tpu.memory_space<vmem>>, %arg5: memref<8x1xf32, #tpu.memory_space<vmem>>, %arg6: memref<576x128xf32, #tpu.memory_space<vmem>>, %arg7: memref<8x1xf32, #tpu.memory_space<vmem>>, %arg8: memref<4x8x1xf32, #tpu.memory_space<vmem>>, %arg9: memref<8x1xf32, #tpu.memory_space<vmem>>, %arg10: memref<8x1xf32, #tpu.memory_space<vmem>>, %arg11: memref<8x1xf32, #tpu.memory_space<vmem>>, %arg12: memref<8x1xf32, #tpu.memory_space<vmem>>, %arg13: memref<8x1xf32, #tpu.memory_space<vmem>>, %arg14: memref<8x1xf32, #tpu.memory_space<vmem>>, %arg15: memref<8x1xf32, #tpu.memory_space<vmem>>, %arg16: memref<16x128xf32, #tpu.memory_space<vmem>>) attributes {dimension_semantics = [], scalar_prefetch = 0 : i64, scratch_operands = 0 : i64, tpu.core_type = #tpu.core_type<tc>} {
    %c0 = arith.constant 0 : index
    %c0_0 = arith.constant 0 : index
    %0 = vector.load %arg0[%c0, %c0_0] : memref<8x256xf32, #tpu.memory_space<vmem>>, vector<8x256xf32>
    %1 = tpu.iota {dimensions = array<i32: 0>} : vector<256x128xi32>
    %2 = tpu.iota {dimensions = array<i32: 0>} : vector<128x128xi32>
    %cst = arith.constant 0.000000e+00 : f32
    %3 = vector.broadcast %cst : f32 to vector<2x8x128xf32>
    %c0_1 = arith.constant 0 : index
    %c0_2 = arith.constant 0 : index
    %4 = vector.load %arg1[%c0_1, %c0_2] : memref<9x128xi32, #tpu.memory_space<vmem>>, vector<1x128xi32>
    %5 = vector.broadcast %4 : vector<1x128xi32> to vector<256x128xi32>
    %6 = arith.cmpi eq, %1, %5 : vector<256x128xi32>
    %7 = arith.extui %6 : vector<256x128xi1> to vector<256x128xi32>
    %8 = arith.sitofp %7 : vector<256x128xi32> to vector<256x128xf32>
    %cst_3 = arith.constant dense<0.000000e+00> : vector<8x128xf32>
    %9 = tpu.matmul %0, %8, %cst_3 {dimension_numbers = #tpu.dot_dimension_numbers<[1], [0], [0], [1], [0, 0, 1, 1], [], []>} : vector<8x256xf32>, vector<256x128xf32>, vector<8x128xf32> -> vector<8x128xf32>
    %10 = vector.shape_cast %9 : vector<8x128xf32> to vector<2x4x128xf32>
    %c0_4 = arith.constant 0 : index
    %c0_5 = arith.constant 0 : index
    %11 = vector.load %arg4[%c0_4, %c0_5] : memref<288x128xf32, #tpu.memory_space<vmem>>, vector<32x128xf32>
    %12 = vector.shape_cast %11 : vector<32x128xf32> to vector<4x8x128xf32>
    %13 = vector.shape_cast %10 : vector<2x4x128xf32> to vector<2x4x1x128xf32>
    %14 = vector.shape_cast %12 : vector<4x8x128xf32> to vector<1x4x8x128xf32>
    %15 = vector.broadcast %13 : vector<2x4x1x128xf32> to vector<2x4x8x128xf32>
    %16 = vector.broadcast %14 : vector<1x4x8x128xf32> to vector<2x4x8x128xf32>
    %17 = arith.mulf %15, %16 : vector<2x4x8x128xf32>
    %cst_6 = arith.constant dense<0.000000e+00> : vector<2x8x128xf32>
    %18 = vector.multi_reduction <add>, %17, %cst_6 [1] : vector<2x4x8x128xf32> to vector<2x8x128xf32>
    %19 = arith.addf %3, %18 : vector<2x8x128xf32>
    %c1 = arith.constant 1 : index
    %c0_7 = arith.constant 0 : index
    %20 = vector.load %arg1[%c1, %c0_7] : memref<9x128xi32, #tpu.memory_space<vmem>>, vector<1x128xi32>
    %21 = vector.broadcast %20 : vector<1x128xi32> to vector<256x128xi32>
    %22 = arith.cmpi eq, %1, %21 : vector<256x128xi32>
    %23 = arith.extui %22 : vector<256x128xi1> to vector<256x128xi32>
    %24 = arith.sitofp %23 : vector<256x128xi32> to vector<256x128xf32>
    %cst_8 = arith.constant dense<0.000000e+00> : vector<8x128xf32>
    %25 = tpu.matmul %0, %24, %cst_8 {dimension_numbers = #tpu.dot_dimension_numbers<[1], [0], [0], [1], [0, 0, 1, 1], [], []>} : vector<8x256xf32>, vector<256x128xf32>, vector<8x128xf32> -> vector<8x128xf32>
    %26 = vector.shape_cast %25 : vector<8x128xf32> to vector<2x4x128xf32>
    %c32 = arith.constant 32 : index
    %c0_9 = arith.constant 0 : index
    %27 = vector.load %arg4[%c32, %c0_9] : memref<288x128xf32, #tpu.memory_space<vmem>>, vector<32x128xf32>
    %28 = vector.shape_cast %27 : vector<32x128xf32> to vector<4x8x128xf32>
    %29 = vector.shape_cast %26 : vector<2x4x128xf32> to vector<2x4x1x128xf32>
    %30 = vector.shape_cast %28 : vector<4x8x128xf32> to vector<1x4x8x128xf32>
    %31 = vector.broadcast %29 : vector<2x4x1x128xf32> to vector<2x4x8x128xf32>
    %32 = vector.broadcast %30 : vector<1x4x8x128xf32> to vector<2x4x8x128xf32>
    %33 = arith.mulf %31, %32 : vector<2x4x8x128xf32>
    %cst_10 = arith.constant dense<0.000000e+00> : vector<2x8x128xf32>
    %34 = vector.multi_reduction <add>, %33, %cst_10 [1] : vector<2x4x8x128xf32> to vector<2x8x128xf32>
    %35 = arith.addf %19, %34 : vector<2x8x128xf32>
    %c2 = arith.constant 2 : index
    %c0_11 = arith.constant 0 : index
    %36 = vector.load %arg1[%c2, %c0_11] : memref<9x128xi32, #tpu.memory_space<vmem>>, vector<1x128xi32>
    %37 = vector.broadcast %36 : vector<1x128xi32> to vector<256x128xi32>
    %38 = arith.cmpi eq, %1, %37 : vector<256x128xi32>
    %39 = arith.extui %38 : vector<256x128xi1> to vector<256x128xi32>
    %40 = arith.sitofp %39 : vector<256x128xi32> to vector<256x128xf32>
    %cst_12 = arith.constant dense<0.000000e+00> : vector<8x128xf32>
    %41 = tpu.matmul %0, %40, %cst_12 {dimension_numbers = #tpu.dot_dimension_numbers<[1], [0], [0], [1], [0, 0, 1, 1], [], []>} : vector<8x256xf32>, vector<256x128xf32>, vector<8x128xf32> -> vector<8x128xf32>
    %42 = vector.shape_cast %41 : vector<8x128xf32> to vector<2x4x128xf32>
    %c64 = arith.constant 64 : index
    %c0_13 = arith.constant 0 : index
    %43 = vector.load %arg4[%c64, %c0_13] : memref<288x128xf32, #tpu.memory_space<vmem>>, vector<32x128xf32>
    %44 = vector.shape_cast %43 : vector<32x128xf32> to vector<4x8x128xf32>
    %45 = vector.shape_cast %42 : vector<2x4x128xf32> to vector<2x4x1x128xf32>
    %46 = vector.shape_cast %44 : vector<4x8x128xf32> to vector<1x4x8x128xf32>
    %47 = vector.broadcast %45 : vector<2x4x1x128xf32> to vector<2x4x8x128xf32>
    %48 = vector.broadcast %46 : vector<1x4x8x128xf32> to vector<2x4x8x128xf32>
    %49 = arith.mulf %47, %48 : vector<2x4x8x128xf32>
    %cst_14 = arith.constant dense<0.000000e+00> : vector<2x8x128xf32>
    %50 = vector.multi_reduction <add>, %49, %cst_14 [1] : vector<2x4x8x128xf32> to vector<2x8x128xf32>
    %51 = arith.addf %35, %50 : vector<2x8x128xf32>
    %c3 = arith.constant 3 : index
    %c0_15 = arith.constant 0 : index
    %52 = vector.load %arg1[%c3, %c0_15] : memref<9x128xi32, #tpu.memory_space<vmem>>, vector<1x128xi32>
    %53 = vector.broadcast %52 : vector<1x128xi32> to vector<256x128xi32>
    %54 = arith.cmpi eq, %1, %53 : vector<256x128xi32>
    %55 = arith.extui %54 : vector<256x128xi1> to vector<256x128xi32>
    %56 = arith.sitofp %55 : vector<256x128xi32> to vector<256x128xf32>
    %cst_16 = arith.constant dense<0.000000e+00> : vector<8x128xf32>
    %57 = tpu.matmul %0, %56, %cst_16 {dimension_numbers = #tpu.dot_dimension_numbers<[1], [0], [0], [1], [0, 0, 1, 1], [], []>} : vector<8x256xf32>, vector<256x128xf32>, vector<8x128xf32> -> vector<8x128xf32>
    %58 = vector.shape_cast %57 : vector<8x128xf32> to vector<2x4x128xf32>
    %c96 = arith.constant 96 : index
    %c0_17 = arith.constant 0 : index
    %59 = vector.load %arg4[%c96, %c0_17] : memref<288x128xf32, #tpu.memory_space<vmem>>, vector<32x128xf32>
    %60 = vector.shape_cast %59 : vector<32x128xf32> to vector<4x8x128xf32>
    %61 = vector.shape_cast %58 : vector<2x4x128xf32> to vector<2x4x1x128xf32>
    %62 = vector.shape_cast %60 : vector<4x8x128xf32> to vector<1x4x8x128xf32>
    %63 = vector.broadcast %61 : vector<2x4x1x128xf32> to vector<2x4x8x128xf32>
    %64 = vector.broadcast %62 : vector<1x4x8x128xf32> to vector<2x4x8x128xf32>
    %65 = arith.mulf %63, %64 : vector<2x4x8x128xf32>
    %cst_18 = arith.constant dense<0.000000e+00> : vector<2x8x128xf32>
    %66 = vector.multi_reduction <add>, %65, %cst_18 [1] : vector<2x4x8x128xf32> to vector<2x8x128xf32>
    %67 = arith.addf %51, %66 : vector<2x8x128xf32>
    %c4 = arith.constant 4 : index
    %c0_19 = arith.constant 0 : index
    %68 = vector.load %arg1[%c4, %c0_19] : memref<9x128xi32, #tpu.memory_space<vmem>>, vector<1x128xi32>
    %69 = vector.broadcast %68 : vector<1x128xi32> to vector<256x128xi32>
    %70 = arith.cmpi eq, %1, %69 : vector<256x128xi32>
    %71 = arith.extui %70 : vector<256x128xi1> to vector<256x128xi32>
    %72 = arith.sitofp %71 : vector<256x128xi32> to vector<256x128xf32>
    %cst_20 = arith.constant dense<0.000000e+00> : vector<8x128xf32>
    %73 = tpu.matmul %0, %72, %cst_20 {dimension_numbers = #tpu.dot_dimension_numbers<[1], [0], [0], [1], [0, 0, 1, 1], [], []>} : vector<8x256xf32>, vector<256x128xf32>, vector<8x128xf32> -> vector<8x128xf32>
    %74 = vector.shape_cast %73 : vector<8x128xf32> to vector<2x4x128xf32>
    %c128 = arith.constant 128 : index
    %c0_21 = arith.constant 0 : index
    %75 = vector.load %arg4[%c128, %c0_21] : memref<288x128xf32, #tpu.memory_space<vmem>>, vector<32x128xf32>
    %76 = vector.shape_cast %75 : vector<32x128xf32> to vector<4x8x128xf32>
    %77 = vector.shape_cast %74 : vector<2x4x128xf32> to vector<2x4x1x128xf32>
    %78 = vector.shape_cast %76 : vector<4x8x128xf32> to vector<1x4x8x128xf32>
    %79 = vector.broadcast %77 : vector<2x4x1x128xf32> to vector<2x4x8x128xf32>
    %80 = vector.broadcast %78 : vector<1x4x8x128xf32> to vector<2x4x8x128xf32>
    %81 = arith.mulf %79, %80 : vector<2x4x8x128xf32>
    %cst_22 = arith.constant dense<0.000000e+00> : vector<2x8x128xf32>
    %82 = vector.multi_reduction <add>, %81, %cst_22 [1] : vector<2x4x8x128xf32> to vector<2x8x128xf32>
    %83 = arith.addf %67, %82 : vector<2x8x128xf32>
    %c5 = arith.constant 5 : index
    %c0_23 = arith.constant 0 : index
    %84 = vector.load %arg1[%c5, %c0_23] : memref<9x128xi32, #tpu.memory_space<vmem>>, vector<1x128xi32>
    %85 = vector.broadcast %84 : vector<1x128xi32> to vector<256x128xi32>
    %86 = arith.cmpi eq, %1, %85 : vector<256x128xi32>
    %87 = arith.extui %86 : vector<256x128xi1> to vector<256x128xi32>
    %88 = arith.sitofp %87 : vector<256x128xi32> to vector<256x128xf32>
    %cst_24 = arith.constant dense<0.000000e+00> : vector<8x128xf32>
    %89 = tpu.matmul %0, %88, %cst_24 {dimension_numbers = #tpu.dot_dimension_numbers<[1], [0], [0], [1], [0, 0, 1, 1], [], []>} : vector<8x256xf32>, vector<256x128xf32>, vector<8x128xf32> -> vector<8x128xf32>
    %90 = vector.shape_cast %89 : vector<8x128xf32> to vector<2x4x128xf32>
    %c160 = arith.constant 160 : index
    %c0_25 = arith.constant 0 : index
    %91 = vector.load %arg4[%c160, %c0_25] : memref<288x128xf32, #tpu.memory_space<vmem>>, vector<32x128xf32>
    %92 = vector.shape_cast %91 : vector<32x128xf32> to vector<4x8x128xf32>
    %93 = vector.shape_cast %90 : vector<2x4x128xf32> to vector<2x4x1x128xf32>
    %94 = vector.shape_cast %92 : vector<4x8x128xf32> to vector<1x4x8x128xf32>
    %95 = vector.broadcast %93 : vector<2x4x1x128xf32> to vector<2x4x8x128xf32>
    %96 = vector.broadcast %94 : vector<1x4x8x128xf32> to vector<2x4x8x128xf32>
    %97 = arith.mulf %95, %96 : vector<2x4x8x128xf32>
    %cst_26 = arith.constant dense<0.000000e+00> : vector<2x8x128xf32>
    %98 = vector.multi_reduction <add>, %97, %cst_26 [1] : vector<2x4x8x128xf32> to vector<2x8x128xf32>
    %99 = arith.addf %83, %98 : vector<2x8x128xf32>
    %c6 = arith.constant 6 : index
    %c0_27 = arith.constant 0 : index
    %100 = vector.load %arg1[%c6, %c0_27] : memref<9x128xi32, #tpu.memory_space<vmem>>, vector<1x128xi32>
    %101 = vector.broadcast %100 : vector<1x128xi32> to vector<256x128xi32>
    %102 = arith.cmpi eq, %1, %101 : vector<256x128xi32>
    %103 = arith.extui %102 : vector<256x128xi1> to vector<256x128xi32>
    %104 = arith.sitofp %103 : vector<256x128xi32> to vector<256x128xf32>
    %cst_28 = arith.constant dense<0.000000e+00> : vector<8x128xf32>
    %105 = tpu.matmul %0, %104, %cst_28 {dimension_numbers = #tpu.dot_dimension_numbers<[1], [0], [0], [1], [0, 0, 1, 1], [], []>} : vector<8x256xf32>, vector<256x128xf32>, vector<8x128xf32> -> vector<8x128xf32>
    %106 = vector.shape_cast %105 : vector<8x128xf32> to vector<2x4x128xf32>
    %c192 = arith.constant 192 : index
    %c0_29 = arith.constant 0 : index
    %107 = vector.load %arg4[%c192, %c0_29] : memref<288x128xf32, #tpu.memory_space<vmem>>, vector<32x128xf32>
    %108 = vector.shape_cast %107 : vector<32x128xf32> to vector<4x8x128xf32>
    %109 = vector.shape_cast %106 : vector<2x4x128xf32> to vector<2x4x1x128xf32>
    %110 = vector.shape_cast %108 : vector<4x8x128xf32> to vector<1x4x8x128xf32>
    %111 = vector.broadcast %109 : vector<2x4x1x128xf32> to vector<2x4x8x128xf32>
    %112 = vector.broadcast %110 : vector<1x4x8x128xf32> to vector<2x4x8x128xf32>
    %113 = arith.mulf %111, %112 : vector<2x4x8x128xf32>
    %cst_30 = arith.constant dense<0.000000e+00> : vector<2x8x128xf32>
    %114 = vector.multi_reduction <add>, %113, %cst_30 [1] : vector<2x4x8x128xf32> to vector<2x8x128xf32>
    %115 = arith.addf %99, %114 : vector<2x8x128xf32>
    %c7 = arith.constant 7 : index
    %c0_31 = arith.constant 0 : index
    %116 = vector.load %arg1[%c7, %c0_31] : memref<9x128xi32, #tpu.memory_space<vmem>>, vector<1x128xi32>
    %117 = vector.broadcast %116 : vector<1x128xi32> to vector<256x128xi32>
    %118 = arith.cmpi eq, %1, %117 : vector<256x128xi32>
    %119 = arith.extui %118 : vector<256x128xi1> to vector<256x128xi32>
    %120 = arith.sitofp %119 : vector<256x128xi32> to vector<256x128xf32>
    %cst_32 = arith.constant dense<0.000000e+00> : vector<8x128xf32>
    %121 = tpu.matmul %0, %120, %cst_32 {dimension_numbers = #tpu.dot_dimension_numbers<[1], [0], [0], [1], [0, 0, 1, 1], [], []>} : vector<8x256xf32>, vector<256x128xf32>, vector<8x128xf32> -> vector<8x128xf32>
    %122 = vector.shape_cast %121 : vector<8x128xf32> to vector<2x4x128xf32>
    %c224 = arith.constant 224 : index
    %c0_33 = arith.constant 0 : index
    %123 = vector.load %arg4[%c224, %c0_33] : memref<288x128xf32, #tpu.memory_space<vmem>>, vector<32x128xf32>
    %124 = vector.shape_cast %123 : vector<32x128xf32> to vector<4x8x128xf32>
    %125 = vector.shape_cast %122 : vector<2x4x128xf32> to vector<2x4x1x128xf32>
    %126 = vector.shape_cast %124 : vector<4x8x128xf32> to vector<1x4x8x128xf32>
    %127 = vector.broadcast %125 : vector<2x4x1x128xf32> to vector<2x4x8x128xf32>
    %128 = vector.broadcast %126 : vector<1x4x8x128xf32> to vector<2x4x8x128xf32>
    %129 = arith.mulf %127, %128 : vector<2x4x8x128xf32>
    %cst_34 = arith.constant dense<0.000000e+00> : vector<2x8x128xf32>
    %130 = vector.multi_reduction <add>, %129, %cst_34 [1] : vector<2x4x8x128xf32> to vector<2x8x128xf32>
    %131 = arith.addf %115, %130 : vector<2x8x128xf32>
    %c8 = arith.constant 8 : index
    %c0_35 = arith.constant 0 : index
    %132 = vector.load %arg1[%c8, %c0_35] : memref<9x128xi32, #tpu.memory_space<vmem>>, vector<1x128xi32>
    %133 = vector.broadcast %132 : vector<1x128xi32> to vector<256x128xi32>
    %134 = arith.cmpi eq, %1, %133 : vector<256x128xi32>
    %135 = arith.extui %134 : vector<256x128xi1> to vector<256x128xi32>
    %136 = arith.sitofp %135 : vector<256x128xi32> to vector<256x128xf32>
    %cst_36 = arith.constant dense<0.000000e+00> : vector<8x128xf32>
    %137 = tpu.matmul %0, %136, %cst_36 {dimension_numbers = #tpu.dot_dimension_numbers<[1], [0], [0], [1], [0, 0, 1, 1], [], []>} : vector<8x256xf32>, vector<256x128xf32>, vector<8x128xf32> -> vector<8x128xf32>
    %138 = vector.shape_cast %137 : vector<8x128xf32> to vector<2x4x128xf32>
    %c256 = arith.constant 256 : index
    %c0_37 = arith.constant 0 : index
    %139 = vector.load %arg4[%c256, %c0_37] : memref<288x128xf32, #tpu.memory_space<vmem>>, vector<32x128xf32>
    %140 = vector.shape_cast %139 : vector<32x128xf32> to vector<4x8x128xf32>
    %141 = vector.shape_cast %138 : vector<2x4x128xf32> to vector<2x4x1x128xf32>
    %142 = vector.shape_cast %140 : vector<4x8x128xf32> to vector<1x4x8x128xf32>
    %143 = vector.broadcast %141 : vector<2x4x1x128xf32> to vector<2x4x8x128xf32>
    %144 = vector.broadcast %142 : vector<1x4x8x128xf32> to vector<2x4x8x128xf32>
    %145 = arith.mulf %143, %144 : vector<2x4x8x128xf32>
    %cst_38 = arith.constant dense<0.000000e+00> : vector<2x8x128xf32>
    %146 = vector.multi_reduction <add>, %145, %cst_38 [1] : vector<2x4x8x128xf32> to vector<2x8x128xf32>
    %147 = arith.addf %131, %146 : vector<2x8x128xf32>
    %c0_39 = arith.constant 0 : index
    %c0_40 = arith.constant 0 : index
    %148 = vector.load %arg5[%c0_39, %c0_40] : memref<8x1xf32, #tpu.memory_space<vmem>>, vector<8x1xf32>
    %149 = vector.shape_cast %148 : vector<8x1xf32> to vector<1x8x1xf32>
    %150 = vector.broadcast %149 : vector<1x8x1xf32> to vector<2x8x128xf32>
    %151 = arith.addf %147, %150 : vector<2x8x128xf32>
    %c0_41 = arith.constant 0 : index
    %c0_42 = arith.constant 0 : index
    %152 = vector.load %arg10[%c0_41, %c0_42] : memref<8x1xf32, #tpu.memory_space<vmem>>, vector<8x1xf32>
    %c0_43 = arith.constant 0 : index
    %c0_44 = arith.constant 0 : index
    %153 = vector.load %arg11[%c0_43, %c0_44] : memref<8x1xf32, #tpu.memory_space<vmem>>, vector<8x1xf32>
    %cst_45 = arith.constant dense<0.000000e+00> : vector<2x8xf32>
    %154 = vector.multi_reduction <add>, %151, %cst_45 [2] : vector<2x8x128xf32> to vector<2x8xf32>
    %155 = vector.shape_cast %154 : vector<2x8xf32> to vector<2x8x1xf32>
    %cst_46 = arith.constant dense<0.000000e+00> : vector<8x1xf32>
    %156 = vector.multi_reduction <add>, %155, %cst_46 [0] : vector<2x8x1xf32> to vector<8x1xf32>
    %157 = vector.shape_cast %156 : vector<8x1xf32> to vector<1x8x1xf32>
    %158 = arith.mulf %151, %151 : vector<2x8x128xf32>
    %cst_47 = arith.constant dense<0.000000e+00> : vector<2x8xf32>
    %159 = vector.multi_reduction <add>, %158, %cst_47 [2] : vector<2x8x128xf32> to vector<2x8xf32>
    %160 = vector.shape_cast %159 : vector<2x8xf32> to vector<2x8x1xf32>
    %cst_48 = arith.constant dense<0.000000e+00> : vector<8x1xf32>
    %161 = vector.multi_reduction <add>, %160, %cst_48 [0] : vector<2x8x1xf32> to vector<8x1xf32>
    %162 = vector.shape_cast %161 : vector<8x1xf32> to vector<1x8x1xf32>
    %cst_49 = arith.constant 2.560000e+02 : f32
    %163 = vector.broadcast %cst_49 : f32 to vector<1x8x1xf32>
    %164 = arith.divf %157, %163 : vector<1x8x1xf32>
    %cst_50 = arith.constant 2.560000e+02 : f32
    %165 = vector.broadcast %cst_50 : f32 to vector<1x8x1xf32>
    %166 = arith.divf %162, %165 : vector<1x8x1xf32>
    %167 = arith.mulf %164, %164 : vector<1x8x1xf32>
    %168 = arith.subf %166, %167 : vector<1x8x1xf32>
    %169 = vector.shape_cast %152 : vector<8x1xf32> to vector<1x8x1xf32>
    %cst_51 = arith.constant 9.99999974E-6 : f32
    %170 = vector.broadcast %cst_51 : f32 to vector<1x8x1xf32>
    %171 = arith.addf %168, %170 : vector<1x8x1xf32>
    %172 = math.rsqrt %171 : vector<1x8x1xf32>
    %173 = arith.mulf %169, %172 : vector<1x8x1xf32>
    %174 = vector.shape_cast %153 : vector<8x1xf32> to vector<1x8x1xf32>
    %175 = arith.mulf %164, %173 : vector<1x8x1xf32>
    %176 = arith.subf %174, %175 : vector<1x8x1xf32>
    %177 = vector.broadcast %173 : vector<1x8x1xf32> to vector<2x8x128xf32>
    %178 = arith.mulf %151, %177 : vector<2x8x128xf32>
    %179 = vector.broadcast %176 : vector<1x8x1xf32> to vector<2x8x128xf32>
    %180 = arith.addf %178, %179 : vector<2x8x128xf32>
    %cst_52 = arith.constant 0.000000e+00 : f32
    %181 = vector.broadcast %cst_52 : f32 to vector<2x8x128xf32>
    %182 = arith.maximumf %180, %181 : vector<2x8x128xf32>
    %183 = vector.shape_cast %182 : vector<2x8x128xf32> to vector<16x128xf32>
    %cst_53 = arith.constant 0.000000e+00 : f32
    %184 = vector.broadcast %cst_53 : f32 to vector<2x8x128xf32>
    %c0_54 = arith.constant 0 : index
    %c0_55 = arith.constant 0 : index
    %185 = vector.load %arg2[%c0_54, %c0_55] : memref<9x128xi32, #tpu.memory_space<vmem>>, vector<1x128xi32>
    %186 = vector.broadcast %185 : vector<1x128xi32> to vector<128x128xi32>
    %187 = arith.cmpi eq, %2, %186 : vector<128x128xi32>
    %188 = arith.extui %187 : vector<128x128xi1> to vector<128x128xi32>
    %189 = arith.sitofp %188 : vector<128x128xi32> to vector<128x128xf32>
    %cst_56 = arith.constant dense<0.000000e+00> : vector<16x128xf32>
    %190 = tpu.matmul %183, %189, %cst_56 {dimension_numbers = #tpu.dot_dimension_numbers<[1], [0], [0], [1], [0, 0, 1, 1], [], []>} : vector<16x128xf32>, vector<128x128xf32>, vector<16x128xf32> -> vector<16x128xf32>
    %191 = vector.shape_cast %190 : vector<16x128xf32> to vector<2x8x128xf32>
    %c0_57 = arith.constant 0 : index
    %c0_58 = arith.constant 0 : index
    %192 = vector.load %arg6[%c0_57, %c0_58] : memref<576x128xf32, #tpu.memory_space<vmem>>, vector<64x128xf32>
    %193 = vector.shape_cast %192 : vector<64x128xf32> to vector<8x8x128xf32>
    %194 = vector.shape_cast %191 : vector<2x8x128xf32> to vector<2x8x1x128xf32>
    %195 = vector.shape_cast %193 : vector<8x8x128xf32> to vector<1x8x8x128xf32>
    %196 = vector.broadcast %194 : vector<2x8x1x128xf32> to vector<2x8x8x128xf32>
    %197 = vector.broadcast %195 : vector<1x8x8x128xf32> to vector<2x8x8x128xf32>
    %198 = arith.mulf %196, %197 : vector<2x8x8x128xf32>
    %cst_59 = arith.constant dense<0.000000e+00> : vector<2x8x128xf32>
    %199 = vector.multi_reduction <add>, %198, %cst_59 [1] : vector<2x8x8x128xf32> to vector<2x8x128xf32>
    %200 = arith.addf %184, %199 : vector<2x8x128xf32>
    %c1_60 = arith.constant 1 : index
    %c0_61 = arith.constant 0 : index
    %201 = vector.load %arg2[%c1_60, %c0_61] : memref<9x128xi32, #tpu.memory_space<vmem>>, vector<1x128xi32>
    %202 = vector.broadcast %201 : vector<1x128xi32> to vector<128x128xi32>
    %203 = arith.cmpi eq, %2, %202 : vector<128x128xi32>
    %204 = arith.extui %203 : vector<128x128xi1> to vector<128x128xi32>
    %205 = arith.sitofp %204 : vector<128x128xi32> to vector<128x128xf32>
    %cst_62 = arith.constant dense<0.000000e+00> : vector<16x128xf32>
    %206 = tpu.matmul %183, %205, %cst_62 {dimension_numbers = #tpu.dot_dimension_numbers<[1], [0], [0], [1], [0, 0, 1, 1], [], []>} : vector<16x128xf32>, vector<128x128xf32>, vector<16x128xf32> -> vector<16x128xf32>
    %207 = vector.shape_cast %206 : vector<16x128xf32> to vector<2x8x128xf32>
    %c64_63 = arith.constant 64 : index
    %c0_64 = arith.constant 0 : index
    %208 = vector.load %arg6[%c64_63, %c0_64] : memref<576x128xf32, #tpu.memory_space<vmem>>, vector<64x128xf32>
    %209 = vector.shape_cast %208 : vector<64x128xf32> to vector<8x8x128xf32>
    %210 = vector.shape_cast %207 : vector<2x8x128xf32> to vector<2x8x1x128xf32>
    %211 = vector.shape_cast %209 : vector<8x8x128xf32> to vector<1x8x8x128xf32>
    %212 = vector.broadcast %210 : vector<2x8x1x128xf32> to vector<2x8x8x128xf32>
    %213 = vector.broadcast %211 : vector<1x8x8x128xf32> to vector<2x8x8x128xf32>
    %214 = arith.mulf %212, %213 : vector<2x8x8x128xf32>
    %cst_65 = arith.constant dense<0.000000e+00> : vector<2x8x128xf32>
    %215 = vector.multi_reduction <add>, %214, %cst_65 [1] : vector<2x8x8x128xf32> to vector<2x8x128xf32>
    %216 = arith.addf %200, %215 : vector<2x8x128xf32>
    %c2_66 = arith.constant 2 : index
    %c0_67 = arith.constant 0 : index
    %217 = vector.load %arg2[%c2_66, %c0_67] : memref<9x128xi32, #tpu.memory_space<vmem>>, vector<1x128xi32>
    %218 = vector.broadcast %217 : vector<1x128xi32> to vector<128x128xi32>
    %219 = arith.cmpi eq, %2, %218 : vector<128x128xi32>
    %220 = arith.extui %219 : vector<128x128xi1> to vector<128x128xi32>
    %221 = arith.sitofp %220 : vector<128x128xi32> to vector<128x128xf32>
    %cst_68 = arith.constant dense<0.000000e+00> : vector<16x128xf32>
    %222 = tpu.matmul %183, %221, %cst_68 {dimension_numbers = #tpu.dot_dimension_numbers<[1], [0], [0], [1], [0, 0, 1, 1], [], []>} : vector<16x128xf32>, vector<128x128xf32>, vector<16x128xf32> -> vector<16x128xf32>
    %223 = vector.shape_cast %222 : vector<16x128xf32> to vector<2x8x128xf32>
    %c128_69 = arith.constant 128 : index
    %c0_70 = arith.constant 0 : index
    %224 = vector.load %arg6[%c128_69, %c0_70] : memref<576x128xf32, #tpu.memory_space<vmem>>, vector<64x128xf32>
    %225 = vector.shape_cast %224 : vector<64x128xf32> to vector<8x8x128xf32>
    %226 = vector.shape_cast %223 : vector<2x8x128xf32> to vector<2x8x1x128xf32>
    %227 = vector.shape_cast %225 : vector<8x8x128xf32> to vector<1x8x8x128xf32>
    %228 = vector.broadcast %226 : vector<2x8x1x128xf32> to vector<2x8x8x128xf32>
    %229 = vector.broadcast %227 : vector<1x8x8x128xf32> to vector<2x8x8x128xf32>
    %230 = arith.mulf %228, %229 : vector<2x8x8x128xf32>
    %cst_71 = arith.constant dense<0.000000e+00> : vector<2x8x128xf32>
    %231 = vector.multi_reduction <add>, %230, %cst_71 [1] : vector<2x8x8x128xf32> to vector<2x8x128xf32>
    %232 = arith.addf %216, %231 : vector<2x8x128xf32>
    %c3_72 = arith.constant 3 : index
    %c0_73 = arith.constant 0 : index
    %233 = vector.load %arg2[%c3_72, %c0_73] : memref<9x128xi32, #tpu.memory_space<vmem>>, vector<1x128xi32>
    %234 = vector.broadcast %233 : vector<1x128xi32> to vector<128x128xi32>
    %235 = arith.cmpi eq, %2, %234 : vector<128x128xi32>
    %236 = arith.extui %235 : vector<128x128xi1> to vector<128x128xi32>
    %237 = arith.sitofp %236 : vector<128x128xi32> to vector<128x128xf32>
    %cst_74 = arith.constant dense<0.000000e+00> : vector<16x128xf32>
    %238 = tpu.matmul %183, %237, %cst_74 {dimension_numbers = #tpu.dot_dimension_numbers<[1], [0], [0], [1], [0, 0, 1, 1], [], []>} : vector<16x128xf32>, vector<128x128xf32>, vector<16x128xf32> -> vector<16x128xf32>
    %239 = vector.shape_cast %238 : vector<16x128xf32> to vector<2x8x128xf32>
    %c192_75 = arith.constant 192 : index
    %c0_76 = arith.constant 0 : index
    %240 = vector.load %arg6[%c192_75, %c0_76] : memref<576x128xf32, #tpu.memory_space<vmem>>, vector<64x128xf32>
    %241 = vector.shape_cast %240 : vector<64x128xf32> to vector<8x8x128xf32>
    %242 = vector.shape_cast %239 : vector<2x8x128xf32> to vector<2x8x1x128xf32>
    %243 = vector.shape_cast %241 : vector<8x8x128xf32> to vector<1x8x8x128xf32>
    %244 = vector.broadcast %242 : vector<2x8x1x128xf32> to vector<2x8x8x128xf32>
    %245 = vector.broadcast %243 : vector<1x8x8x128xf32> to vector<2x8x8x128xf32>
    %246 = arith.mulf %244, %245 : vector<2x8x8x128xf32>
    %cst_77 = arith.constant dense<0.000000e+00> : vector<2x8x128xf32>
    %247 = vector.multi_reduction <add>, %246, %cst_77 [1] : vector<2x8x8x128xf32> to vector<2x8x128xf32>
    %248 = arith.addf %232, %247 : vector<2x8x128xf32>
    %c4_78 = arith.constant 4 : index
    %c0_79 = arith.constant 0 : index
    %249 = vector.load %arg2[%c4_78, %c0_79] : memref<9x128xi32, #tpu.memory_space<vmem>>, vector<1x128xi32>
    %250 = vector.broadcast %249 : vector<1x128xi32> to vector<128x128xi32>
    %251 = arith.cmpi eq, %2, %250 : vector<128x128xi32>
    %252 = arith.extui %251 : vector<128x128xi1> to vector<128x128xi32>
    %253 = arith.sitofp %252 : vector<128x128xi32> to vector<128x128xf32>
    %cst_80 = arith.constant dense<0.000000e+00> : vector<16x128xf32>
    %254 = tpu.matmul %183, %253, %cst_80 {dimension_numbers = #tpu.dot_dimension_numbers<[1], [0], [0], [1], [0, 0, 1, 1], [], []>} : vector<16x128xf32>, vector<128x128xf32>, vector<16x128xf32> -> vector<16x128xf32>
    %255 = vector.shape_cast %254 : vector<16x128xf32> to vector<2x8x128xf32>
    %c256_81 = arith.constant 256 : index
    %c0_82 = arith.constant 0 : index
    %256 = vector.load %arg6[%c256_81, %c0_82] : memref<576x128xf32, #tpu.memory_space<vmem>>, vector<64x128xf32>
    %257 = vector.shape_cast %256 : vector<64x128xf32> to vector<8x8x128xf32>
    %258 = vector.shape_cast %255 : vector<2x8x128xf32> to vector<2x8x1x128xf32>
    %259 = vector.shape_cast %257 : vector<8x8x128xf32> to vector<1x8x8x128xf32>
    %260 = vector.broadcast %258 : vector<2x8x1x128xf32> to vector<2x8x8x128xf32>
    %261 = vector.broadcast %259 : vector<1x8x8x128xf32> to vector<2x8x8x128xf32>
    %262 = arith.mulf %260, %261 : vector<2x8x8x128xf32>
    %cst_83 = arith.constant dense<0.000000e+00> : vector<2x8x128xf32>
    %263 = vector.multi_reduction <add>, %262, %cst_83 [1] : vector<2x8x8x128xf32> to vector<2x8x128xf32>
    %264 = arith.addf %248, %263 : vector<2x8x128xf32>
    %c5_84 = arith.constant 5 : index
    %c0_85 = arith.constant 0 : index
    %265 = vector.load %arg2[%c5_84, %c0_85] : memref<9x128xi32, #tpu.memory_space<vmem>>, vector<1x128xi32>
    %266 = vector.broadcast %265 : vector<1x128xi32> to vector<128x128xi32>
    %267 = arith.cmpi eq, %2, %266 : vector<128x128xi32>
    %268 = arith.extui %267 : vector<128x128xi1> to vector<128x128xi32>
    %269 = arith.sitofp %268 : vector<128x128xi32> to vector<128x128xf32>
    %cst_86 = arith.constant dense<0.000000e+00> : vector<16x128xf32>
    %270 = tpu.matmul %183, %269, %cst_86 {dimension_numbers = #tpu.dot_dimension_numbers<[1], [0], [0], [1], [0, 0, 1, 1], [], []>} : vector<16x128xf32>, vector<128x128xf32>, vector<16x128xf32> -> vector<16x128xf32>
    %271 = vector.shape_cast %270 : vector<16x128xf32> to vector<2x8x128xf32>
    %c320 = arith.constant 320 : index
    %c0_87 = arith.constant 0 : index
    %272 = vector.load %arg6[%c320, %c0_87] : memref<576x128xf32, #tpu.memory_space<vmem>>, vector<64x128xf32>
    %273 = vector.shape_cast %272 : vector<64x128xf32> to vector<8x8x128xf32>
    %274 = vector.shape_cast %271 : vector<2x8x128xf32> to vector<2x8x1x128xf32>
    %275 = vector.shape_cast %273 : vector<8x8x128xf32> to vector<1x8x8x128xf32>
    %276 = vector.broadcast %274 : vector<2x8x1x128xf32> to vector<2x8x8x128xf32>
    %277 = vector.broadcast %275 : vector<1x8x8x128xf32> to vector<2x8x8x128xf32>
    %278 = arith.mulf %276, %277 : vector<2x8x8x128xf32>
    %cst_88 = arith.constant dense<0.000000e+00> : vector<2x8x128xf32>
    %279 = vector.multi_reduction <add>, %278, %cst_88 [1] : vector<2x8x8x128xf32> to vector<2x8x128xf32>
    %280 = arith.addf %264, %279 : vector<2x8x128xf32>
    %c6_89 = arith.constant 6 : index
    %c0_90 = arith.constant 0 : index
    %281 = vector.load %arg2[%c6_89, %c0_90] : memref<9x128xi32, #tpu.memory_space<vmem>>, vector<1x128xi32>
    %282 = vector.broadcast %281 : vector<1x128xi32> to vector<128x128xi32>
    %283 = arith.cmpi eq, %2, %282 : vector<128x128xi32>
    %284 = arith.extui %283 : vector<128x128xi1> to vector<128x128xi32>
    %285 = arith.sitofp %284 : vector<128x128xi32> to vector<128x128xf32>
    %cst_91 = arith.constant dense<0.000000e+00> : vector<16x128xf32>
    %286 = tpu.matmul %183, %285, %cst_91 {dimension_numbers = #tpu.dot_dimension_numbers<[1], [0], [0], [1], [0, 0, 1, 1], [], []>} : vector<16x128xf32>, vector<128x128xf32>, vector<16x128xf32> -> vector<16x128xf32>
    %287 = vector.shape_cast %286 : vector<16x128xf32> to vector<2x8x128xf32>
    %c384 = arith.constant 384 : index
    %c0_92 = arith.constant 0 : index
    %288 = vector.load %arg6[%c384, %c0_92] : memref<576x128xf32, #tpu.memory_space<vmem>>, vector<64x128xf32>
    %289 = vector.shape_cast %288 : vector<64x128xf32> to vector<8x8x128xf32>
    %290 = vector.shape_cast %287 : vector<2x8x128xf32> to vector<2x8x1x128xf32>
    %291 = vector.shape_cast %289 : vector<8x8x128xf32> to vector<1x8x8x128xf32>
    %292 = vector.broadcast %290 : vector<2x8x1x128xf32> to vector<2x8x8x128xf32>
    %293 = vector.broadcast %291 : vector<1x8x8x128xf32> to vector<2x8x8x128xf32>
    %294 = arith.mulf %292, %293 : vector<2x8x8x128xf32>
    %cst_93 = arith.constant dense<0.000000e+00> : vector<2x8x128xf32>
    %295 = vector.multi_reduction <add>, %294, %cst_93 [1] : vector<2x8x8x128xf32> to vector<2x8x128xf32>
    %296 = arith.addf %280, %295 : vector<2x8x128xf32>
    %c7_94 = arith.constant 7 : index
    %c0_95 = arith.constant 0 : index
    %297 = vector.load %arg2[%c7_94, %c0_95] : memref<9x128xi32, #tpu.memory_space<vmem>>, vector<1x128xi32>
    %298 = vector.broadcast %297 : vector<1x128xi32> to vector<128x128xi32>
    %299 = arith.cmpi eq, %2, %298 : vector<128x128xi32>
    %300 = arith.extui %299 : vector<128x128xi1> to vector<128x128xi32>
    %301 = arith.sitofp %300 : vector<128x128xi32> to vector<128x128xf32>
    %cst_96 = arith.constant dense<0.000000e+00> : vector<16x128xf32>
    %302 = tpu.matmul %183, %301, %cst_96 {dimension_numbers = #tpu.dot_dimension_numbers<[1], [0], [0], [1], [0, 0, 1, 1], [], []>} : vector<16x128xf32>, vector<128x128xf32>, vector<16x128xf32> -> vector<16x128xf32>
    %303 = vector.shape_cast %302 : vector<16x128xf32> to vector<2x8x128xf32>
    %c448 = arith.constant 448 : index
    %c0_97 = arith.constant 0 : index
    %304 = vector.load %arg6[%c448, %c0_97] : memref<576x128xf32, #tpu.memory_space<vmem>>, vector<64x128xf32>
    %305 = vector.shape_cast %304 : vector<64x128xf32> to vector<8x8x128xf32>
    %306 = vector.shape_cast %303 : vector<2x8x128xf32> to vector<2x8x1x128xf32>
    %307 = vector.shape_cast %305 : vector<8x8x128xf32> to vector<1x8x8x128xf32>
    %308 = vector.broadcast %306 : vector<2x8x1x128xf32> to vector<2x8x8x128xf32>
    %309 = vector.broadcast %307 : vector<1x8x8x128xf32> to vector<2x8x8x128xf32>
    %310 = arith.mulf %308, %309 : vector<2x8x8x128xf32>
    %cst_98 = arith.constant dense<0.000000e+00> : vector<2x8x128xf32>
    %311 = vector.multi_reduction <add>, %310, %cst_98 [1] : vector<2x8x8x128xf32> to vector<2x8x128xf32>
    %312 = arith.addf %296, %311 : vector<2x8x128xf32>
    %c8_99 = arith.constant 8 : index
    %c0_100 = arith.constant 0 : index
    %313 = vector.load %arg2[%c8_99, %c0_100] : memref<9x128xi32, #tpu.memory_space<vmem>>, vector<1x128xi32>
    %314 = vector.broadcast %313 : vector<1x128xi32> to vector<128x128xi32>
    %315 = arith.cmpi eq, %2, %314 : vector<128x128xi32>
    %316 = arith.extui %315 : vector<128x128xi1> to vector<128x128xi32>
    %317 = arith.sitofp %316 : vector<128x128xi32> to vector<128x128xf32>
    %cst_101 = arith.constant dense<0.000000e+00> : vector<16x128xf32>
    %318 = tpu.matmul %183, %317, %cst_101 {dimension_numbers = #tpu.dot_dimension_numbers<[1], [0], [0], [1], [0, 0, 1, 1], [], []>} : vector<16x128xf32>, vector<128x128xf32>, vector<16x128xf32> -> vector<16x128xf32>
    %319 = vector.shape_cast %318 : vector<16x128xf32> to vector<2x8x128xf32>
    %c512 = arith.constant 512 : index
    %c0_102 = arith.constant 0 : index
    %320 = vector.load %arg6[%c512, %c0_102] : memref<576x128xf32, #tpu.memory_space<vmem>>, vector<64x128xf32>
    %321 = vector.shape_cast %320 : vector<64x128xf32> to vector<8x8x128xf32>
    %322 = vector.shape_cast %319 : vector<2x8x128xf32> to vector<2x8x1x128xf32>
    %323 = vector.shape_cast %321 : vector<8x8x128xf32> to vector<1x8x8x128xf32>
    %324 = vector.broadcast %322 : vector<2x8x1x128xf32> to vector<2x8x8x128xf32>
    %325 = vector.broadcast %323 : vector<1x8x8x128xf32> to vector<2x8x8x128xf32>
    %326 = arith.mulf %324, %325 : vector<2x8x8x128xf32>
    %cst_103 = arith.constant dense<0.000000e+00> : vector<2x8x128xf32>
    %327 = vector.multi_reduction <add>, %326, %cst_103 [1] : vector<2x8x8x128xf32> to vector<2x8x128xf32>
    %328 = arith.addf %312, %327 : vector<2x8x128xf32>
    %c0_104 = arith.constant 0 : index
    %c0_105 = arith.constant 0 : index
    %329 = vector.load %arg7[%c0_104, %c0_105] : memref<8x1xf32, #tpu.memory_space<vmem>>, vector<8x1xf32>
    %330 = vector.shape_cast %329 : vector<8x1xf32> to vector<1x8x1xf32>
    %331 = vector.broadcast %330 : vector<1x8x1xf32> to vector<2x8x128xf32>
    %332 = arith.addf %328, %331 : vector<2x8x128xf32>
    %cst_106 = arith.constant 0.000000e+00 : f32
    %333 = vector.broadcast %cst_106 : f32 to vector<8x128xf32>
    %c0_107 = arith.constant 0 : index
    %c0_108 = arith.constant 0 : index
    %334 = vector.load %arg3[%c0_107, %c0_108] : memref<4x128xi32, #tpu.memory_space<vmem>>, vector<1x128xi32>
    %335 = vector.broadcast %334 : vector<1x128xi32> to vector<256x128xi32>
    %336 = arith.cmpi eq, %1, %335 : vector<256x128xi32>
    %337 = arith.extui %336 : vector<256x128xi1> to vector<256x128xi32>
    %338 = arith.sitofp %337 : vector<256x128xi32> to vector<256x128xf32>
    %cst_109 = arith.constant dense<0.000000e+00> : vector<8x128xf32>
    %339 = tpu.matmul %0, %338, %cst_109 {dimension_numbers = #tpu.dot_dimension_numbers<[1], [0], [0], [1], [0, 0, 1, 1], [], []>} : vector<8x256xf32>, vector<256x128xf32>, vector<8x128xf32> -> vector<8x128xf32>
    %340 = arith.addf %333, %339 : vector<8x128xf32>
    %c1_110 = arith.constant 1 : index
    %c0_111 = arith.constant 0 : index
    %341 = vector.load %arg3[%c1_110, %c0_111] : memref<4x128xi32, #tpu.memory_space<vmem>>, vector<1x128xi32>
    %342 = vector.broadcast %341 : vector<1x128xi32> to vector<256x128xi32>
    %343 = arith.cmpi eq, %1, %342 : vector<256x128xi32>
    %344 = arith.extui %343 : vector<256x128xi1> to vector<256x128xi32>
    %345 = arith.sitofp %344 : vector<256x128xi32> to vector<256x128xf32>
    %cst_112 = arith.constant dense<0.000000e+00> : vector<8x128xf32>
    %346 = tpu.matmul %0, %345, %cst_112 {dimension_numbers = #tpu.dot_dimension_numbers<[1], [0], [0], [1], [0, 0, 1, 1], [], []>} : vector<8x256xf32>, vector<256x128xf32>, vector<8x128xf32> -> vector<8x128xf32>
    %347 = arith.addf %340, %346 : vector<8x128xf32>
    %c2_113 = arith.constant 2 : index
    %c0_114 = arith.constant 0 : index
    %348 = vector.load %arg3[%c2_113, %c0_114] : memref<4x128xi32, #tpu.memory_space<vmem>>, vector<1x128xi32>
    %349 = vector.broadcast %348 : vector<1x128xi32> to vector<256x128xi32>
    %350 = arith.cmpi eq, %1, %349 : vector<256x128xi32>
    %351 = arith.extui %350 : vector<256x128xi1> to vector<256x128xi32>
    %352 = arith.sitofp %351 : vector<256x128xi32> to vector<256x128xf32>
    %cst_115 = arith.constant dense<0.000000e+00> : vector<8x128xf32>
    %353 = tpu.matmul %0, %352, %cst_115 {dimension_numbers = #tpu.dot_dimension_numbers<[1], [0], [0], [1], [0, 0, 1, 1], [], []>} : vector<8x256xf32>, vector<256x128xf32>, vector<8x128xf32> -> vector<8x128xf32>
    %354 = arith.addf %347, %353 : vector<8x128xf32>
    %c3_116 = arith.constant 3 : index
    %c0_117 = arith.constant 0 : index
    %355 = vector.load %arg3[%c3_116, %c0_117] : memref<4x128xi32, #tpu.memory_space<vmem>>, vector<1x128xi32>
    %356 = vector.broadcast %355 : vector<1x128xi32> to vector<256x128xi32>
    %357 = arith.cmpi eq, %1, %356 : vector<256x128xi32>
    %358 = arith.extui %357 : vector<256x128xi1> to vector<256x128xi32>
    %359 = arith.sitofp %358 : vector<256x128xi32> to vector<256x128xf32>
    %cst_118 = arith.constant dense<0.000000e+00> : vector<8x128xf32>
    %360 = tpu.matmul %0, %359, %cst_118 {dimension_numbers = #tpu.dot_dimension_numbers<[1], [0], [0], [1], [0, 0, 1, 1], [], []>} : vector<8x256xf32>, vector<256x128xf32>, vector<8x128xf32> -> vector<8x128xf32>
    %361 = arith.addf %354, %360 : vector<8x128xf32>
    %cst_119 = arith.constant 2.500000e-01 : f32
    %362 = vector.broadcast %cst_119 : f32 to vector<8x128xf32>
    %363 = arith.mulf %361, %362 : vector<8x128xf32>
    %364 = vector.shape_cast %363 : vector<8x128xf32> to vector<2x4x128xf32>
    %365 = vector.shape_cast %364 : vector<2x4x128xf32> to vector<2x4x1x128xf32>
    %c0_120 = arith.constant 0 : index
    %c0_121 = arith.constant 0 : index
    %c0_122 = arith.constant 0 : index
    %366 = vector.load %arg8[%c0_120, %c0_121, %c0_122] : memref<4x8x1xf32, #tpu.memory_space<vmem>>, vector<4x8x1xf32>
    %367 = vector.shape_cast %366 : vector<4x8x1xf32> to vector<1x4x8x1xf32>
    %368 = vector.broadcast %365 : vector<2x4x1x128xf32> to vector<2x4x8x128xf32>
    %369 = vector.broadcast %367 : vector<1x4x8x1xf32> to vector<2x4x8x128xf32>
    %370 = arith.mulf %368, %369 : vector<2x4x8x128xf32>
    %cst_123 = arith.constant dense<0.000000e+00> : vector<2x8x128xf32>
    %371 = vector.multi_reduction <add>, %370, %cst_123 [1] : vector<2x4x8x128xf32> to vector<2x8x128xf32>
    %c0_124 = arith.constant 0 : index
    %c0_125 = arith.constant 0 : index
    %372 = vector.load %arg9[%c0_124, %c0_125] : memref<8x1xf32, #tpu.memory_space<vmem>>, vector<8x1xf32>
    %373 = vector.shape_cast %372 : vector<8x1xf32> to vector<1x8x1xf32>
    %374 = vector.broadcast %373 : vector<1x8x1xf32> to vector<2x8x128xf32>
    %375 = arith.addf %371, %374 : vector<2x8x128xf32>
    %c0_126 = arith.constant 0 : index
    %c0_127 = arith.constant 0 : index
    %376 = vector.load %arg14[%c0_126, %c0_127] : memref<8x1xf32, #tpu.memory_space<vmem>>, vector<8x1xf32>
    %c0_128 = arith.constant 0 : index
    %c0_129 = arith.constant 0 : index
    %377 = vector.load %arg15[%c0_128, %c0_129] : memref<8x1xf32, #tpu.memory_space<vmem>>, vector<8x1xf32>
    %cst_130 = arith.constant dense<0.000000e+00> : vector<2x8xf32>
    %378 = vector.multi_reduction <add>, %375, %cst_130 [2] : vector<2x8x128xf32> to vector<2x8xf32>
    %379 = vector.shape_cast %378 : vector<2x8xf32> to vector<2x8x1xf32>
    %cst_131 = arith.constant dense<0.000000e+00> : vector<8x1xf32>
    %380 = vector.multi_reduction <add>, %379, %cst_131 [0] : vector<2x8x1xf32> to vector<8x1xf32>
    %381 = vector.shape_cast %380 : vector<8x1xf32> to vector<1x8x1xf32>
    %382 = arith.mulf %375, %375 : vector<2x8x128xf32>
    %cst_132 = arith.constant dense<0.000000e+00> : vector<2x8xf32>
    %383 = vector.multi_reduction <add>, %382, %cst_132 [2] : vector<2x8x128xf32> to vector<2x8xf32>
    %384 = vector.shape_cast %383 : vector<2x8xf32> to vector<2x8x1xf32>
    %cst_133 = arith.constant dense<0.000000e+00> : vector<8x1xf32>
    %385 = vector.multi_reduction <add>, %384, %cst_133 [0] : vector<2x8x1xf32> to vector<8x1xf32>
    %386 = vector.shape_cast %385 : vector<8x1xf32> to vector<1x8x1xf32>
    %cst_134 = arith.constant 2.560000e+02 : f32
    %387 = vector.broadcast %cst_134 : f32 to vector<1x8x1xf32>
    %388 = arith.divf %381, %387 : vector<1x8x1xf32>
    %cst_135 = arith.constant 2.560000e+02 : f32
    %389 = vector.broadcast %cst_135 : f32 to vector<1x8x1xf32>
    %390 = arith.divf %386, %389 : vector<1x8x1xf32>
    %391 = arith.mulf %388, %388 : vector<1x8x1xf32>
    %392 = arith.subf %390, %391 : vector<1x8x1xf32>
    %393 = vector.shape_cast %376 : vector<8x1xf32> to vector<1x8x1xf32>
    %cst_136 = arith.constant 9.99999974E-6 : f32
    %394 = vector.broadcast %cst_136 : f32 to vector<1x8x1xf32>
    %395 = arith.addf %392, %394 : vector<1x8x1xf32>
    %396 = math.rsqrt %395 : vector<1x8x1xf32>
    %397 = arith.mulf %393, %396 : vector<1x8x1xf32>
    %398 = vector.shape_cast %377 : vector<8x1xf32> to vector<1x8x1xf32>
    %399 = arith.mulf %388, %397 : vector<1x8x1xf32>
    %400 = arith.subf %398, %399 : vector<1x8x1xf32>
    %401 = vector.broadcast %397 : vector<1x8x1xf32> to vector<2x8x128xf32>
    %402 = arith.mulf %375, %401 : vector<2x8x128xf32>
    %403 = vector.broadcast %400 : vector<1x8x1xf32> to vector<2x8x128xf32>
    %404 = arith.addf %402, %403 : vector<2x8x128xf32>
    %c0_137 = arith.constant 0 : index
    %c0_138 = arith.constant 0 : index
    %405 = vector.load %arg12[%c0_137, %c0_138] : memref<8x1xf32, #tpu.memory_space<vmem>>, vector<8x1xf32>
    %c0_139 = arith.constant 0 : index
    %c0_140 = arith.constant 0 : index
    %406 = vector.load %arg13[%c0_139, %c0_140] : memref<8x1xf32, #tpu.memory_space<vmem>>, vector<8x1xf32>
    %cst_141 = arith.constant dense<0.000000e+00> : vector<2x8xf32>
    %407 = vector.multi_reduction <add>, %332, %cst_141 [2] : vector<2x8x128xf32> to vector<2x8xf32>
    %408 = vector.shape_cast %407 : vector<2x8xf32> to vector<2x8x1xf32>
    %cst_142 = arith.constant dense<0.000000e+00> : vector<8x1xf32>
    %409 = vector.multi_reduction <add>, %408, %cst_142 [0] : vector<2x8x1xf32> to vector<8x1xf32>
    %410 = vector.shape_cast %409 : vector<8x1xf32> to vector<1x8x1xf32>
    %411 = arith.mulf %332, %332 : vector<2x8x128xf32>
    %cst_143 = arith.constant dense<0.000000e+00> : vector<2x8xf32>
    %412 = vector.multi_reduction <add>, %411, %cst_143 [2] : vector<2x8x128xf32> to vector<2x8xf32>
    %413 = vector.shape_cast %412 : vector<2x8xf32> to vector<2x8x1xf32>
    %cst_144 = arith.constant dense<0.000000e+00> : vector<8x1xf32>
    %414 = vector.multi_reduction <add>, %413, %cst_144 [0] : vector<2x8x1xf32> to vector<8x1xf32>
    %415 = vector.shape_cast %414 : vector<8x1xf32> to vector<1x8x1xf32>
    %cst_145 = arith.constant 2.560000e+02 : f32
    %416 = vector.broadcast %cst_145 : f32 to vector<1x8x1xf32>
    %417 = arith.divf %410, %416 : vector<1x8x1xf32>
    %cst_146 = arith.constant 2.560000e+02 : f32
    %418 = vector.broadcast %cst_146 : f32 to vector<1x8x1xf32>
    %419 = arith.divf %415, %418 : vector<1x8x1xf32>
    %420 = arith.mulf %417, %417 : vector<1x8x1xf32>
    %421 = arith.subf %419, %420 : vector<1x8x1xf32>
    %422 = vector.shape_cast %405 : vector<8x1xf32> to vector<1x8x1xf32>
    %cst_147 = arith.constant 9.99999974E-6 : f32
    %423 = vector.broadcast %cst_147 : f32 to vector<1x8x1xf32>
    %424 = arith.addf %421, %423 : vector<1x8x1xf32>
    %425 = math.rsqrt %424 : vector<1x8x1xf32>
    %426 = arith.mulf %422, %425 : vector<1x8x1xf32>
    %427 = vector.shape_cast %406 : vector<8x1xf32> to vector<1x8x1xf32>
    %428 = arith.mulf %417, %426 : vector<1x8x1xf32>
    %429 = arith.subf %427, %428 : vector<1x8x1xf32>
    %430 = vector.broadcast %426 : vector<1x8x1xf32> to vector<2x8x128xf32>
    %431 = arith.mulf %332, %430 : vector<2x8x128xf32>
    %432 = vector.broadcast %429 : vector<1x8x1xf32> to vector<2x8x128xf32>
    %433 = arith.addf %431, %432 : vector<2x8x128xf32>
    %434 = arith.addf %433, %404 : vector<2x8x128xf32>
    %cst_148 = arith.constant 0.000000e+00 : f32
    %435 = vector.broadcast %cst_148 : f32 to vector<2x8x128xf32>
    %436 = arith.maximumf %434, %435 : vector<2x8x128xf32>
    %437 = vector.shape_cast %436 : vector<2x8x128xf32> to vector<16x128xf32>
    %c0_149 = arith.constant 0 : index
    %c0_150 = arith.constant 0 : index
    %438 = vector.load %arg16[%c0_149, %c0_150] : memref<16x128xf32, #tpu.memory_space<vmem>>, vector<16x128xf32>
    tpu.vector_store %arg16[%c0_149, %c0_150], %437 {strides = array<i32>} : memref<16x128xf32, #tpu.memory_space<vmem>>, vector<16x128xf32>,
    return
  }
}

</mosaic_0001>

<bundles_post_ra>
// kernel: neg.4
= control target key start
LH: loop header
LB: loop body
LE: loop exit
PB: predicated region body
PF: predicated region fallthrough
CT: control target
= control target key end

     0   :  { %s264_s0 = inlined_call_operand.vmem [shape: f32[128,128], index: 0, kind: input, shape index: {}]   ;;  %s265_s1 = inlined_call_operand.vmem [shape: f32[128,128], index: 1, kind: output, shape index: {}]  }
   0x1   :  { %v2_v0 = vld [vmem:[%s264_s0] sm:$0xff]  ;;  %v128_v1 = vld [vmem:[%s264_s0 + $0x8] sm:$0xff]  ;;  %v130_v2 = vld [vmem:[%s264_s0 + $0x10] sm:$0xff] }
   0x2   :  { %v5_v3 = vxor.u32 2147483648, %v2_v0  ;;  %v12_v4 = vxor.u32 2147483648, %v128_v1  ;;  %v20_v5 = vxor.u32 2147483648, %v130_v2  ;;  %v132_v6 = vld [vmem:[%s264_s0 + $0x18] sm:$0xff]  ;;  %v134_v7 = vld [vmem:[%s264_s0 + $0x20] sm:$0xff]  ;;  %v136_v8 = vld [vmem:[%s264_s0 + $0x28] sm:$0xff] }
   0x3   :  { %v28_v9 = vxor.u32 2147483648, %v132_v6  ;;  %v36_v10 = vxor.u32 2147483648, %v134_v7  ;;  %v44_v11 = vxor.u32 2147483648, %v136_v8  ;;  %v138_v12 = vld [vmem:[%s264_s0 + $0x30] sm:$0xff]  ;;  %v140_v13 = vld [vmem:[%s264_s0 + $0x38] sm:$0xff]  ;;  %v142_v14 = vld [vmem:[%s264_s0 + $0x40] sm:$0xff] }
   0x4   :  { %7 = vst [vmem:[%s265_s1] sm:$0xff] %v5_v3  ;;  %129 = vst [vmem:[%s265_s1 + $0x8] sm:$0xff] %v12_v4  ;;  %v52_v15 = vxor.u32 2147483648, %v138_v12  ;;  %v60_v16 = vxor.u32 2147483648, %v140_v13  ;;  %v68_v17 = vxor.u32 2147483648, %v142_v14  ;;  %v144_v18 = vld [vmem:[%s264_s0 + $0x48] sm:$0xff]  ;;  %v146_v19 = vld [vmem:[%s264_s0 + $0x50] sm:$0xff] }
   0x5   :  { %131 = vst [vmem:[%s265_s1 + $0x10] sm:$0xff] %v20_v5  ;;  %v148_v20 = vld [vmem:[%s264_s0 + $0x58] sm:$0xff]  ;;  %133 = vst [vmem:[%s265_s1 + $0x18] sm:$0xff] %v28_v9  ;;  %v76_v21 = vxor.u32 2147483648, %v144_v18  ;;  %v84_v22 = vxor.u32 2147483648, %v146_v19  ;;  %v150_v24 = vld [vmem:[%s264_s0 + $0x60] sm:$0xff] }
   0x6   :  { %135 = vst [vmem:[%s265_s1 + $0x20] sm:$0xff] %v36_v10  ;;  %137 = vst [vmem:[%s265_s1 + $0x28] sm:$0xff] %v44_v11  ;;  %v92_v23 = vxor.u32 2147483648, %v148_v20  ;;  %v152_v25 = vld [vmem:[%s264_s0 + $0x68] sm:$0xff]  ;;  %v154_v26 = vld [vmem:[%s264_s0 + $0x70] sm:$0xff]  ;;  %v100_v27 = vxor.u32 2147483648, %v150_v24 }
   0x7   :  { %139 = vst [vmem:[%s265_s1 + $0x30] sm:$0xff] %v52_v15  ;;  %141 = vst [vmem:[%s265_s1 + $0x38] sm:$0xff] %v60_v16  ;;  %v108_v28 = vxor.u32 2147483648, %v152_v25  ;;  %v116_v29 = vxor.u32 2147483648, %v154_v26  ;;  %v156_v30 = vld [vmem:[%s264_s0 + $0x78] sm:$0xff] }
   0x8   :  { %143 = vst [vmem:[%s265_s1 + $0x40] sm:$0xff] %v68_v17  ;;  %145 = vst [vmem:[%s265_s1 + $0x48] sm:$0xff] %v76_v21  ;;  %v124_v31 = vxor.u32 2147483648, %v156_v30 }
   0x9   :  { %147 = vst [vmem:[%s265_s1 + $0x50] sm:$0xff] %v84_v22  ;;  %149 = vst [vmem:[%s265_s1 + $0x58] sm:$0xff] %v92_v23 }
   0xa   :  { %151 = vst [vmem:[%s265_s1 + $0x60] sm:$0xff] %v100_v27  ;;  %153 = vst [vmem:[%s265_s1 + $0x68] sm:$0xff] %v108_v28 }
   0xb   :  { %155 = vst [vmem:[%s265_s1 + $0x70] sm:$0xff] %v116_v29  ;;  %157 = vst [vmem:[%s265_s1 + $0x78] sm:$0xff] %v124_v31 }

// kernel: neg.3
= control target key start
LH: loop header
LB: loop body
LE: loop exit
PB: predicated region body
PF: predicated region fallthrough
CT: control target
= control target key end

     0   :  { %s520_s0 = inlined_call_operand.vmem [shape: f32[128,256], index: 0, kind: input, shape index: {}]   ;;  %s521_s1 = inlined_call_operand.vmem [shape: f32[128,256], index: 1, kind: output, shape index: {}]  }
   0x1   :  { %v2_v0 = vld [vmem:[%s520_s0] sm:$0xff]  ;;  %v256_v1 = vld [vmem:[%s520_s0 + $0x10] sm:$0xff]  ;;  %v286_v31 = vld [vmem:[%s520_s0 + $0x8] sm:$0xff] }
   0x2   :  { %v258_v2 = vld [vmem:[%s520_s0 + $0x20] sm:$0xff]  ;;  %v5_v3 = vxor.u32 2147483648, %v2_v0  ;;  %v12_v4 = vxor.u32 2147483648, %v256_v1  ;;  %v260_v6 = vld [vmem:[%s520_s0 + $0x30] sm:$0xff]  ;;  %v288_v32 = vld [vmem:[%s520_s0 + $0x18] sm:$0xff]  ;;  %v132_v34 = vxor.u32 2147483648, %v286_v31 }
   0x3   :  { %v20_v5 = vxor.u32 2147483648, %v258_v2  ;;  %v262_v7 = vld [vmem:[%s520_s0 + $0x40] sm:$0xff]  ;;  %v264_v8 = vld [vmem:[%s520_s0 + $0x50] sm:$0xff]  ;;  %v28_v9 = vxor.u32 2147483648, %v260_v6  ;;  %v140_v35 = vxor.u32 2147483648, %v288_v32  ;;  %v290_v36 = vld [vmem:[%s520_s0 + $0x28] sm:$0xff] }
   0x4   :  { %v36_v10 = vxor.u32 2147483648, %v262_v7  ;;  %v44_v11 = vxor.u32 2147483648, %v264_v8  ;;  %v266_v12 = vld [vmem:[%s520_s0 + $0x60] sm:$0xff]  ;;  %v268_v13 = vld [vmem:[%s520_s0 + $0x70] sm:$0xff]  ;;  %7 = vst [vmem:[%s521_s1] sm:$0xff] %v5_v3  ;;  %257 = vst [vmem:[%s521_s1 + $0x10] sm:$0xff] %v12_v4  ;;  %v148_v39 = vxor.u32 2147483648, %v290_v36 }
   0x5   :  { %v270_v14 = vld [vmem:[%s520_s0 + $0x80] sm:$0xff]  ;;  %259 = vst [vmem:[%s521_s1 + $0x20] sm:$0xff] %v20_v5  ;;  %v52_v15 = vxor.u32 2147483648, %v266_v12  ;;  %v60_v16 = vxor.u32 2147483648, %v268_v13  ;;  %v272_v18 = vld [vmem:[%s520_s0 + $0x90] sm:$0xff]  ;;  %261 = vst [vmem:[%s521_s1 + $0x30] sm:$0xff] %v28_v9 }
   0x6   :  { %v68_v17 = vxor.u32 2147483648, %v270_v14  ;;  %v274_v19 = vld [vmem:[%s520_s0 + $0xa0] sm:$0xff]  ;;  %v276_v20 = vld [vmem:[%s520_s0 + $0xb0] sm:$0xff]  ;;  %263 = vst [vmem:[%s521_s1 + $0x40] sm:$0xff] %v36_v10  ;;  %265 = vst [vmem:[%s521_s1 + $0x50] sm:$0xff] %v44_v11  ;;  %v76_v21 = vxor.u32 2147483648, %v272_v18 }
   0x7   :  { %v84_v22 = vxor.u32 2147483648, %v274_v19  ;;  %v92_v23 = vxor.u32 2147483648, %v276_v20  ;;  %v278_v24 = vld [vmem:[%s520_s0 + $0xc0] sm:$0xff]  ;;  %v280_v25 = vld [vmem:[%s520_s0 + $0xd0] sm:$0xff]  ;;  %267 = vst [vmem:[%s521_s1 + $0x60] sm:$0xff] %v52_v15  ;;  %269 = vst [vmem:[%s521_s1 + $0x70] sm:$0xff] %v60_v16 }
   0x8   :  { %v282_v26 = vld [vmem:[%s520_s0 + $0xe0] sm:$0xff]  ;;  %271 = vst [vmem:[%s521_s1 + $0x80] sm:$0xff] %v68_v17  ;;  %v100_v27 = vxor.u32 2147483648, %v278_v24  ;;  %v108_v28 = vxor.u32 2147483648, %v280_v25  ;;  %v284_v30 = vld [vmem:[%s520_s0 + $0xf0] sm:$0xff]  ;;  %273 = vst [vmem:[%s521_s1 + $0x90] sm:$0xff] %v76_v21 }
   0x9   :  { %v116_v29 = vxor.u32 2147483648, %v282_v26  ;;  %275 = vst [vmem:[%s521_s1 + $0xa0] sm:$0xff] %v84_v22  ;;  %277 = vst [vmem:[%s521_s1 + $0xb0] sm:$0xff] %v92_v23  ;;  %v124_v33 = vxor.u32 2147483648, %v284_v30  ;;  %v292_v37 = vld [vmem:[%s520_s0 + $0x38] sm:$0xff]  ;;  %v294_v38 = vld [vmem:[%s520_s0 + $0x48] sm:$0xff] }
   0xa   :  { %279 = vst [vmem:[%s521_s1 + $0xc0] sm:$0xff] %v100_v27  ;;  %281 = vst [vmem:[%s521_s1 + $0xd0] sm:$0xff] %v108_v28  ;;  %v156_v40 = vxor.u32 2147483648, %v292_v37  ;;  %v164_v41 = vxor.u32 2147483648, %v294_v38  ;;  %v296_v42 = vld [vmem:[%s520_s0 + $0x58] sm:$0xff]  ;;  %v298_v43 = vld [vmem:[%s520_s0 + $0x68] sm:$0xff] }
   0xb   :  { %283 = vst [vmem:[%s521_s1 + $0xe0] sm:$0xff] %v116_v29  ;;  %v300_v44 = vld [vmem:[%s520_s0 + $0x78] sm:$0xff]  ;;  %285 = vst [vmem:[%s521_s1 + $0xf0] sm:$0xff] %v124_v33  ;;  %v172_v45 = vxor.u32 2147483648, %v296_v42  ;;  %v180_v46 = vxor.u32 2147483648, %v298_v43  ;;  %v302_v48 = vld [vmem:[%s520_s0 + $0x88] sm:$0xff] }
   0xc   :  { %287 = vst [vmem:[%s521_s1 + $0x8] sm:$0xff] %v132_v34  ;;  %289 = vst [vmem:[%s521_s1 + $0x18] sm:$0xff] %v140_v35  ;;  %v188_v47 = vxor.u32 2147483648, %v300_v44  ;;  %v304_v49 = vld [vmem:[%s520_s0 + $0x98] sm:$0xff]  ;;  %v306_v50 = vld [vmem:[%s520_s0 + $0xa8] sm:$0xff]  ;;  %v196_v51 = vxor.u32 2147483648, %v302_v48 }
   0xd   :  { %291 = vst [vmem:[%s521_s1 + $0x28] sm:$0xff] %v148_v39  ;;  %293 = vst [vmem:[%s521_s1 + $0x38] sm:$0xff] %v156_v40  ;;  %v204_v52 = vxor.u32 2147483648, %v304_v49  ;;  %v212_v53 = vxor.u32 2147483648, %v306_v50  ;;  %v308_v54 = vld [vmem:[%s520_s0 + $0xb8] sm:$0xff]  ;;  %v310_v55 = vld [vmem:[%s520_s0 + $0xc8] sm:$0xff] }
   0xe   :  { %295 = vst [vmem:[%s521_s1 + $0x48] sm:$0xff] %v164_v41  ;;  %v312_v56 = vld [vmem:[%s520_s0 + $0xd8] sm:$0xff]  ;;  %297 = vst [vmem:[%s521_s1 + $0x58] sm:$0xff] %v172_v45  ;;  %v220_v57 = vxor.u32 2147483648, %v308_v54  ;;  %v228_v58 = vxor.u32 2147483648, %v310_v55  ;;  %v314_v60 = vld [vmem:[%s520_s0 + $0xe8] sm:$0xff] }
   0xf   :  { %299 = vst [vmem:[%s521_s1 + $0x68] sm:$0xff] %v180_v46  ;;  %301 = vst [vmem:[%s521_s1 + $0x78] sm:$0xff] %v188_v47  ;;  %v236_v59 = vxor.u32 2147483648, %v312_v56  ;;  %v316_v61 = vld [vmem:[%s520_s0 + $0xf8] sm:$0xff]  ;;  %v244_v62 = vxor.u32 2147483648, %v314_v60 }
  0x10   :  { %303 = vst [vmem:[%s521_s1 + $0x88] sm:$0xff] %v196_v51  ;;  %305 = vst [vmem:[%s521_s1 + $0x98] sm:$0xff] %v204_v52  ;;  %v252_v63 = vxor.u32 2147483648, %v316_v61 }
  0x11   :  { %307 = vst [vmem:[%s521_s1 + $0xa8] sm:$0xff] %v212_v53  ;;  %309 = vst [vmem:[%s521_s1 + $0xb8] sm:$0xff] %v220_v57 }
  0x12   :  { %311 = vst [vmem:[%s521_s1 + $0xc8] sm:$0xff] %v228_v58  ;;  %313 = vst [vmem:[%s521_s1 + $0xd8] sm:$0xff] %v236_v59 }
  0x13   :  { %315 = vst [vmem:[%s521_s1 + $0xe8] sm:$0xff] %v244_v62  ;;  %317 = vst [vmem:[%s521_s1 + $0xf8] sm:$0xff] %v252_v63 }

// kernel: resblock_forward.1
= control target key start
LH: loop header
LB: loop body
LE: loop exit
PB: predicated region body
PF: predicated region fallthrough
CT: control target
= control target key end

     0   :  { %s12202_s0 = inlined_call_operand.vmem [shape: f32[8,256], index: 0, kind: input, shape index: {}]   ;;  %s12203_s1 = inlined_call_operand.vmem [shape: s32[9,128], index: 1, kind: input, shape index: {}]   ;;  %s12204_s2 = inlined_call_operand.vmem [shape: s32[9,128], index: 2, kind: input, shape index: {}]   ;;  %s12205_s3 = inlined_call_operand.vmem [shape: s32[4,128], index: 3, kind: input, shape index: {}]   ;;  %s12206_s4 = inlined_call_operand.vmem [shape: f32[288,128], index: 4, kind: input, shape index: {}]   ;;  %s12207_s5 = inlined_call_operand.vmem [shape: f32[8,1], index: 5, kind: input, shape index: {}]   ;;  %s12208_s6 = inlined_call_operand.vmem [shape: f32[576,128], index: 6, kind: input, shape index: {}]   ;;  %s12209_s7 = inlined_call_operand.vmem [shape: f32[8,1], index: 7, kind: input, shape index: {}]   ;;  %s12210_s8 = inlined_call_operand.vmem [shape: f32[4,8,1], index: 8, kind: input, shape index: {}]   ;;  %s12211_s9 = inlined_call_operand.vmem [shape: f32[8,1], index: 9, kind: input, shape index: {}]   ;;  %s12212_s10 = inlined_call_operand.vmem [shape: f32[8,1], index: 10, kind: input, shape index: {}]   ;;  %s12213_s11 = inlined_call_operand.vmem [shape: f32[8,1], index: 11, kind: input, shape index: {}]   ;;  %s12214_s12 = inlined_call_operand.vmem [shape: f32[8,1], index: 12, kind: input, shape index: {}]   ;;  %s12215_s13 = inlined_call_operand.vmem [shape: f32[8,1], index: 13, kind: input, shape index: {}]   ;;  %s12216_s14 = inlined_call_operand.vmem [shape: f32[8,1], index: 14, kind: input, shape index: {}]   ;;  %s12217_s15 = inlined_call_operand.vmem [shape: f32[8,1], index: 15, kind: input, shape index: {}]   ;;  %s12218_s16 = inlined_call_operand.hbm [shape: f32[16,128], index: 16, kind: output, shape index: {}]  }
   0x1   :  { %12248 = sst [smem:[#allocation18_spill]] %s12202_s0 }
   0x2   :  { %v56_v0 = vlaneseq  ;;  %s12249_s23 = sld [smem:[#allocation18_spill]]  ;;  %v8941_v3 = vld [vmem:[%s12203_s1] ss:$0 sm:$0xff]  ;;  %v8946_v4 = vld [vmem:[%s12203_s1 + $0x1] ss:$0 sm:$0xff] }
   0x4   :  { %v8936_v2 = vshrl.u32 %v56_v0, 7 }
   0x8   :  { %v8932_v1 = vld [vmem:[%s12249_s23 + $0x8] sm:$0xff] }
   0x9   :  { %254 = vmatprep.mubr.f32.mxu0 %v8932_v1  ;;  %535 = vmatprep.mubr.f32.mxu1 %v8932_v1 }
   0xa   :  { %21 = vsyncpa [#allocation3], 0  ;;  %v8949_v5 = vadd.s32 248, %v8936_v2  ;;  %v8952_v6 = vadd.s32 120, %v8936_v2  ;;  %v8955_v7 = vadd.s32 240, %v8936_v2  ;;  %v8958_v8 = vadd.s32 112, %v8936_v2 }
   0xb   :  { %v8961_v9 = vadd.s32 232, %v8936_v2  ;;  %v8964_v10 = vadd.s32 104, %v8936_v2  ;;  %v8967_v11 = vadd.s32 224, %v8936_v2  ;;  %v12220_v12 = vmov 1.0   ;;  %v9224_v37 = vld [vmem:[%s12203_s1 + $0x2] ss:$0 sm:$0xff] }
   0xc   :  { %vm125_vm0 = vcmp.eq.s32.totalorder %v8949_v5, %v8941_v3  ;;  %vm406_vm1 = vcmp.eq.s32.totalorder %v8949_v5, %v8946_v4  ;;  %vm109_vm2 = vcmp.eq.s32.totalorder %v8952_v6, %v8941_v3  ;;  %vm390_vm3 = vcmp.eq.s32.totalorder %v8952_v6, %v8946_v4  ;;  %v9229_v38 = vld [vmem:[%s12203_s1 + $0x3] ss:$0 sm:$0xff]  ;;  %v9425_v40 = vld [vmem:[%s12203_s1 + $0x4] ss:$0 sm:$0xff]  ;;  %v9446_v41 = vld [vmem:[%s12203_s1 + $0x5] ss:$0 sm:$0xff] }
   0xd   :  { %12250 = vst [vmem:[#allocation5_spill] sm:$0xff] %v8967_v11  ;;  %7867 = vmatprep.subr.msk.mxu0 %vm125_vm0, %v12220_v12  ;;  %7902 = vmatprep.subr.msk.mxu1 %vm406_vm1, %v12220_v12  ;;  %vm124_vm4 = vcmp.eq.s32.totalorder %v8955_v7, %v8941_v3  ;;  %vm405_vm5 = vcmp.eq.s32.totalorder %v8955_v7, %v8946_v4  ;;  %v8986_v13 = vadd.s32 96, %v8936_v2  ;;  %v8997_v14 = vadd.s32 216, %v8936_v2  ;;  %v9242_v39 = vld [vmem:[%s12249_s23] sm:$0xff]  ;;  %v9839_v44 = vld [vmem:[%s12203_s1 + $0x8] ss:$0 sm:$0xff] }
   0xe   :  { %vm108_vm6 = vcmp.eq.s32.totalorder %v8958_v8, %v8941_v3  ;;  %7868 = vmatpush3.msk.msra.mxu0 %vm109_vm2, %v12220_v12  ;;  %7903 = vmatpush3.msk.msra.mxu1 %vm390_vm3, %v12220_v12  ;;  %vm389_vm7 = vcmp.eq.s32.totalorder %v8958_v8, %v8946_v4  ;;  %vm123_vm8 = vcmp.eq.s32.totalorder %v8961_v9, %v8941_v3  ;;  %v9006_v15 = vadd.s32 88, %v8936_v2  ;;  %v9633_v42 = vld [vmem:[%s12203_s1 + $0x6] ss:$0 sm:$0xff]  ;;  %v9652_v43 = vld [vmem:[%s12203_s1 + $0x7] ss:$0 sm:$0xff]  ;;  %v8813_v45 = vld [vmem:[%s12249_s23 + $0x8] sm:$0xff] }
   0xf   :  { %vm404_vm9 = vcmp.eq.s32.totalorder %v8961_v9, %v8946_v4  ;;  %12251 = vst [vmem:[#allocation6_spill] sm:$0xff] %v8997_v14  ;;  %7869 = vmatprep.subr.msk.mxu0 %vm124_vm4, %v12220_v12  ;;  %7904 = vmatprep.subr.msk.mxu1 %vm405_vm5, %v12220_v12  ;;  %vm107_vm10 = vcmp.eq.s32.totalorder %v8964_v10, %v8941_v3  ;;  %v9015_v16 = vadd.s32 208, %v8936_v2  ;;  %v9024_v17 = vadd.s32 80, %v8936_v2  ;;  %v2618_v46 = vld [vmem:[%s12207_s5] sm:$0xff] }
  0x10   :  { %vm388_vm11 = vcmp.eq.s32.totalorder %v8964_v10, %v8946_v4  ;;  %7870 = vmatpush3.msk.msra.mxu0 %vm108_vm6, %v12220_v12  ;;  %7905 = vmatpush3.msk.msra.mxu1 %vm389_vm7, %v12220_v12  ;;  %vm122_vm12 = vcmp.eq.s32.totalorder %v8967_v11, %v8941_v3  ;;  %vm403_vm13 = vcmp.eq.s32.totalorder %v8967_v11, %v8946_v4  ;;  %v9033_v18 = vadd.s32 200, %v8936_v2 }
  0x11   :  { %12252 = vst [vmem:[#allocation7_spill] sm:$0xff] %v9015_v16  ;;  %7871 = vmatprep.subr.msk.mxu0 %vm123_vm8, %v12220_v12  ;;  %7906 = vmatprep.subr.msk.mxu1 %vm404_vm9, %v12220_v12  ;;  %vm106_vm14 = vcmp.eq.s32.totalorder %v8986_v13, %v8941_v3  ;;  %vm387_vm15 = vcmp.eq.s32.totalorder %v8986_v13, %v8946_v4  ;;  %v9042_v19 = vadd.s32 72, %v8936_v2  ;;  %v9051_v20 = vadd.s32 192, %v8936_v2 }
  0x12   :  { %7872 = vmatpush3.msk.msra.mxu0 %vm107_vm10, %v12220_v12  ;;  %7907 = vmatpush3.msk.msra.mxu1 %vm388_vm11, %v12220_v12  ;;  %vm121_vm0 = vcmp.eq.s32.totalorder %v8997_v14, %v8941_v3  ;;  %vm402_vm1 = vcmp.eq.s32.totalorder %v8997_v14, %v8946_v4  ;;  %12253 = vst [vmem:[#allocation8_spill] sm:$0xff] %v9033_v18  ;;  %v9060_v21 = vadd.s32 64, %v8936_v2  ;;  %v9069_v22 = vadd.s32 184, %v8936_v2 }
  0x13   :  { %7873 = vmatprep.subr.msk.mxu0 %vm122_vm12, %v12220_v12  ;;  %7908 = vmatprep.subr.msk.mxu1 %vm403_vm13, %v12220_v12  ;;  %vm105_vm2 = vcmp.eq.s32.totalorder %v9006_v15, %v8941_v3  ;;  %vm386_vm3 = vcmp.eq.s32.totalorder %v9006_v15, %v8946_v4  ;;  %vm120_vm4 = vcmp.eq.s32.totalorder %v9015_v16, %v8941_v3  ;;  %v9078_v23 = vadd.s32 56, %v8936_v2 }
  0x14   :  { %7874 = vmatpush3.msk.msra.mxu0 %vm106_vm14, %v12220_v12  ;;  %7909 = vmatpush3.msk.msra.mxu1 %vm387_vm15, %v12220_v12  ;;  %vm401_vm5 = vcmp.eq.s32.totalorder %v9015_v16, %v8946_v4  ;;  %12254 = vst [vmem:[#allocation9_spill] sm:$0xff] %v9051_v20  ;;  %vm104_vm6 = vcmp.eq.s32.totalorder %v9024_v17, %v8941_v3  ;;  %12255 = vst [vmem:[#allocation10_spill] sm:$0xff] %v9069_v22  ;;  %v9087_v24 = vadd.s32 176, %v8936_v2  ;;  %v8839_v47 = vmov 0  }
  0x15   :  { %7875 = vmatprep.subr.msk.mxu0 %vm121_vm0, %v12220_v12  ;;  %7910 = vmatprep.subr.msk.mxu1 %vm402_vm1, %v12220_v12  ;;  %vm385_vm7 = vcmp.eq.s32.totalorder %v9024_v17, %v8946_v4  ;;  %vm119_vm8 = vcmp.eq.s32.totalorder %v9033_v18, %v8941_v3  ;;  %vm400_vm9 = vcmp.eq.s32.totalorder %v9033_v18, %v8946_v4  ;;  %v9096_v25 = vadd.s32 48, %v8936_v2 }
  0x16   :  { %7876 = vmatpush3.msk.msra.mxu0 %vm105_vm2, %v12220_v12  ;;  %7911 = vmatpush3.msk.msra.mxu1 %vm386_vm3, %v12220_v12  ;;  %vm103_vm10 = vcmp.eq.s32.totalorder %v9042_v19, %v8941_v3  ;;  %vm384_vm11 = vcmp.eq.s32.totalorder %v9042_v19, %v8946_v4  ;;  %vm118_vm12 = vcmp.eq.s32.totalorder %v9051_v20, %v8941_v3  ;;  %v9105_v26 = vadd.s32 168, %v8936_v2 }
  0x17   :  { %7877 = vmatprep.subr.msk.mxu0 %vm120_vm4, %v12220_v12  ;;  %7912 = vmatprep.subr.msk.mxu1 %vm401_vm5, %v12220_v12  ;;  %vm399_vm13 = vcmp.eq.s32.totalorder %v9051_v20, %v8946_v4  ;;  %12256 = vst [vmem:[#allocation11_spill] sm:$0xff] %v9087_v24  ;;  %vm102_vm14 = vcmp.eq.s32.totalorder %v9060_v21, %v8941_v3  ;;  %v9114_v27 = vadd.s32 40, %v8936_v2  ;;  %v9123_v28 = vadd.s32 160, %v8936_v2 }
  0x18   :  { %7878 = vmatpush3.msk.msra.mxu0 %vm104_vm6, %v12220_v12  ;;  %7913 = vmatpush3.msk.msra.mxu1 %vm385_vm7, %v12220_v12  ;;  %vm383_vm15 = vcmp.eq.s32.totalorder %v9060_v21, %v8946_v4  ;;  %vm117_vm0 = vcmp.eq.s32.totalorder %v9069_v22, %v8941_v3  ;;  %vm398_vm1 = vcmp.eq.s32.totalorder %v9069_v22, %v8946_v4  ;;  %v9132_v29 = vadd.s32 32, %v8936_v2 }
  0x19   :  { %7879 = vmatprep.subr.msk.mxu0 %vm119_vm8, %v12220_v12  ;;  %7914 = vmatprep.subr.msk.mxu1 %vm400_vm9, %v12220_v12  ;;  %12257 = vst [vmem:[#allocation12_spill] sm:$0xff] %v9105_v26  ;;  %vm101_vm2 = vcmp.eq.s32.totalorder %v9078_v23, %v8941_v3  ;;  %vm382_vm3 = vcmp.eq.s32.totalorder %v9078_v23, %v8946_v4  ;;  %12258 = vst [vmem:[#allocation13_spill] sm:$0xff] %v9123_v28  ;;  %v9141_v30 = vadd.s32 152, %v8936_v2  ;;  %v8840_v49 = vmov 1966171168  }
  0x1a   :  { %7880 = vmatpush3.msk.msra.mxu0 %vm103_vm10, %v12220_v12  ;;  %7915 = vmatpush3.msk.msra.mxu1 %vm384_vm11, %v12220_v12  ;;  %vm116_vm4 = vcmp.eq.s32.totalorder %v9087_v24, %v8941_v3  ;;  %vm397_vm5 = vcmp.eq.s32.totalorder %v9087_v24, %v8946_v4  ;;  %vm100_vm6 = vcmp.eq.s32.totalorder %v9096_v25, %v8941_v3  ;;  %v9150_v31 = vadd.s32 24, %v8936_v2 }
  0x1b   :  { %7881 = vmatprep.subr.msk.mxu0 %vm118_vm12, %v12220_v12  ;;  %7916 = vmatprep.subr.msk.mxu1 %vm399_vm13, %v12220_v12  ;;  %vm381_vm7 = vcmp.eq.s32.totalorder %v9096_v25, %v8946_v4  ;;  %vm115_vm8 = vcmp.eq.s32.totalorder %v9105_v26, %v8941_v3  ;;  %vm396_vm9 = vcmp.eq.s32.totalorder %v9105_v26, %v8946_v4  ;;  %v9159_v32 = vadd.s32 144, %v8936_v2 }
  0x1c   :  { %7882 = vmatpush3.msk.msra.mxu0 %vm102_vm14, %v12220_v12  ;;  %7917 = vmatpush3.msk.msra.mxu1 %vm383_vm15, %v12220_v12  ;;  %12259 = vst [vmem:[#allocation14_spill] sm:$0xff] %v9141_v30  ;;  %vm99_vm10 = vcmp.eq.s32.totalorder %v9114_v27, %v8941_v3  ;;  %vm380_vm11 = vcmp.eq.s32.totalorder %v9114_v27, %v8946_v4  ;;  %v9168_v33 = vadd.s32 16, %v8936_v2  ;;  %v9177_v34 = vadd.s32 136, %v8936_v2 }
  0x1d   :  { %7883 = vmatprep.subr.msk.mxu0 %vm117_vm0, %v12220_v12  ;;  %7918 = vmatprep.subr.msk.mxu1 %vm398_vm1, %v12220_v12  ;;  %vm114_vm12 = vcmp.eq.s32.totalorder %v9123_v28, %v8941_v3  ;;  %vm395_vm13 = vcmp.eq.s32.totalorder %v9123_v28, %v8946_v4  ;;  %12260 = vst [vmem:[#allocation15_spill] sm:$0xff] %v9159_v32  ;;  %v9186_v35 = vadd.s32 8, %v8936_v2  ;;  %v9195_v36 = vadd.s32 128, %v8936_v2 }
  0x1e   :  { %7884 = vmatpush3.msk.msra.mxu0 %vm101_vm2, %v12220_v12  ;;  %7919 = vmatpush3.msk.msra.mxu1 %vm382_vm3, %v12220_v12  ;;  %vm98_vm14 = vcmp.eq.s32.totalorder %v9132_v29, %v8941_v3  ;;  %vm379_vm15 = vcmp.eq.s32.totalorder %v9132_v29, %v8946_v4  ;;  %vm113_vm0 = vcmp.eq.s32.totalorder %v9141_v30, %v8941_v3  ;;  %v267_v50 = vunpack.c.l.s4 %v8840_v49 }
  0x1f   :  { %7885 = vmatprep.subr.msk.mxu0 %vm116_vm4, %v12220_v12  ;;  %7920 = vmatprep.subr.msk.mxu1 %vm397_vm5, %v12220_v12  ;;  %vm394_vm1 = vcmp.eq.s32.totalorder %v9141_v30, %v8946_v4  ;;  %12261 = vst [vmem:[#allocation16_spill] sm:$0xff] %v9177_v34  ;;  %vm97_vm2 = vcmp.eq.s32.totalorder %v9150_v31, %v8941_v3  ;;  %12262 = vst [vmem:[#allocation17_spill] sm:$0xff] %v9195_v36 }
  0x20   :  { %7886 = vmatpush3.msk.msra.mxu0 %vm100_vm6, %v12220_v12  ;;  %7921 = vmatpush3.msk.msra.mxu1 %vm381_vm7, %v12220_v12  ;;  %vm378_vm3 = vcmp.eq.s32.totalorder %v9150_v31, %v8946_v4  ;;  %vm112_vm4 = vcmp.eq.s32.totalorder %v9159_v32, %v8941_v3  ;;  %vm393_vm5 = vcmp.eq.s32.totalorder %v9159_v32, %v8946_v4  ;;  %v268_v52 = vunpack.c.0.s8 %v267_v50 }
  0x21   :  { %7887 = vmatprep.subr.msk.mxu0 %vm115_vm8, %v12220_v12  ;;  %7922 = vmatprep.subr.msk.mxu1 %vm396_vm9, %v12220_v12  ;;  %vm96_vm6 = vcmp.eq.s32.totalorder %v9168_v33, %v8941_v3  ;;  %vm377_vm7 = vcmp.eq.s32.totalorder %v9168_v33, %v8946_v4  ;;  %vm111_vm8 = vcmp.eq.s32.totalorder %v9177_v34, %v8941_v3 }
  0x22   :  { %7888 = vmatpush3.msk.msra.mxu0 %vm99_vm10, %v12220_v12  ;;  %7923 = vmatpush3.msk.msra.mxu1 %vm380_vm11, %v12220_v12  ;;  %vm392_vm9 = vcmp.eq.s32.totalorder %v9177_v34, %v8946_v4  ;;  %vm95_vm10 = vcmp.eq.s32.totalorder %v9186_v35, %v8941_v3  ;;  %vm376_vm11 = vcmp.eq.s32.totalorder %v9186_v35, %v8946_v4 }
  0x23   :  { %7889 = vmatprep.subr.msk.mxu0 %vm114_vm12, %v12220_v12  ;;  %7924 = vmatprep.subr.msk.mxu1 %vm395_vm13, %v12220_v12  ;;  %vm110_vm12 = vcmp.eq.s32.totalorder %v9195_v36, %v8941_v3  ;;  %vm391_vm13 = vcmp.eq.s32.totalorder %v9195_v36, %v8946_v4  ;;  %v9965_v55 = vsub.s32 %v268_v52, %v8936_v2 }
  0x24   :  { %7890 = vmatpush3.msk.msra.mxu0 %vm98_vm14, %v12220_v12  ;;  %7925 = vmatpush3.msk.msra.mxu1 %vm379_vm15, %v12220_v12  ;;  %vm94_vm14 = vcmp.eq.s32.totalorder %v8936_v2, %v8941_v3  ;;  %vm375_vm15 = vcmp.eq.s32.totalorder %v8936_v2, %v8946_v4 }
  0x25   :  { %7891 = vmatprep.subr.msk.mxu0 %vm113_vm0, %v12220_v12  ;;  %7926 = vmatprep.subr.msk.mxu1 %vm394_vm1, %v12220_v12  ;;  %vm687_vm0 = vcmp.eq.s32.totalorder %v8949_v5, %v9224_v37  ;;  %vm968_vm1 = vcmp.eq.s32.totalorder %v8949_v5, %v9229_v38 }
  0x26   :  { %7892 = vmatpush3.msk.msra.mxu0 %vm97_vm2, %v12220_v12  ;;  %7927 = vmatpush3.msk.msra.mxu1 %vm378_vm3, %v12220_v12  ;;  %vm671_vm2 = vcmp.eq.s32.totalorder %v8952_v6, %v9224_v37  ;;  %vm952_vm3 = vcmp.eq.s32.totalorder %v8952_v6, %v9229_v38 }
  0x27   :  { %7893 = vmatprep.subr.msk.mxu0 %vm112_vm4, %v12220_v12  ;;  %7928 = vmatprep.subr.msk.mxu1 %vm393_vm5, %v12220_v12  ;;  %vm686_vm4 = vcmp.eq.s32.totalorder %v8955_v7, %v9224_v37  ;;  %vm967_vm5 = vcmp.eq.s32.totalorder %v8955_v7, %v9229_v38 }
  0x28   :  { %7894 = vmatpush3.msk.msra.mxu0 %vm96_vm6, %v12220_v12  ;;  %7929 = vmatpush3.msk.msra.mxu1 %vm377_vm7, %v12220_v12  ;;  %vm670_vm6 = vcmp.eq.s32.totalorder %v8958_v8, %v9224_v37  ;;  %vm951_vm7 = vcmp.eq.s32.totalorder %v8958_v8, %v9229_v38 }
  0x29   :  { %7895 = vmatprep.subr.msk.mxu0 %vm111_vm8, %v12220_v12  ;;  %7930 = vmatprep.subr.msk.mxu1 %vm392_vm9, %v12220_v12  ;;  %vm685_vm8 = vcmp.eq.s32.totalorder %v8961_v9, %v9224_v37  ;;  %vm966_vm9 = vcmp.eq.s32.totalorder %v8961_v9, %v9229_v38 }
  0x2a   :  { %7896 = vmatpush3.msk.msra.mxu0 %vm95_vm10, %v12220_v12  ;;  %7931 = vmatpush3.msk.msra.mxu1 %vm376_vm11, %v12220_v12  ;;  %vm669_vm10 = vcmp.eq.s32.totalorder %v8964_v10, %v9224_v37  ;;  %vm950_vm11 = vcmp.eq.s32.totalorder %v8964_v10, %v9229_v38 }
  0x2b   :  { %7897 = vmatprep.subr.msk.mxu0 %vm110_vm12, %v12220_v12  ;;  %7932 = vmatprep.subr.msk.mxu1 %vm391_vm13, %v12220_v12  ;;  %vm684_vm12 = vcmp.eq.s32.totalorder %v8967_v11, %v9224_v37  ;;  %vm965_vm13 = vcmp.eq.s32.totalorder %v8967_v11, %v9229_v38 }
  0x2c   :  { %7898 = vmatpush3.msk.msra.mxu0 %vm94_vm14, %v12220_v12  ;;  %7933 = vmatpush3.msk.msra.mxu1 %vm375_vm15, %v12220_v12  ;;  %vm668_vm14 = vcmp.eq.s32.totalorder %v8986_v13, %v9224_v37  ;;  %vm949_vm15 = vcmp.eq.s32.totalorder %v8986_v13, %v9229_v38 }
  0x2d   :  { %255 = vmatmul.mubr.f32.vlgmr.msra.gmra.mxu0 %v9242_v39  ;;  %536 = vmatmul.mubr.f32.vlgmr.msra.gmra.mxu1 %v9242_v39 }
  0x2e   :  { %7937 = vmatprep.subr.msk.mxu0 %vm687_vm0, %v12220_v12  ;;  %7972 = vmatprep.subr.msk.mxu1 %vm968_vm1, %v12220_v12  ;;  %vm683_vm0 = vcmp.eq.s32.totalorder %v8997_v14, %v9224_v37  ;;  %vm964_vm1 = vcmp.eq.s32.totalorder %v8997_v14, %v9229_v38 }
  0x2f   :  { %7938 = vmatpush3.msk.msra.mxu0 %vm671_vm2, %v12220_v12  ;;  %7973 = vmatpush3.msk.msra.mxu1 %vm952_vm3, %v12220_v12  ;;  %vm667_vm2 = vcmp.eq.s32.totalorder %v9006_v15, %v9224_v37  ;;  %vm948_vm3 = vcmp.eq.s32.totalorder %v9006_v15, %v9229_v38 }
  0x30   :  { %7939 = vmatprep.subr.msk.mxu0 %vm686_vm4, %v12220_v12  ;;  %7974 = vmatprep.subr.msk.mxu1 %vm967_vm5, %v12220_v12  ;;  %vm682_vm4 = vcmp.eq.s32.totalorder %v9015_v16, %v9224_v37  ;;  %vm963_vm5 = vcmp.eq.s32.totalorder %v9015_v16, %v9229_v38 }
  0x31   :  { %7940 = vmatpush3.msk.msra.mxu0 %vm670_vm6, %v12220_v12  ;;  %7975 = vmatpush3.msk.msra.mxu1 %vm951_vm7, %v12220_v12  ;;  %vm666_vm6 = vcmp.eq.s32.totalorder %v9024_v17, %v9224_v37  ;;  %vm947_vm7 = vcmp.eq.s32.totalorder %v9024_v17, %v9229_v38 }
  0x32   :  { %7941 = vmatprep.subr.msk.mxu0 %vm685_vm8, %v12220_v12  ;;  %7976 = vmatprep.subr.msk.mxu1 %vm966_vm9, %v12220_v12  ;;  %vm681_vm8 = vcmp.eq.s32.totalorder %v9033_v18, %v9224_v37  ;;  %vm962_vm9 = vcmp.eq.s32.totalorder %v9033_v18, %v9229_v38 }
  0x33   :  { %7942 = vmatpush3.msk.msra.mxu0 %vm669_vm10, %v12220_v12  ;;  %7977 = vmatpush3.msk.msra.mxu1 %vm950_vm11, %v12220_v12  ;;  %vm665_vm10 = vcmp.eq.s32.totalorder %v9042_v19, %v9224_v37  ;;  %vm946_vm11 = vcmp.eq.s32.totalorder %v9042_v19, %v9229_v38 }
  0x34   :  { %7943 = vmatprep.subr.msk.mxu0 %vm684_vm12, %v12220_v12  ;;  %7978 = vmatprep.subr.msk.mxu1 %vm965_vm13, %v12220_v12  ;;  %vm680_vm12 = vcmp.eq.s32.totalorder %v9051_v20, %v9224_v37  ;;  %vm961_vm13 = vcmp.eq.s32.totalorder %v9051_v20, %v9229_v38 }
  0x35   :  { %7944 = vmatpush3.msk.msra.mxu0 %vm668_vm14, %v12220_v12  ;;  %7979 = vmatpush3.msk.msra.mxu1 %vm949_vm15, %v12220_v12  ;;  %vm664_vm14 = vcmp.eq.s32.totalorder %v9060_v21, %v9224_v37  ;;  %vm945_vm15 = vcmp.eq.s32.totalorder %v9060_v21, %v9229_v38 }
  0x36   :  { %7945 = vmatprep.subr.msk.mxu0 %vm683_vm0, %v12220_v12  ;;  %7980 = vmatprep.subr.msk.mxu1 %vm964_vm1, %v12220_v12  ;;  %vm679_vm0 = vcmp.eq.s32.totalorder %v9069_v22, %v9224_v37  ;;  %vm960_vm1 = vcmp.eq.s32.totalorder %v9069_v22, %v9229_v38 }
  0x37   :  { %7946 = vmatpush3.msk.msra.mxu0 %vm667_vm2, %v12220_v12  ;;  %7981 = vmatpush3.msk.msra.mxu1 %vm948_vm3, %v12220_v12  ;;  %vm663_vm2 = vcmp.eq.s32.totalorder %v9078_v23, %v9224_v37  ;;  %vm944_vm3 = vcmp.eq.s32.totalorder %v9078_v23, %v9229_v38 }
  0x38   :  { %7947 = vmatprep.subr.msk.mxu0 %vm682_vm4, %v12220_v12  ;;  %7982 = vmatprep.subr.msk.mxu1 %vm963_vm5, %v12220_v12  ;;  %vm678_vm4 = vcmp.eq.s32.totalorder %v9087_v24, %v9224_v37  ;;  %vm959_vm5 = vcmp.eq.s32.totalorder %v9087_v24, %v9229_v38 }
  0x39   :  { %7948 = vmatpush3.msk.msra.mxu0 %vm666_vm6, %v12220_v12  ;;  %7983 = vmatpush3.msk.msra.mxu1 %vm947_vm7, %v12220_v12  ;;  %vm662_vm6 = vcmp.eq.s32.totalorder %v9096_v25, %v9224_v37  ;;  %vm943_vm7 = vcmp.eq.s32.totalorder %v9096_v25, %v9229_v38 }
  0x3a   :  { %7949 = vmatprep.subr.msk.mxu0 %vm681_vm8, %v12220_v12  ;;  %7984 = vmatprep.subr.msk.mxu1 %vm962_vm9, %v12220_v12  ;;  %vm677_vm8 = vcmp.eq.s32.totalorder %v9105_v26, %v9224_v37  ;;  %vm958_vm9 = vcmp.eq.s32.totalorder %v9105_v26, %v9229_v38 }
  0x3b   :  { %7950 = vmatpush3.msk.msra.mxu0 %vm665_vm10, %v12220_v12  ;;  %7985 = vmatpush3.msk.msra.mxu1 %vm946_vm11, %v12220_v12  ;;  %vm661_vm10 = vcmp.eq.s32.totalorder %v9114_v27, %v9224_v37  ;;  %vm942_vm11 = vcmp.eq.s32.totalorder %v9114_v27, %v9229_v38 }
  0x3c   :  { %7951 = vmatprep.subr.msk.mxu0 %vm680_vm12, %v12220_v12  ;;  %7986 = vmatprep.subr.msk.mxu1 %vm961_vm13, %v12220_v12  ;;  %vm676_vm12 = vcmp.eq.s32.totalorder %v9123_v28, %v9224_v37  ;;  %vm957_vm13 = vcmp.eq.s32.totalorder %v9123_v28, %v9229_v38 }
  0x3d   :  { %7952 = vmatpush3.msk.msra.mxu0 %vm664_vm14, %v12220_v12  ;;  %7987 = vmatpush3.msk.msra.mxu1 %vm945_vm15, %v12220_v12  ;;  %vm660_vm14 = vcmp.eq.s32.totalorder %v9132_v29, %v9224_v37  ;;  %vm941_vm15 = vcmp.eq.s32.totalorder %v9132_v29, %v9229_v38 }
  0x3e   :  { %7953 = vmatprep.subr.msk.mxu0 %vm679_vm0, %v12220_v12  ;;  %7988 = vmatprep.subr.msk.mxu1 %vm960_vm1, %v12220_v12  ;;  %vm675_vm0 = vcmp.eq.s32.totalorder %v9141_v30, %v9224_v37  ;;  %vm956_vm1 = vcmp.eq.s32.totalorder %v9141_v30, %v9229_v38 }
  0x3f   :  { %7954 = vmatpush3.msk.msra.mxu0 %vm663_vm2, %v12220_v12  ;;  %7989 = vmatpush3.msk.msra.mxu1 %vm944_vm3, %v12220_v12  ;;  %vm659_vm2 = vcmp.eq.s32.totalorder %v9150_v31, %v9224_v37  ;;  %vm940_vm3 = vcmp.eq.s32.totalorder %v9150_v31, %v9229_v38 }
  0x40   :  { %7955 = vmatprep.subr.msk.mxu0 %vm678_vm4, %v12220_v12  ;;  %7990 = vmatprep.subr.msk.mxu1 %vm959_vm5, %v12220_v12  ;;  %vm674_vm4 = vcmp.eq.s32.totalorder %v9159_v32, %v9224_v37  ;;  %vm955_vm5 = vcmp.eq.s32.totalorder %v9159_v32, %v9229_v38 }
  0x41   :  { %7956 = vmatpush3.msk.msra.mxu0 %vm662_vm6, %v12220_v12  ;;  %7991 = vmatpush3.msk.msra.mxu1 %vm943_vm7, %v12220_v12  ;;  %vm658_vm6 = vcmp.eq.s32.totalorder %v9168_v33, %v9224_v37  ;;  %vm939_vm7 = vcmp.eq.s32.totalorder %v9168_v33, %v9229_v38 }
  0x42   :  { %7957 = vmatprep.subr.msk.mxu0 %vm677_vm8, %v12220_v12  ;;  %7992 = vmatprep.subr.msk.mxu1 %vm958_vm9, %v12220_v12  ;;  %vm673_vm8 = vcmp.eq.s32.totalorder %v9177_v34, %v9224_v37  ;;  %vm954_vm9 = vcmp.eq.s32.totalorder %v9177_v34, %v9229_v38 }
  0x43   :  { %7958 = vmatpush3.msk.msra.mxu0 %vm661_vm10, %v12220_v12  ;;  %7993 = vmatpush3.msk.msra.mxu1 %vm942_vm11, %v12220_v12  ;;  %vm657_vm10 = vcmp.eq.s32.totalorder %v9186_v35, %v9224_v37  ;;  %vm672_vm11 = vcmp.eq.s32.totalorder %v9195_v36, %v9224_v37 }
  0x44   :  { %7959 = vmatprep.subr.msk.mxu0 %vm676_vm12, %v12220_v12  ;;  %7994 = vmatprep.subr.msk.mxu1 %vm957_vm13, %v12220_v12  ;;  %vm938_vm12 = vcmp.eq.s32.totalorder %v9186_v35, %v9229_v38  ;;  %vm656_vm13 = vcmp.eq.s32.totalorder %v8936_v2, %v9224_v37  ;;  %v9972_v37 = vsub.s32 0, %v8936_v2 }
  0x45   :  { %7960 = vmatpush3.msk.msra.mxu0 %vm660_vm14, %v12220_v12  ;;  %7995 = vmatpush3.msk.msra.mxu1 %vm941_vm15, %v12220_v12  ;;  %vm953_vm14 = vcmp.eq.s32.totalorder %v9195_v36, %v9229_v38  ;;  %vm1249_vm15 = vcmp.eq.s32.totalorder %v8949_v5, %v9425_v40 }
  0x46   :  { %7961 = vmatprep.subr.msk.mxu0 %vm675_vm0, %v12220_v12  ;;  %7996 = vmatprep.subr.msk.mxu1 %vm956_vm1, %v12220_v12  ;;  %vm937_vm0 = vcmp.eq.s32.totalorder %v8936_v2, %v9229_v38  ;;  %vm1233_vm1 = vcmp.eq.s32.totalorder %v8952_v6, %v9425_v40 }
  0x47   :  { %7962 = vmatpush3.msk.msra.mxu0 %vm659_vm2, %v12220_v12  ;;  %7997 = vmatpush3.msk.msra.mxu1 %vm940_vm3, %v12220_v12  ;;  %vm1248_vm2 = vcmp.eq.s32.totalorder %v8955_v7, %v9425_v40  ;;  %vm1530_vm3 = vcmp.eq.s32.totalorder %v8949_v5, %v9446_v41 }
  0x48   :  { %7963 = vmatprep.subr.msk.mxu0 %vm674_vm4, %v12220_v12  ;;  %7998 = vmatprep.subr.msk.mxu1 %vm955_vm5, %v12220_v12  ;;  %vm1232_vm4 = vcmp.eq.s32.totalorder %v8958_v8, %v9425_v40  ;;  %vm1514_vm5 = vcmp.eq.s32.totalorder %v8952_v6, %v9446_v41 }
  0x49   :  { %7964 = vmatpush3.msk.msra.mxu0 %vm658_vm6, %v12220_v12  ;;  %7999 = vmatpush3.msk.msra.mxu1 %vm939_vm7, %v12220_v12  ;;  %vm1247_vm6 = vcmp.eq.s32.totalorder %v8961_v9, %v9425_v40  ;;  %vm1529_vm7 = vcmp.eq.s32.totalorder %v8955_v7, %v9446_v41 }
  0x4a   :  { %7965 = vmatprep.subr.msk.mxu0 %vm673_vm8, %v12220_v12  ;;  %8000 = vmatprep.subr.msk.mxu1 %vm954_vm9, %v12220_v12  ;;  %vm1231_vm8 = vcmp.eq.s32.totalorder %v8964_v10, %v9425_v40  ;;  %vm1513_vm9 = vcmp.eq.s32.totalorder %v8958_v8, %v9446_v41 }
  0x4b   :  { %7966 = vmatpush3.msk.msra.mxu0 %vm657_vm10, %v12220_v12  ;;  %816 = vmatprep.mubr.f32.mxu0 %v8932_v1  ;;  %vm1246_vm10 = vcmp.eq.s32.totalorder %v8967_v11, %v9425_v40 }
  0x4c   :  { %7967 = vmatprep.subr.msk.mxu0 %vm672_vm11, %v12220_v12  ;;  %8001 = vmatpush3.msk.msra.mxu1 %vm938_vm12, %v12220_v12  ;;  %vm1528_vm11 = vcmp.eq.s32.totalorder %v8961_v9, %v9446_v41  ;;  %vm1230_vm12 = vcmp.eq.s32.totalorder %v8986_v13, %v9425_v40 }
  0x4d   :  { %7968 = vmatpush3.msk.msra.mxu0 %vm656_vm13, %v12220_v12  ;;  %8002 = vmatprep.subr.msk.mxu1 %vm953_vm14, %v12220_v12  ;;  %vm1512_vm13 = vcmp.eq.s32.totalorder %v8964_v10, %v9446_v41  ;;  %vm1245_vm14 = vcmp.eq.s32.totalorder %v8997_v14, %v9425_v40 }
  0x4e   :  { %817 = vmatmul.mubr.f32.vlgmr.msra.gmra.mxu0 %v9242_v39  ;;  %8007 = vmatprep.subr.msk.mxu0 %vm1249_vm15, %v12220_v12  ;;  %vm1527_vm15 = vcmp.eq.s32.totalorder %v8967_v11, %v9446_v41 }
  0x4f   :  { %8003 = vmatpush3.msk.msra.mxu1 %vm937_vm0, %v12220_v12  ;;  %1097 = vmatprep.mubr.f32.mxu1 %v8932_v1  ;;  %vm1229_vm0 = vcmp.eq.s32.totalorder %v9006_v15, %v9425_v40 }
  0x50   :  { %8008 = vmatpush3.msk.msra.mxu0 %vm1233_vm1, %v12220_v12  ;;  %1098 = vmatmul.mubr.f32.vlgmr.msra.gmra.mxu1 %v9242_v39  ;;  %vm1511_vm1 = vcmp.eq.s32.totalorder %v8986_v13, %v9446_v41 }
  0x51   :  { %8009 = vmatprep.subr.msk.mxu0 %vm1248_vm2, %v12220_v12  ;;  %8042 = vmatprep.subr.msk.mxu1 %vm1530_vm3, %v12220_v12  ;;  %vm1244_vm2 = vcmp.eq.s32.totalorder %v9015_v16, %v9425_v40  ;;  %vm1526_vm3 = vcmp.eq.s32.totalorder %v8997_v14, %v9446_v41 }
  0x52   :  { %8010 = vmatpush3.msk.msra.mxu0 %vm1232_vm4, %v12220_v12  ;;  %8043 = vmatpush3.msk.msra.mxu1 %vm1514_vm5, %v12220_v12  ;;  %vm1228_vm4 = vcmp.eq.s32.totalorder %v9024_v17, %v9425_v40  ;;  %vm1510_vm5 = vcmp.eq.s32.totalorder %v9006_v15, %v9446_v41 }
  0x53   :  { %8011 = vmatprep.subr.msk.mxu0 %vm1247_vm6, %v12220_v12  ;;  %8044 = vmatprep.subr.msk.mxu1 %vm1529_vm7, %v12220_v12  ;;  %vm1243_vm6 = vcmp.eq.s32.totalorder %v9033_v18, %v9425_v40  ;;  %vm1525_vm7 = vcmp.eq.s32.totalorder %v9015_v16, %v9446_v41 }
  0x54   :  { %8012 = vmatpush3.msk.msra.mxu0 %vm1231_vm8, %v12220_v12  ;;  %8045 = vmatpush3.msk.msra.mxu1 %vm1513_vm9, %v12220_v12  ;;  %vm1227_vm8 = vcmp.eq.s32.totalorder %v9042_v19, %v9425_v40  ;;  %vm1509_vm9 = vcmp.eq.s32.totalorder %v9024_v17, %v9446_v41 }
  0x55   :  { %8013 = vmatprep.subr.msk.mxu0 %vm1246_vm10, %v12220_v12  ;;  %8046 = vmatprep.subr.msk.mxu1 %vm1528_vm11, %v12220_v12  ;;  %vm1242_vm10 = vcmp.eq.s32.totalorder %v9051_v20, %v9425_v40  ;;  %vm1524_vm11 = vcmp.eq.s32.totalorder %v9033_v18, %v9446_v41 }
  0x56   :  { %8014 = vmatpush3.msk.msra.mxu0 %vm1230_vm12, %v12220_v12  ;;  %8047 = vmatpush3.msk.msra.mxu1 %vm1512_vm13, %v12220_v12  ;;  %vm1226_vm12 = vcmp.eq.s32.totalorder %v9060_v21, %v9425_v40  ;;  %vm1508_vm13 = vcmp.eq.s32.totalorder %v9042_v19, %v9446_v41 }
  0x57   :  { %8015 = vmatprep.subr.msk.mxu0 %vm1245_vm14, %v12220_v12  ;;  %8048 = vmatprep.subr.msk.mxu1 %vm1527_vm15, %v12220_v12  ;;  %vm1241_vm14 = vcmp.eq.s32.totalorder %v9069_v22, %v9425_v40  ;;  %vm1523_vm15 = vcmp.eq.s32.totalorder %v9051_v20, %v9446_v41 }
  0x58   :  { %8016 = vmatpush3.msk.msra.mxu0 %vm1229_vm0, %v12220_v12  ;;  %8049 = vmatpush3.msk.msra.mxu1 %vm1511_vm1, %v12220_v12  ;;  %vm1225_vm0 = vcmp.eq.s32.totalorder %v9078_v23, %v9425_v40  ;;  %vm1507_vm1 = vcmp.eq.s32.totalorder %v9060_v21, %v9446_v41 }
  0x59   :  { %8017 = vmatprep.subr.msk.mxu0 %vm1244_vm2, %v12220_v12  ;;  %8050 = vmatprep.subr.msk.mxu1 %vm1526_vm3, %v12220_v12  ;;  %vm1240_vm2 = vcmp.eq.s32.totalorder %v9087_v24, %v9425_v40  ;;  %vm1522_vm3 = vcmp.eq.s32.totalorder %v9069_v22, %v9446_v41 }
  0x5a   :  { %8018 = vmatpush3.msk.msra.mxu0 %vm1228_vm4, %v12220_v12  ;;  %8051 = vmatpush3.msk.msra.mxu1 %vm1510_vm5, %v12220_v12  ;;  %vm1224_vm4 = vcmp.eq.s32.totalorder %v9096_v25, %v9425_v40  ;;  %vm1506_vm5 = vcmp.eq.s32.totalorder %v9078_v23, %v9446_v41 }
  0x5b   :  { %8019 = vmatprep.subr.msk.mxu0 %vm1243_vm6, %v12220_v12  ;;  %8052 = vmatprep.subr.msk.mxu1 %vm1525_vm7, %v12220_v12  ;;  %vm1239_vm6 = vcmp.eq.s32.totalorder %v9105_v26, %v9425_v40  ;;  %vm1521_vm7 = vcmp.eq.s32.totalorder %v9087_v24, %v9446_v41 }
  0x5c   :  { %8020 = vmatpush3.msk.msra.mxu0 %vm1227_vm8, %v12220_v12  ;;  %8053 = vmatpush3.msk.msra.mxu1 %vm1509_vm9, %v12220_v12  ;;  %vm1223_vm8 = vcmp.eq.s32.totalorder %v9114_v27, %v9425_v40  ;;  %vm1505_vm9 = vcmp.eq.s32.totalorder %v9096_v25, %v9446_v41 }
  0x5d   :  { %8021 = vmatprep.subr.msk.mxu0 %vm1242_vm10, %v12220_v12  ;;  %8054 = vmatprep.subr.msk.mxu1 %vm1524_vm11, %v12220_v12  ;;  %vm1238_vm10 = vcmp.eq.s32.totalorder %v9123_v28, %v9425_v40  ;;  %vm1520_vm11 = vcmp.eq.s32.totalorder %v9105_v26, %v9446_v41 }
  0x5e   :  { %8022 = vmatpush3.msk.msra.mxu0 %vm1226_vm12, %v12220_v12  ;;  %8055 = vmatpush3.msk.msra.mxu1 %vm1508_vm13, %v12220_v12  ;;  %vm1222_vm12 = vcmp.eq.s32.totalorder %v9132_v29, %v9425_v40  ;;  %vm1504_vm13 = vcmp.eq.s32.totalorder %v9114_v27, %v9446_v41 }
  0x5f   :  { %8023 = vmatprep.subr.msk.mxu0 %vm1241_vm14, %v12220_v12  ;;  %8056 = vmatprep.subr.msk.mxu1 %vm1523_vm15, %v12220_v12  ;;  %vm1237_vm14 = vcmp.eq.s32.totalorder %v9141_v30, %v9425_v40  ;;  %vm1519_vm15 = vcmp.eq.s32.totalorder %v9123_v28, %v9446_v41 }
  0x60   :  { %8024 = vmatpush3.msk.msra.mxu0 %vm1225_vm0, %v12220_v12  ;;  %8057 = vmatpush3.msk.msra.mxu1 %vm1507_vm1, %v12220_v12  ;;  %vm1221_vm0 = vcmp.eq.s32.totalorder %v9150_v31, %v9425_v40  ;;  %vm1503_vm1 = vcmp.eq.s32.totalorder %v9132_v29, %v9446_v41 }
  0x61   :  { %8025 = vmatprep.subr.msk.mxu0 %vm1240_vm2, %v12220_v12  ;;  %8058 = vmatprep.subr.msk.mxu1 %vm1522_vm3, %v12220_v12  ;;  %vm1236_vm2 = vcmp.eq.s32.totalorder %v9159_v32, %v9425_v40  ;;  %vm1518_vm3 = vcmp.eq.s32.totalorder %v9141_v30, %v9446_v41 }
  0x62   :  { %8026 = vmatpush3.msk.msra.mxu0 %vm1224_vm4, %v12220_v12  ;;  %8059 = vmatpush3.msk.msra.mxu1 %vm1506_vm5, %v12220_v12  ;;  %vm1220_vm4 = vcmp.eq.s32.totalorder %v9168_v33, %v9425_v40  ;;  %vm1502_vm5 = vcmp.eq.s32.totalorder %v9150_v31, %v9446_v41 }
  0x63   :  { %8027 = vmatprep.subr.msk.mxu0 %vm1239_vm6, %v12220_v12  ;;  %8060 = vmatprep.subr.msk.mxu1 %vm1521_vm7, %v12220_v12  ;;  %vm1235_vm6 = vcmp.eq.s32.totalorder %v9177_v34, %v9425_v40  ;;  %vm1517_vm7 = vcmp.eq.s32.totalorder %v9159_v32, %v9446_v41 }
  0x64   :  { %8028 = vmatpush3.msk.msra.mxu0 %vm1223_vm8, %v12220_v12  ;;  %8061 = vmatpush3.msk.msra.mxu1 %vm1505_vm9, %v12220_v12  ;;  %vm1219_vm8 = vcmp.eq.s32.totalorder %v9186_v35, %v9425_v40  ;;  %vm1501_vm9 = vcmp.eq.s32.totalorder %v9168_v33, %v9446_v41 }
  0x65   :  { %8029 = vmatprep.subr.msk.mxu0 %vm1238_vm10, %v12220_v12  ;;  %8062 = vmatprep.subr.msk.mxu1 %vm1520_vm11, %v12220_v12  ;;  %vm1234_vm10 = vcmp.eq.s32.totalorder %v9195_v36, %v9425_v40  ;;  %vm1516_vm11 = vcmp.eq.s32.totalorder %v9177_v34, %v9446_v41 }
  0x66   :  { %8030 = vmatpush3.msk.msra.mxu0 %vm1222_vm12, %v12220_v12  ;;  %8063 = vmatpush3.msk.msra.mxu1 %vm1504_vm13, %v12220_v12  ;;  %vm1218_vm12 = vcmp.eq.s32.totalorder %v8936_v2, %v9425_v40  ;;  %vm1500_vm13 = vcmp.eq.s32.totalorder %v9186_v35, %v9446_v41 }
  0x67   :  { %8031 = vmatprep.subr.msk.mxu0 %vm1237_vm14, %v12220_v12  ;;  %8064 = vmatprep.subr.msk.mxu1 %vm1519_vm15, %v12220_v12  ;;  %vm1515_vm14 = vcmp.eq.s32.totalorder %v9195_v36, %v9446_v41  ;;  %vm1811_vm15 = vcmp.eq.s32.totalorder %v8949_v5, %v9633_v42 }
  0x68   :  { %8032 = vmatpush3.msk.msra.mxu0 %vm1221_vm0, %v12220_v12  ;;  %8065 = vmatpush3.msk.msra.mxu1 %vm1503_vm1, %v12220_v12  ;;  %vm1499_vm0 = vcmp.eq.s32.totalorder %v8936_v2, %v9446_v41  ;;  %vm1795_vm1 = vcmp.eq.s32.totalorder %v8952_v6, %v9633_v42 }
  0x69   :  { %8033 = vmatprep.subr.msk.mxu0 %vm1236_vm2, %v12220_v12  ;;  %8066 = vmatprep.subr.msk.mxu1 %vm1518_vm3, %v12220_v12  ;;  %vm1810_vm2 = vcmp.eq.s32.totalorder %v8955_v7, %v9633_v42  ;;  %vm2092_vm3 = vcmp.eq.s32.totalorder %v8949_v5, %v9652_v43 }
  0x6a   :  { %8034 = vmatpush3.msk.msra.mxu0 %vm1220_vm4, %v12220_v12  ;;  %8067 = vmatpush3.msk.msra.mxu1 %vm1502_vm5, %v12220_v12  ;;  %vm1794_vm4 = vcmp.eq.s32.totalorder %v8958_v8, %v9633_v42  ;;  %vm2076_vm5 = vcmp.eq.s32.totalorder %v8952_v6, %v9652_v43 }
  0x6b   :  { %8035 = vmatprep.subr.msk.mxu0 %vm1235_vm6, %v12220_v12  ;;  %8068 = vmatprep.subr.msk.mxu1 %vm1517_vm7, %v12220_v12  ;;  %vm1809_vm6 = vcmp.eq.s32.totalorder %v8961_v9, %v9633_v42  ;;  %vm2091_vm7 = vcmp.eq.s32.totalorder %v8955_v7, %v9652_v43 }
  0x6c   :  { %8036 = vmatpush3.msk.msra.mxu0 %vm1219_vm8, %v12220_v12  ;;  %8069 = vmatpush3.msk.msra.mxu1 %vm1501_vm9, %v12220_v12  ;;  %vm1793_vm8 = vcmp.eq.s32.totalorder %v8964_v10, %v9633_v42  ;;  %vm2075_vm9 = vcmp.eq.s32.totalorder %v8958_v8, %v9652_v43 }
  0x6d   :  { %8037 = vmatprep.subr.msk.mxu0 %vm1234_vm10, %v12220_v12  ;;  %8070 = vmatprep.subr.msk.mxu1 %vm1516_vm11, %v12220_v12  ;;  %vm1808_vm10 = vcmp.eq.s32.totalorder %v8967_v11, %v9633_v42  ;;  %vm2090_vm11 = vcmp.eq.s32.totalorder %v8961_v9, %v9652_v43 }
  0x6e   :  { %8038 = vmatpush3.msk.msra.mxu0 %vm1218_vm12, %v12220_v12  ;;  %1378 = vmatprep.mubr.f32.mxu0 %v8932_v1  ;;  %vm1792_vm12 = vcmp.eq.s32.totalorder %v8986_v13, %v9633_v42 }
  0x6f   :  { %8071 = vmatpush3.msk.msra.mxu1 %vm1500_vm13, %v12220_v12  ;;  %1379 = vmatmul.mubr.f32.vlgmr.msra.gmra.mxu0 %v9242_v39  ;;  %vm2074_vm13 = vcmp.eq.s32.totalorder %v8964_v10, %v9652_v43 }
  0x70   :  { %8072 = vmatprep.subr.msk.mxu1 %vm1515_vm14, %v12220_v12  ;;  %8077 = vmatprep.subr.msk.mxu0 %vm1811_vm15, %v12220_v12  ;;  %vm1807_vm14 = vcmp.eq.s32.totalorder %v8997_v14, %v9633_v42  ;;  %vm2089_vm15 = vcmp.eq.s32.totalorder %v8967_v11, %v9652_v43 }
  0x71   :  { %8073 = vmatpush3.msk.msra.mxu1 %vm1499_vm0, %v12220_v12  ;;  %1659 = vmatprep.mubr.f32.mxu1 %v8932_v1  ;;  %vm1791_vm0 = vcmp.eq.s32.totalorder %v9006_v15, %v9633_v42 }
  0x72   :  { %8078 = vmatpush3.msk.msra.mxu0 %vm1795_vm1, %v12220_v12  ;;  %1660 = vmatmul.mubr.f32.vlgmr.msra.gmra.mxu1 %v9242_v39  ;;  %vm2073_vm1 = vcmp.eq.s32.totalorder %v8986_v13, %v9652_v43 }
  0x73   :  { %8079 = vmatprep.subr.msk.mxu0 %vm1810_vm2, %v12220_v12  ;;  %8112 = vmatprep.subr.msk.mxu1 %vm2092_vm3, %v12220_v12  ;;  %vm1806_vm2 = vcmp.eq.s32.totalorder %v9015_v16, %v9633_v42  ;;  %vm2088_vm3 = vcmp.eq.s32.totalorder %v8997_v14, %v9652_v43 }
  0x74   :  { %8080 = vmatpush3.msk.msra.mxu0 %vm1794_vm4, %v12220_v12  ;;  %8113 = vmatpush3.msk.msra.mxu1 %vm2076_vm5, %v12220_v12  ;;  %vm1790_vm4 = vcmp.eq.s32.totalorder %v9024_v17, %v9633_v42  ;;  %vm2072_vm5 = vcmp.eq.s32.totalorder %v9006_v15, %v9652_v43 }
  0x75   :  { %8081 = vmatprep.subr.msk.mxu0 %vm1809_vm6, %v12220_v12  ;;  %8114 = vmatprep.subr.msk.mxu1 %vm2091_vm7, %v12220_v12  ;;  %vm1805_vm6 = vcmp.eq.s32.totalorder %v9033_v18, %v9633_v42  ;;  %vm2087_vm7 = vcmp.eq.s32.totalorder %v9015_v16, %v9652_v43 }
  0x76   :  { %8082 = vmatpush3.msk.msra.mxu0 %vm1793_vm8, %v12220_v12  ;;  %8115 = vmatpush3.msk.msra.mxu1 %vm2075_vm9, %v12220_v12  ;;  %vm1789_vm8 = vcmp.eq.s32.totalorder %v9042_v19, %v9633_v42  ;;  %vm2071_vm9 = vcmp.eq.s32.totalorder %v9024_v17, %v9652_v43 }
  0x77   :  { %8083 = vmatprep.subr.msk.mxu0 %vm1808_vm10, %v12220_v12  ;;  %8116 = vmatprep.subr.msk.mxu1 %vm2090_vm11, %v12220_v12  ;;  %vm1804_vm10 = vcmp.eq.s32.totalorder %v9051_v20, %v9633_v42  ;;  %vm2086_vm11 = vcmp.eq.s32.totalorder %v9033_v18, %v9652_v43 }
  0x78   :  { %8084 = vmatpush3.msk.msra.mxu0 %vm1792_vm12, %v12220_v12  ;;  %8117 = vmatpush3.msk.msra.mxu1 %vm2074_vm13, %v12220_v12  ;;  %vm1788_vm12 = vcmp.eq.s32.totalorder %v9060_v21, %v9633_v42  ;;  %vm2070_vm13 = vcmp.eq.s32.totalorder %v9042_v19, %v9652_v43 }
  0x79   :  { %8085 = vmatprep.subr.msk.mxu0 %vm1807_vm14, %v12220_v12  ;;  %8118 = vmatprep.subr.msk.mxu1 %vm2089_vm15, %v12220_v12  ;;  %vm1803_vm14 = vcmp.eq.s32.totalorder %v9069_v22, %v9633_v42  ;;  %vm2085_vm15 = vcmp.eq.s32.totalorder %v9051_v20, %v9652_v43 }
  0x7a   :  { %8086 = vmatpush3.msk.msra.mxu0 %vm1791_vm0, %v12220_v12  ;;  %8119 = vmatpush3.msk.msra.mxu1 %vm2073_vm1, %v12220_v12  ;;  %vm1787_vm0 = vcmp.eq.s32.totalorder %v9078_v23, %v9633_v42  ;;  %vm2069_vm1 = vcmp.eq.s32.totalorder %v9060_v21, %v9652_v43 }
  0x7b   :  { %8087 = vmatprep.subr.msk.mxu0 %vm1806_vm2, %v12220_v12  ;;  %8120 = vmatprep.subr.msk.mxu1 %vm2088_vm3, %v12220_v12  ;;  %vm1802_vm2 = vcmp.eq.s32.totalorder %v9087_v24, %v9633_v42  ;;  %vm2084_vm3 = vcmp.eq.s32.totalorder %v9069_v22, %v9652_v43 }
  0x7c   :  { %8088 = vmatpush3.msk.msra.mxu0 %vm1790_vm4, %v12220_v12  ;;  %8121 = vmatpush3.msk.msra.mxu1 %vm2072_vm5, %v12220_v12  ;;  %vm1786_vm4 = vcmp.eq.s32.totalorder %v9096_v25, %v9633_v42  ;;  %vm2068_vm5 = vcmp.eq.s32.totalorder %v9078_v23, %v9652_v43 }
  0x7d   :  { %8089 = vmatprep.subr.msk.mxu0 %vm1805_vm6, %v12220_v12  ;;  %8122 = vmatprep.subr.msk.mxu1 %vm2087_vm7, %v12220_v12  ;;  %vm1801_vm6 = vcmp.eq.s32.totalorder %v9105_v26, %v9633_v42  ;;  %vm2083_vm7 = vcmp.eq.s32.totalorder %v9087_v24, %v9652_v43 }
  0x7e   :  { %8090 = vmatpush3.msk.msra.mxu0 %vm1789_vm8, %v12220_v12  ;;  %8123 = vmatpush3.msk.msra.mxu1 %vm2071_vm9, %v12220_v12  ;;  %vm1785_vm8 = vcmp.eq.s32.totalorder %v9114_v27, %v9633_v42  ;;  %vm2067_vm9 = vcmp.eq.s32.totalorder %v9096_v25, %v9652_v43 }
  0x7f   :  { %8091 = vmatprep.subr.msk.mxu0 %vm1804_vm10, %v12220_v12  ;;  %8124 = vmatprep.subr.msk.mxu1 %vm2086_vm11, %v12220_v12  ;;  %vm1800_vm10 = vcmp.eq.s32.totalorder %v9123_v28, %v9633_v42  ;;  %vm2082_vm11 = vcmp.eq.s32.totalorder %v9105_v26, %v9652_v43 }
  0x80   :  { %8092 = vmatpush3.msk.msra.mxu0 %vm1788_vm12, %v12220_v12  ;;  %8125 = vmatpush3.msk.msra.mxu1 %vm2070_vm13, %v12220_v12  ;;  %vm1784_vm12 = vcmp.eq.s32.totalorder %v9132_v29, %v9633_v42  ;;  %vm2066_vm13 = vcmp.eq.s32.totalorder %v9114_v27, %v9652_v43 }
  0x81   :  { %8093 = vmatprep.subr.msk.mxu0 %vm1803_vm14, %v12220_v12  ;;  %8126 = vmatprep.subr.msk.mxu1 %vm2085_vm15, %v12220_v12  ;;  %vm1799_vm14 = vcmp.eq.s32.totalorder %v9141_v30, %v9633_v42  ;;  %vm2081_vm15 = vcmp.eq.s32.totalorder %v9123_v28, %v9652_v43 }
  0x82   :  { %8094 = vmatpush3.msk.msra.mxu0 %vm1787_vm0, %v12220_v12  ;;  %8127 = vmatpush3.msk.msra.mxu1 %vm2069_vm1, %v12220_v12  ;;  %vm1783_vm0 = vcmp.eq.s32.totalorder %v9150_v31, %v9633_v42  ;;  %vm2065_vm1 = vcmp.eq.s32.totalorder %v9132_v29, %v9652_v43 }
  0x83   :  { %8095 = vmatprep.subr.msk.mxu0 %vm1802_vm2, %v12220_v12  ;;  %8128 = vmatprep.subr.msk.mxu1 %vm2084_vm3, %v12220_v12  ;;  %vm1798_vm2 = vcmp.eq.s32.totalorder %v9159_v32, %v9633_v42  ;;  %vm2080_vm3 = vcmp.eq.s32.totalorder %v9141_v30, %v9652_v43 }
  0x84   :  { %8096 = vmatpush3.msk.msra.mxu0 %vm1786_vm4, %v12220_v12  ;;  %8129 = vmatpush3.msk.msra.mxu1 %vm2068_vm5, %v12220_v12  ;;  %vm1782_vm4 = vcmp.eq.s32.totalorder %v9168_v33, %v9633_v42  ;;  %vm2064_vm5 = vcmp.eq.s32.totalorder %v9150_v31, %v9652_v43 }
  0x85   :  { %8097 = vmatprep.subr.msk.mxu0 %vm1801_vm6, %v12220_v12  ;;  %8130 = vmatprep.subr.msk.mxu1 %vm2083_vm7, %v12220_v12  ;;  %vm1797_vm6 = vcmp.eq.s32.totalorder %v9177_v34, %v9633_v42  ;;  %vm2079_vm7 = vcmp.eq.s32.totalorder %v9159_v32, %v9652_v43 }
  0x86   :  { %8098 = vmatpush3.msk.msra.mxu0 %vm1785_vm8, %v12220_v12  ;;  %8131 = vmatpush3.msk.msra.mxu1 %vm2067_vm9, %v12220_v12  ;;  %vm1781_vm8 = vcmp.eq.s32.totalorder %v9186_v35, %v9633_v42  ;;  %vm2063_vm9 = vcmp.eq.s32.totalorder %v9168_v33, %v9652_v43 }
  0x87   :  { %8099 = vmatprep.subr.msk.mxu0 %vm1800_vm10, %v12220_v12  ;;  %8132 = vmatprep.subr.msk.mxu1 %vm2082_vm11, %v12220_v12  ;;  %vm1796_vm10 = vcmp.eq.s32.totalorder %v9195_v36, %v9633_v42  ;;  %vm2078_vm11 = vcmp.eq.s32.totalorder %v9177_v34, %v9652_v43 }
  0x88   :  { %8100 = vmatpush3.msk.msra.mxu0 %vm1784_vm12, %v12220_v12  ;;  %8133 = vmatpush3.msk.msra.mxu1 %vm2066_vm13, %v12220_v12  ;;  %vm1780_vm12 = vcmp.eq.s32.totalorder %v8936_v2, %v9633_v42  ;;  %vm2062_vm13 = vcmp.eq.s32.totalorder %v9186_v35, %v9652_v43 }
  0x89   :  { %8101 = vmatprep.subr.msk.mxu0 %vm1799_vm14, %v12220_v12  ;;  %8134 = vmatprep.subr.msk.mxu1 %vm2081_vm15, %v12220_v12  ;;  %vm2077_vm14 = vcmp.eq.s32.totalorder %v9195_v36, %v9652_v43  ;;  %vm2373_vm15 = vcmp.eq.s32.totalorder %v8949_v5, %v9839_v44 }
  0x8a   :  { %8102 = vmatpush3.msk.msra.mxu0 %vm1783_vm0, %v12220_v12  ;;  %8135 = vmatpush3.msk.msra.mxu1 %vm2065_vm1, %v12220_v12  ;;  %vm2061_vm0 = vcmp.eq.s32.totalorder %v8936_v2, %v9652_v43  ;;  %vm2357_vm1 = vcmp.eq.s32.totalorder %v8952_v6, %v9839_v44 }
  0x8b   :  { %8103 = vmatprep.subr.msk.mxu0 %vm1798_vm2, %v12220_v12  ;;  %8136 = vmatprep.subr.msk.mxu1 %vm2080_vm3, %v12220_v12  ;;  %vm2372_vm2 = vcmp.eq.s32.totalorder %v8955_v7, %v9839_v44  ;;  %vm2356_vm3 = vcmp.eq.s32.totalorder %v8958_v8, %v9839_v44 }
  0x8c   :  { %8104 = vmatpush3.msk.msra.mxu0 %vm1782_vm4, %v12220_v12  ;;  %8137 = vmatpush3.msk.msra.mxu1 %vm2064_vm5, %v12220_v12  ;;  %vm2371_vm4 = vcmp.eq.s32.totalorder %v8961_v9, %v9839_v44  ;;  %vm2355_vm5 = vcmp.eq.s32.totalorder %v8964_v10, %v9839_v44 }
  0x8d   :  { %8105 = vmatprep.subr.msk.mxu0 %vm1797_vm6, %v12220_v12  ;;  %8138 = vmatprep.subr.msk.mxu1 %vm2079_vm7, %v12220_v12  ;;  %vm2370_vm6 = vcmp.eq.s32.totalorder %v8967_v11, %v9839_v44  ;;  %vm2354_vm7 = vcmp.eq.s32.totalorder %v8986_v13, %v9839_v44 }
  0x8e   :  { %8106 = vmatpush3.msk.msra.mxu0 %vm1781_vm8, %v12220_v12  ;;  %8139 = vmatpush3.msk.msra.mxu1 %vm2063_vm9, %v12220_v12  ;;  %vm2369_vm8 = vcmp.eq.s32.totalorder %v8997_v14, %v9839_v44  ;;  %vm2353_vm9 = vcmp.eq.s32.totalorder %v9006_v15, %v9839_v44 }
  0x8f   :  { %8107 = vmatprep.subr.msk.mxu0 %vm1796_vm10, %v12220_v12  ;;  %8140 = vmatprep.subr.msk.mxu1 %vm2078_vm11, %v12220_v12  ;;  %vm2368_vm10 = vcmp.eq.s32.totalorder %v9015_v16, %v9839_v44  ;;  %vm2352_vm11 = vcmp.eq.s32.totalorder %v9024_v17, %v9839_v44 }
  0x90   :  { %8108 = vmatpush3.msk.msra.mxu0 %vm1780_vm12, %v12220_v12  ;;  %1940 = vmatprep.mubr.f32.mxu0 %v8813_v45  ;;  %vm2367_vm12 = vcmp.eq.s32.totalorder %v9033_v18, %v9839_v44 }
  0x91   :  { %8141 = vmatpush3.msk.msra.mxu1 %vm2062_vm13, %v12220_v12  ;;  %1941 = vmatmul.mubr.f32.vlgmr.msra.gmra.mxu0 %v9242_v39  ;;  %vm2351_vm13 = vcmp.eq.s32.totalorder %v9042_v19, %v9839_v44 }
  0x92   :  { %8142 = vmatprep.subr.msk.mxu1 %vm2077_vm14, %v12220_v12  ;;  %8147 = vmatprep.subr.msk.mxu0 %vm2373_vm15, %v12220_v12  ;;  %vm2366_vm14 = vcmp.eq.s32.totalorder %v9051_v20, %v9839_v44  ;;  %vm2350_vm15 = vcmp.eq.s32.totalorder %v9060_v21, %v9839_v44 }
  0x93   :  { %8143 = vmatpush3.msk.msra.mxu1 %vm2061_vm0, %v12220_v12  ;;  %2221 = vmatprep.mubr.f32.mxu1 %v8813_v45  ;;  %vm2365_vm0 = vcmp.eq.s32.totalorder %v9069_v22, %v9839_v44 }
  0x94   :  { %8148 = vmatpush3.msk.msra.mxu0 %vm2357_vm1, %v12220_v12  ;;  %2222 = vmatmul.mubr.f32.vlgmr.msra.gmra.mxu1 %v9242_v39  ;;  %vm2349_vm1 = vcmp.eq.s32.totalorder %v9078_v23, %v9839_v44 }
  0x95   :  { %8149 = vmatprep.subr.msk.mxu0 %vm2372_vm2, %v12220_v12  ;;  %2502 = vmatprep.mubr.f32.mxu0 %v8813_v45  ;;  %vm2364_vm2 = vcmp.eq.s32.totalorder %v9087_v24, %v9839_v44 }
  0x96   :  { %8150 = vmatpush3.msk.msra.mxu0 %vm2356_vm3, %v12220_v12  ;;  %8805 = vset.pattern.permute.xlu0 %v8839_v47  ;;  %vm2348_vm3 = vcmp.eq.s32.totalorder %v9096_v25, %v9839_v44 }
  0x97   :  { %8151 = vmatprep.subr.msk.mxu0 %vm2371_vm4, %v12220_v12  ;;  %2621 = vperm.xlu0 %8805, %v2618_v46   ;;  %vm2363_vm4 = vcmp.eq.s32.totalorder %v9105_v26, %v9839_v44  ;;  %v260_v46 = vld [vmem:[%s12206_s4] sm:$0xff] }
  0x98   :  { %8152 = vmatpush3.msk.msra.mxu0 %vm2355_vm5, %v12220_v12  ;;  %8806 = vset.pattern.permute.xlu1 %v8839_v47  ;;  %vm2347_vm5 = vcmp.eq.s32.totalorder %v9114_v27, %v9839_v44 }
  0x99   :  { %8153 = vmatprep.subr.msk.mxu0 %vm2370_vm6, %v12220_v12  ;;  %vm2362_vm6 = vcmp.eq.s32.totalorder %v9123_v28, %v9839_v44 }
  0x9a   :  { %8154 = vmatpush3.msk.msra.mxu0 %vm2354_vm7, %v12220_v12  ;;  %vm2346_vm7 = vcmp.eq.s32.totalorder %v9132_v29, %v9839_v44 }
  0x9b   :  { %8155 = vmatprep.subr.msk.mxu0 %vm2369_vm8, %v12220_v12  ;;  %vm2361_vm8 = vcmp.eq.s32.totalorder %v9141_v30, %v9839_v44 }
  0x9c   :  { %8156 = vmatpush3.msk.msra.mxu0 %vm2353_vm9, %v12220_v12  ;;  %vm2345_vm9 = vcmp.eq.s32.totalorder %v9150_v31, %v9839_v44 }
  0x9d   :  { %8157 = vmatprep.subr.msk.mxu0 %vm2368_vm10, %v12220_v12  ;;  %vm2360_vm10 = vcmp.eq.s32.totalorder %v9159_v32, %v9839_v44 }
  0x9e   :  { %8158 = vmatpush3.msk.msra.mxu0 %vm2352_vm11, %v12220_v12  ;;  %vm2344_vm11 = vcmp.eq.s32.totalorder %v9168_v33, %v9839_v44 }
  0x9f   :  { %8159 = vmatprep.subr.msk.mxu0 %vm2367_vm12, %v12220_v12  ;;  %vm2359_vm12 = vcmp.eq.s32.totalorder %v9177_v34, %v9839_v44 }
  0xa0   :  { %8160 = vmatpush3.msk.msra.mxu0 %vm2351_vm13, %v12220_v12  ;;  %vm2343_vm13 = vcmp.eq.s32.totalorder %v9186_v35, %v9839_v44 }
  0xa1   :  { %8161 = vmatprep.subr.msk.mxu0 %vm2366_vm14, %v12220_v12  ;;  %vm2358_vm14 = vcmp.eq.s32.totalorder %v9195_v36, %v9839_v44 }
  0xa2   :  { %8162 = vmatpush3.msk.msra.mxu0 %vm2350_vm15, %v12220_v12  ;;  %vm2342_vm15 = vcmp.eq.s32.totalorder %v8936_v2, %v9839_v44 }
  0xa3   :  { %8163 = vmatprep.subr.msk.mxu0 %vm2365_vm0, %v12220_v12 }
  0xa4   :  { %8164 = vmatpush3.msk.msra.mxu0 %vm2349_vm1, %v12220_v12 }
  0xa5   :  { %8165 = vmatprep.subr.msk.mxu0 %vm2364_vm2, %v12220_v12 }
  0xa6   :  { %8166 = vmatpush3.msk.msra.mxu0 %vm2348_vm3, %v12220_v12 }
  0xa7   :  { %8167 = vmatprep.subr.msk.mxu0 %vm2363_vm4, %v12220_v12 }
  0xa8   :  { %8168 = vmatpush3.msk.msra.mxu0 %vm2347_vm5, %v12220_v12 }
  0xa9   :  { %8169 = vmatprep.subr.msk.mxu0 %vm2362_vm6, %v12220_v12 }
  0xaa   :  { %8170 = vmatpush3.msk.msra.mxu0 %vm2346_vm7, %v12220_v12 }
  0xab   :  { %8171 = vmatprep.subr.msk.mxu0 %vm2361_vm8, %v12220_v12 }
  0xac   :  { %8172 = vmatpush3.msk.msra.mxu0 %vm2345_vm9, %v12220_v12 }
  0xad   :  { %8173 = vmatprep.subr.msk.mxu0 %vm2360_vm10, %v12220_v12 }
  0xae   :  { %8174 = vmatpush3.msk.msra.mxu0 %vm2344_vm11, %v12220_v12 }
  0xaf   :  { %8175 = vmatprep.subr.msk.mxu0 %vm2359_vm12, %v12220_v12 }
  0xb0   :  { %8176 = vmatpush3.msk.msra.mxu0 %vm2343_vm13, %v12220_v12 }
  0xb1   :  { %8177 = vmatprep.subr.msk.mxu0 %vm2358_vm14, %v12220_v12 }
  0xb2   :  { %8178 = vmatpush3.msk.msra.mxu0 %vm2342_vm15, %v12220_v12 }
  0xb3   :  { %2503 = vmatmul.mubr.f32.vlgmr.msra.gmra.mxu0 %v9242_v39 }
  0xed   :  { %v7899_v48 = vpop.f32.mrf.mxu0  ;;  %v7934_v53 = vpop.f32.mrf.mxu1 }
  0xef   :  { %v7900_v51 = vpop.f32.mrf.mxu0  ;;  %v7935_v56 = vpop.f32.mrf.mxu1 }
  0xf0   :  { %v7901_v54 = vadd.f32 %v7900_v51, %v7899_v48  ;;  %v7936_v59 = vadd.f32 %v7935_v56, %v7934_v53 }
  0xf2   :  { %v265_v57 = vcombine.high %v7901_v54, %v7901_v54  ;;  %v272_v58 = vrot.slane %v7901_v54, %v9965_v55  ;;  %v546_v63 = vcombine.high %v7936_v59, %v7936_v59  ;;  %v553_v0 = vrot.slane %v7936_v59, %v9965_v55  ;;  %v262_v59 = vld [vmem:[%s12206_s4 + $0x10] sm:$0xff] }
  0xf4   :  { %v279_v60 = vrot.slane %v265_v57, %v9965_v55  ;;  %v280_v62 = vcombine.high %v272_v58, %v272_v58  ;;  %v288_v3 = vrot.slane %v272_v58, %v9965_v55  ;;  %v560_v39 = vrot.slane %v546_v63, %v9965_v55  ;;  %v261_v58 = vld [vmem:[%s12206_s4 + $0x8] sm:$0xff] }
  0xf5   :  { %v561_v40 = vcombine.high %v553_v0, %v553_v0  ;;  %v569_v49 = vrot.slane %v553_v0, %v9965_v55 }
  0xf6   :  { %v281_v1 = vcombine.high %v279_v60, %v279_v60  ;;  %v302_v38 = vrot.slane %v280_v62, %v9965_v55  ;;  %v295_v42 = vrot.slane %v279_v60, %v9965_v55  ;;  %v310_v44 = vcombine.high %v288_v3, %v288_v3 }
  0xf7   :  { %v317_v45 = vrot.slane %v288_v3, %v9972_v37  ;;  %v562_v48 = vcombine.high %v560_v39, %v560_v39  ;;  %v583_v51 = vrot.slane %v561_v40, %v9965_v55  ;;  %v576_v62 = vrot.slane %v560_v39, %v9965_v55 }
  0xf8   :  { %v309_v43 = vrot.slane %v281_v1, %v9965_v55  ;;  %v312_v47 = vcombine.high %v302_v38, %v302_v38  ;;  %v311_v53 = vcombine.high %v295_v42, %v295_v42  ;;  %v321_v54 = vrot.slane %v302_v38, %v9972_v37 }
  0xf9   :  { %v325_v56 = vrot.slane %v310_v44, %v9972_v37  ;;  %v333_v60 = vrot.slane %v295_v42, %v9972_v37  ;;  %v590_v1 = vrot.slane %v562_v48, %v9965_v55  ;;  %v591_v3 = vcombine.high %v569_v49, %v569_v49 }
  0xfa   :  { %v337_v57 = vrot.slane %v309_v43, %v9972_v37  ;;  %v313_v63 = vcombine.high %v309_v43, %v309_v43  ;;  %v329_v0 = vrot.slane %v312_v47, %v9972_v37  ;;  %v598_v38 = vrot.slane %v569_v49, %v9972_v37  ;;  %v541_v43 = vld [vmem:[%s12206_s4 + $0x20] sm:$0xff]  ;;  %v542_v47 = vld [vmem:[%s12206_s4 + $0x28] sm:$0xff] }
  0xfb   :  { %v602_v40 = vrot.slane %v583_v51, %v9972_v37  ;;  %v341_v42 = vrot.slane %v311_v53, %v9972_v37  ;;  %v356_v36 = vmul.f32 %v325_v56, %v262_v59  ;;  %v358_v48 = vmul.f32 %v333_v60, %v260_v46  ;;  %v543_v56 = vld [vmem:[%s12206_s4 + $0x30] sm:$0xff] }
  0xfc   :  { %v359_v39 = vmul.f32 %v337_v57, %v261_v58  ;;  %v592_v49 = vcombine.high %v576_v62, %v576_v62  ;;  %v593_v34 = vcombine.high %v583_v51, %v583_v51  ;;  %v614_v53 = vrot.slane %v576_v62, %v9972_v37 }
  0xfd   :  { %v635_v57 = vmul.f32 %v598_v38, %v541_v43 }
  0xfe   :  { %v365_v51 = vadd.f32 %v359_v39, %v358_v48  ;;  %v610_v62 = vrot.slane %v593_v34, %v9972_v37 }
 0x10e   :  { %v7969_v61 = vpop.f32.mrf.mxu0 }
 0x110   :  { %v7970_v4 = vpop.f32.mrf.mxu0  ;;  %v8004_v50 = vpop.f32.mrf.mxu1 }
 0x111   :  { %v7971_v41 = vadd.f32 %v7970_v4, %v7969_v61  ;;  %v354_v61 = vmul.f32 %v317_v45, %v260_v46  ;;  %v355_v45 = vmul.f32 %v321_v54, %v261_v58  ;;  %v618_v54 = vrot.slane %v590_v1, %v9972_v37 }
 0x112   :  { %v8005_v4 = vpop.f32.mrf.mxu1  ;;  %v636_v58 = vmul.f32 %v602_v40, %v542_v47  ;;  %v360_v46 = vmul.f32 %v341_v42, %v262_v59  ;;  %v639_v40 = vmul.f32 %v614_v53, %v541_v43 }
 0x113   :  { %v827_v52 = vcombine.high %v7971_v41, %v7971_v41  ;;  %v834_v44 = vrot.slane %v7971_v41, %v9965_v55  ;;  %v8006_v32 = vadd.f32 %v8005_v4, %v8004_v50  ;;  %v345_v41 = vrot.slane %v313_v63, %v9972_v37  ;;  %v263_v63 = vld [vmem:[%s12206_s4 + $0x18] sm:$0xff] }
 0x114   :  { %v362_v60 = vadd.f32 %v355_v45, %v354_v61  ;;  %v594_v50 = vcombine.high %v590_v1, %v590_v1  ;;  %v640_v22 = vmul.f32 %v618_v54, %v542_v47  ;;  %v544_v61 = vld [vmem:[%s12206_s4 + $0x38] sm:$0xff]  ;;  %v643_v1 = vadd.f32 %v636_v58, %v635_v57 }
 0x115   :  { %v841_v12 = vrot.slane %v827_v52, %v9965_v55  ;;  %v606_v52 = vrot.slane %v591_v3, %v9972_v37  ;;  %v842_v30 = vcombine.high %v834_v44, %v834_v44  ;;  %v622_v3 = vrot.slane %v592_v49, %v9972_v37 }
 0x116   :  { %v1108_v4 = vcombine.high %v8006_v32, %v8006_v32  ;;  %v1115_v26 = vrot.slane %v8006_v32, %v9965_v55  ;;  %v850_v59 = vrot.slane %v834_v44, %v9965_v55  ;;  %v357_v39 = vmul.f32 %v329_v0, %v263_v63 }
 0x117   :  { %v843_v28 = vcombine.high %v841_v12, %v841_v12  ;;  %v637_v38 = vmul.f32 %v606_v52, %v543_v56  ;;  %v857_v42 = vrot.slane %v841_v12, %v9965_v55  ;;  %v864_v34 = vrot.slane %v842_v30, %v9965_v55 }
 0x118   :  { %v361_v32 = vmul.f32 %v345_v41, %v263_v63  ;;  %v363_v48 = vadd.f32 %v362_v60, %v356_v36  ;;  %v366_v49 = vadd.f32 %v365_v51, %v360_v46  ;;  %v626_v43 = vrot.slane %v594_v50, %v9972_v37  ;;  %v823_v41 = vld [vmem:[%s12206_s4 + $0x48] sm:$0xff]  ;;  %v822_v51 = vld [vmem:[%s12206_s4 + $0x40] sm:$0xff] }
 0x119   :  { %v10028_v45 = vrot.slane %v843_v28, %v9965_v55  ;;  %v1122_v44 = vrot.slane %v1108_v4, %v9965_v55  ;;  %v1123_v47 = vcombine.high %v1115_v26, %v1115_v26  ;;  %v638_v53 = vmul.f32 %v610_v62, %v544_v61 }
 0x11a   :  { %v641_v54 = vmul.f32 %v622_v3, %v543_v56  ;;  %v646_v57 = vadd.f32 %v640_v22, %v639_v40  ;;  %v872_v58 = vcombine.high %v850_v59, %v850_v59  ;;  %v644_v12 = vadd.f32 %v643_v1, %v637_v38 }
 0x11b   :  { %v873_v20 = vcombine.high %v857_v42, %v857_v42  ;;  %v883_v30 = vrot.slane %v864_v34, %v9972_v37  ;;  %v899_v28 = vrot.slane %v10028_v45, %v9972_v37  ;;  %v10035_v36 = vadd.f32 %v363_v48, %v357_v39 }
 0x11c   :  { %v879_v46 = vrot.slane %v850_v59, %v9972_v37  ;;  %v1131_v56 = vrot.slane %v1115_v26, %v9965_v55  ;;  %v10042_v60 = vadd.f32 %v366_v49, %v361_v32  ;;  %v895_v50 = vrot.slane %v857_v42, %v9972_v37 }
 0x11d   :  { %v1124_v63 = vcombine.high %v1122_v44, %v1122_v44  ;;  %v1145_v62 = vrot.slane %v1123_v47, %v9965_v55  ;;  %v642_v3 = vmul.f32 %v626_v43, %v544_v61  ;;  %v647_v4 = vadd.f32 %v646_v57, %v641_v54  ;;  %v1103_v57 = vld [vmem:[%s12206_s4 + $0x60] sm:$0xff] }
 0x11e   :  { %v874_v38 = vcombine.high %v864_v34, %v864_v34  ;;  %v887_v40 = vrot.slane %v872_v58, %v9972_v37  ;;  %v645_v59 = vadd.f32 %v644_v12, %v638_v53  ;;  %v903_v26 = vrot.slane %v873_v20, %v9972_v37 }
 0x11f   :  { %v917_v1 = vmul.f32 %v883_v30, %v823_v41  ;;  %v921_v39 = vmul.f32 %v899_v28, %v823_v41  ;;  %v916_v48 = vmul.f32 %v879_v46, %v822_v51  ;;  %v1138_v42 = vrot.slane %v1122_v44, %v9965_v55  ;;  %v1104_v44 = vld [vmem:[%s12206_s4 + $0x68] sm:$0xff] }
 0x120   :  { %v1153_v49 = vcombine.high %v1131_v56, %v1131_v56  ;;  %v920_v61 = vmul.f32 %v895_v50, %v822_v51  ;;  %v1152_v34 = vrot.slane %v1124_v63, %v9965_v55  ;;  %v1160_v43 = vrot.slane %v1131_v56, %v9972_v37  ;;  %v1105_v63 = vld [vmem:[%s12206_s4 + $0x70] sm:$0xff] }
 0x121   :  { %v875_v53 = vcombine.high %v10028_v45, %v10028_v45  ;;  %v891_v20 = vrot.slane %v874_v38, %v9972_v37  ;;  %v924_v30 = vadd.f32 %v917_v1, %v916_v48  ;;  %v1155_v41 = vcombine.high %v1145_v62, %v1145_v62  ;;  %v825_v45 = vld [vmem:[%s12206_s4 + $0x58] sm:$0xff] }
 0x122   :  { %v927_v28 = vadd.f32 %v921_v39, %v920_v61  ;;  %v1154_v46 = vcombine.high %v1138_v42, %v1138_v42  ;;  %v1168_v56 = vrot.slane %v1153_v49, %v9972_v37  ;;  %v1180_v38 = vrot.slane %v1152_v34, %v9972_v37 }
 0x123   :  { %v1156_v1 = vcombine.high %v1152_v34, %v1152_v34  ;;  %v1172_v49 = vrot.slane %v1155_v41, %v9972_v37 }
 0x124   :  { %v1199_v61 = vmul.f32 %v1168_v56, %v1105_v63 }
 0x12f   :  { %v8039_v24 = vpop.f32.mrf.mxu0 }
 0x131   :  { %v8040_v52 = vpop.f32.mrf.mxu0 }
 0x132   :  { %v8074_v0 = vpop.f32.mrf.mxu1  ;;  %v8041_v22 = vadd.f32 %v8040_v52, %v8039_v24  ;;  %v824_v24 = vld [vmem:[%s12206_s4 + $0x50] sm:$0xff]  ;;  %v1164_v52 = vrot.slane %v1145_v62, %v9972_v37  ;;  %v1197_v62 = vmul.f32 %v1160_v43, %v1103_v57  ;;  %v1106_v43 = vld [vmem:[%s12206_s4 + $0x78] sm:$0xff] }
 0x133   :  { %v918_v54 = vmul.f32 %v887_v40, %v824_v24  ;;  %v922_v12 = vmul.f32 %v903_v26, %v824_v24  ;;  %v648_v24 = vadd.f32 %v647_v4, %v642_v3  ;;  %v907_v26 = vrot.slane %v875_v53, %v9972_v37 }
 0x134   :  { %v8075_v32 = vpop.f32.mrf.mxu1  ;;  %v1389_v47 = vcombine.high %v8041_v22, %v8041_v22  ;;  %v1396_v51 = vrot.slane %v8041_v22, %v9965_v55  ;;  %v1198_v40 = vmul.f32 %v1164_v52, %v1104_v44  ;;  %v1202_v4 = vmul.f32 %v1180_v38, %v1104_v44 }
 0x135   :  { %v8076_v58 = vadd.f32 %v8075_v32, %v8074_v0  ;;  %v1176_v0 = vrot.slane %v1138_v42, %v9972_v37  ;;  %v919_v32 = vmul.f32 %v891_v20, %v825_v45  ;;  %v925_v48 = vadd.f32 %v924_v30, %v918_v54 }
 0x136   :  { %v1403_v50 = vrot.slane %v1389_v47, %v9965_v55  ;;  %v928_v22 = vadd.f32 %v927_v28, %v922_v12  ;;  %v1184_v47 = vrot.slane %v1154_v46, %v9972_v37  ;;  %v1404_v18 = vcombine.high %v1396_v51, %v1396_v51 }
 0x137   :  { %v1670_v39 = vcombine.high %v8076_v58, %v8076_v58  ;;  %v1201_v3 = vmul.f32 %v1176_v0, %v1103_v57  ;;  %v1205_v52 = vadd.f32 %v1198_v40, %v1197_v62  ;;  %v1677_v34 = vrot.slane %v8076_v58, %v9965_v55 }
 0x138   :  { %v1405_v16 = vcombine.high %v1403_v50, %v1403_v50  ;;  %v923_v53 = vmul.f32 %v907_v26, %v825_v45  ;;  %v1188_v20 = vrot.slane %v1156_v1, %v9972_v37  ;;  %v1412_v54 = vrot.slane %v1396_v51, %v9965_v55 }
 0x139   :  { %v1684_v12 = vrot.slane %v1670_v39, %v9965_v55  ;;  %v649_v30 = vadd.f32 %v645_v59, %v10035_v36  ;;  %v926_v28 = vadd.f32 %v925_v48, %v919_v32  ;;  %v1419_v41 = vrot.slane %v1403_v50, %v9965_v55 }
 0x13a   :  { %v929_v46 = vadd.f32 %v928_v22, %v923_v53  ;;  %v1200_v56 = vmul.f32 %v1172_v49, %v1106_v43  ;;  %v1426_v57 = vrot.slane %v1404_v18, %v9965_v55  ;;  %v1433_v44 = vrot.slane %v1405_v16, %v9965_v55  ;;  %v1384_v16 = vld [vmem:[%s12206_s4 + $0x80] sm:$0xff] }
 0x13b   :  { %v1203_v58 = vmul.f32 %v1184_v47, %v1105_v63  ;;  %v1206_v45 = vadd.f32 %v1205_v52, %v1199_v61  ;;  %v1208_v38 = vadd.f32 %v1202_v4, %v1201_v3  ;;  %v1685_v62 = vcombine.high %v1677_v34, %v1677_v34 }
 0x13c   :  { %v10092_v40 = vmul.f32 %v1188_v20, %v1106_v43  ;;  %v1434_v51 = vcombine.high %v1412_v54, %v1412_v54  ;;  %v1686_v26 = vcombine.high %v1684_v12, %v1684_v12  ;;  %v650_v36 = vadd.f32 %v648_v24, %v10042_v60  ;;  %v1385_v24 = vld [vmem:[%s12206_s4 + $0x88] sm:$0xff] }
 0x13d   :  { %v1435_v59 = vcombine.high %v1419_v41, %v1419_v41  ;;  %v1441_v50 = vrot.slane %v1412_v54, %v9972_v37  ;;  %v10096_v32 = vadd.f32 %v926_v28, %v649_v30  ;;  %v1436_v18 = vcombine.high %v1426_v57, %v1426_v57  ;;  %v1386_v30 = vld [vmem:[%s12206_s4 + $0x90] sm:$0xff] }
 0x13e   :  { %v1445_v63 = vrot.slane %v1426_v57, %v9972_v37  ;;  %v1461_v48 = vrot.slane %v1433_v44, %v9972_v37  ;;  %v1693_v22 = vrot.slane %v1677_v34, %v9965_v55  ;;  %v10104_v49 = vadd.f32 %v1206_v45, %v1200_v56  ;;  %v1665_v45 = vld [vmem:[%s12206_s4 + $0xa0] sm:$0xff] }
 0x13f   :  { %v1209_v60 = vadd.f32 %v1208_v38, %v1203_v58  ;;  %v1707_v47 = vrot.slane %v1685_v62, %v9965_v55  ;;  %v10110_v61 = vadd.f32 %v929_v46, %v650_v36  ;;  %v1457_v43 = vrot.slane %v1419_v41, %v9972_v37  ;;  %v1666_v38 = vld [vmem:[%s12206_s4 + $0xa8] sm:$0xff] }
 0x140   :  { %v1700_v3 = vrot.slane %v1684_v12, %v9965_v55  ;;  %v1714_v4 = vrot.slane %v1686_v26, %v9965_v55  ;;  %v1437_v34 = vcombine.high %v1433_v44, %v1433_v44  ;;  %v1465_v53 = vrot.slane %v1435_v59, %v9972_v37 }
 0x141   :  { %v1478_v20 = vmul.f32 %v1441_v50, %v1384_v16  ;;  %v1453_v28 = vrot.slane %v1436_v18, %v9972_v37  ;;  %v1479_v46 = vmul.f32 %v1445_v63, %v1385_v24  ;;  %v1483_v56 = vmul.f32 %v1461_v48, %v1385_v24 }
 0x142   :  { %v1715_v57 = vcombine.high %v1693_v22, %v1693_v22  ;;  %v1722_v41 = vrot.slane %v1693_v22, %v9972_v37  ;;  %v1726_v12 = vrot.slane %v1707_v47, %v9972_v37  ;;  %v1482_v58 = vmul.f32 %v1457_v43, %v1384_v16 }
 0x143   :  { %v1716_v62 = vcombine.high %v1700_v3, %v1700_v3  ;;  %v1742_v26 = vrot.slane %v1714_v4, %v9972_v37  ;;  %v1469_v36 = vrot.slane %v1437_v34, %v9972_v37  ;;  %v1484_v50 = vmul.f32 %v1465_v53, %v1386_v30 }
 0x144   :  { %v1486_v16 = vadd.f32 %v1479_v46, %v1478_v20  ;;  %v1489_v18 = vadd.f32 %v1483_v56, %v1482_v58  ;;  %v1717_v63 = vcombine.high %v1707_v47, %v1707_v47  ;;  %v1730_v48 = vrot.slane %v1715_v57, %v9972_v37 }
 0x145   :  { %v1759_v22 = vmul.f32 %v1722_v41, %v1665_v45  ;;  %v1760_v24 = vmul.f32 %v1726_v12, %v1666_v38  ;;  %v1746_v34 = vrot.slane %v1716_v62, %v9972_v37  ;;  %v1210_v47 = vadd.f32 %v1209_v60, %v10092_v40 }
 0x146   :  { %v1490_v57 = vadd.f32 %v1489_v18, %v1484_v50  ;;  %v1734_v41 = vrot.slane %v1717_v63, %v9972_v37 }
 0x147   :  { %v1767_v58 = vadd.f32 %v1760_v24, %v1759_v22  ;;  %v1946_v24 = vld [vmem:[%s12206_s4 + $0xc0] sm:$0xff] }
 0x151   :  { %v8109_v42 = vpop.f32.mrf.mxu0 }
 0x153   :  { %v8110_v0 = vpop.f32.mrf.mxu0 }
 0x154   :  { %v8144_v1 = vpop.f32.mrf.mxu1  ;;  %v8111_v39 = vadd.f32 %v8110_v0, %v8109_v42  ;;  %v1449_v42 = vrot.slane %v1434_v51, %v9972_v37  ;;  %v1738_v51 = vrot.slane %v1700_v3, %v9972_v37 }
 0x156   :  { %v8145_v52 = vpop.f32.mrf.mxu1  ;;  %v1951_v54 = vcombine.high %v8111_v39, %v8111_v39  ;;  %v1958_v0 = vrot.slane %v8111_v39, %v9965_v55  ;;  %v1480_v59 = vmul.f32 %v1449_v42, %v1386_v30  ;;  %v1387_v39 = vld [vmem:[%s12206_s4 + $0x98] sm:$0xff]  ;;  %v1667_v42 = vld [vmem:[%s12206_s4 + $0xb0] sm:$0xff]  ;;  %v1763_v53 = vmul.f32 %v1738_v51, %v1665_v45 }
 0x157   :  { %v8146_v44 = vadd.f32 %v8145_v52, %v8144_v1  ;;  %v1718_v52 = vcombine.high %v1714_v4, %v1714_v4  ;;  %v1481_v30 = vmul.f32 %v1453_v28, %v1387_v39  ;;  %v1485_v46 = vmul.f32 %v1469_v36, %v1387_v39  ;;  %v1668_v28 = vld [vmem:[%s12206_s4 + $0xb8] sm:$0xff] }
 0x158   :  { %v1965_v1 = vrot.slane %v1951_v54, %v9965_v55  ;;  %v1966_v43 = vcombine.high %v1958_v0, %v1958_v0  ;;  %v1764_v54 = vmul.f32 %v1742_v26, %v1666_v38  ;;  %v1487_v56 = vadd.f32 %v1486_v16, %v1480_v59 }
 0x159   :  { %v2232_v3 = vcombine.high %v8146_v44, %v8146_v44  ;;  %v2239_v20 = vrot.slane %v8146_v44, %v9965_v55  ;;  %v1761_v12 = vmul.f32 %v1730_v48, %v1667_v42  ;;  %v1750_v45 = vrot.slane %v1718_v52, %v9972_v37 }
 0x15a   :  { %v1967_v14 = vcombine.high %v1965_v1, %v1965_v1  ;;  %v1988_v11 = vrot.slane %v1966_v43, %v9965_v55  ;;  %v1765_v44 = vmul.f32 %v1746_v34, %v1667_v42  ;;  %v1770_v38 = vadd.f32 %v1764_v54, %v1763_v53 }
 0x15b   :  { %v2246_v4 = vrot.slane %v2232_v3, %v9965_v55  ;;  %v1974_v40 = vrot.slane %v1958_v0, %v9965_v55  ;;  %v2247_v62 = vcombine.high %v2239_v20, %v2239_v20  ;;  %v1211_v51 = vadd.f32 %v10104_v49, %v10096_v32  ;;  %v1947_v0 = vld [vmem:[%s12206_s4 + $0xc8] sm:$0xff] }
 0x15c   :  { %v1995_v60 = vrot.slane %v1967_v14, %v9965_v55  ;;  %v1981_v26 = vrot.slane %v1965_v1, %v9965_v55  ;;  %v1212_v36 = vadd.f32 %v1210_v47, %v10110_v61  ;;  %v1488_v59 = vadd.f32 %v1487_v56, %v1481_v30 }
 0x15d   :  { %v1491_v50 = vadd.f32 %v1490_v57, %v1485_v46  ;;  %v1762_v39 = vmul.f32 %v1734_v41, %v1668_v28  ;;  %v1768_v16 = vadd.f32 %v1767_v58, %v1761_v12  ;;  %v2007_v18 = vrot.slane %v1988_v11, %v9972_v37  ;;  %v1948_v57 = vld [vmem:[%s12206_s4 + $0xd0] sm:$0xff] }
 0x15e   :  { %v2248_v63 = vcombine.high %v2246_v4, %v2246_v4  ;;  %v1996_v14 = vcombine.high %v1974_v40, %v1974_v40  ;;  %v2255_v48 = vrot.slane %v2239_v20, %v9965_v55  ;;  %v1766_v22 = vmul.f32 %v1750_v45, %v1668_v28 }
 0x15f   :  { %v1771_v32 = vadd.f32 %v1770_v38, %v1765_v44  ;;  %v2003_v49 = vrot.slane %v1974_v40, %v9972_v37  ;;  %v2023_v61 = vrot.slane %v1995_v60, %v9972_v37  ;;  %v2269_v1 = vrot.slane %v2247_v62, %v9965_v55  ;;  %v2228_v38 = vld [vmem:[%s12206_s4 + $0xe8] sm:$0xff] }
 0x160   :  { %v1997_v43 = vcombine.high %v1981_v26, %v1981_v26  ;;  %v2019_v3 = vrot.slane %v1981_v26, %v9972_v37  ;;  %v1492_v42 = vadd.f32 %v1488_v59, %v1211_v51  ;;  %v1493_v52 = vadd.f32 %v1491_v50, %v1212_v36 }
 0x161   :  { %v2041_v34 = vmul.f32 %v2007_v18, %v1947_v0  ;;  %v2262_v53 = vrot.slane %v2246_v4, %v9965_v55  ;;  %v2276_v54 = vrot.slane %v2248_v63, %v9965_v55  ;;  %v1769_v30 = vadd.f32 %v1768_v16, %v1762_v39  ;;  %v2229_v63 = vld [vmem:[%s12206_s4 + $0xf0] sm:$0xff] }
 0x162   :  { %v1998_v20 = vcombine.high %v1988_v11, %v1988_v11  ;;  %v2011_v47 = vrot.slane %v1996_v14, %v9972_v37  ;;  %v2277_v46 = vcombine.high %v2255_v48, %v2255_v48  ;;  %v1772_v56 = vadd.f32 %v1771_v32, %v1766_v22  ;;  %v2227_v11 = vld [vmem:[%s12206_s4 + $0xe0] sm:$0xff] }
 0x163   :  { %v2040_v41 = vmul.f32 %v2003_v49, %v1946_v24  ;;  %v2045_v12 = vmul.f32 %v2023_v61, %v1947_v0  ;;  %v2284_v58 = vrot.slane %v2255_v48, %v9972_v37  ;;  %v2288_v28 = vrot.slane %v2269_v1, %v9972_v37 }
 0x164   :  { %v1999_v45 = vcombine.high %v1995_v60, %v1995_v60  ;;  %v2027_v4 = vrot.slane %v1997_v43, %v9972_v37  ;;  %v2044_v44 = vmul.f32 %v2019_v3, %v1946_v24  ;;  %v2279_v40 = vcombine.high %v2269_v1, %v2269_v1  ;;  %v1949_v24 = vld [vmem:[%s12206_s4 + $0xd8] sm:$0xff] }
 0x165   :  { %v2048_v62 = vadd.f32 %v2041_v34, %v2040_v41  ;;  %v2278_v51 = vcombine.high %v2262_v53, %v2262_v53  ;;  %v2300_v26 = vrot.slane %v2262_v53, %v9972_v37  ;;  %v2304_v36 = vrot.slane %v2276_v54, %v9972_v37 }
 0x166   :  { %v2015_v60 = vrot.slane %v1998_v20, %v9972_v37  ;;  %v2042_v50 = vmul.f32 %v2011_v47, %v1948_v57  ;;  %v2292_v39 = vrot.slane %v2277_v46, %v9972_v37  ;;  %v1773_v16 = vadd.f32 %v1769_v30, %v1492_v42  ;;  %v2230_v47 = vld [vmem:[%s12206_s4 + $0xf8] sm:$0xff] }
 0x167   :  { %v2051_v18 = vadd.f32 %v2045_v12, %v2044_v44  ;;  %v2280_v0 = vcombine.high %v2276_v54, %v2276_v54  ;;  %v2321_v14 = vmul.f32 %v2284_v58, %v2227_v11  ;;  %v2322_v48 = vmul.f32 %v2288_v28, %v2228_v38 }
 0x168   :  { %v2031_v32 = vrot.slane %v1999_v45, %v9972_v37  ;;  %v2046_v49 = vmul.f32 %v2027_v4, %v1948_v57  ;;  %v2296_v61 = vrot.slane %v2279_v40, %v9972_v37  ;;  %v2308_v43 = vrot.slane %v2278_v51, %v9972_v37 }
 0x169   :  { %v2325_v3 = vmul.f32 %v2300_v26, %v2227_v11  ;;  %v2326_v42 = vmul.f32 %v2304_v36, %v2228_v38  ;;  %v2049_v34 = vadd.f32 %v2048_v62, %v2042_v50  ;;  %v2323_v53 = vmul.f32 %v2292_v39, %v2229_v63  ;;  %v2509_v36 = vld [vmem:[%s12206_s4 + $0x108] sm:$0xff] }
 0x16a   :  { %v1774_v20 = vadd.f32 %v1772_v56, %v1493_v52  ;;  %v2329_v46 = vadd.f32 %v2322_v48, %v2321_v14  ;;  %v2043_v57 = vmul.f32 %v2015_v60, %v1949_v24  ;;  %v2052_v41 = vadd.f32 %v2051_v18, %v2046_v49  ;;  %v2508_v52 = vld [vmem:[%s12206_s4 + $0x100] sm:$0xff] }
 0x16b   :  { %v2312_v12 = vrot.slane %v2280_v0, %v9972_v37  ;;  %v2047_v4 = vmul.f32 %v2031_v32, %v1949_v24  ;;  %v2324_v11 = vmul.f32 %v2296_v61, %v2230_v47  ;;  %v2327_v38 = vmul.f32 %v2308_v43, %v2229_v63  ;;  %v2510_v61 = vld [vmem:[%s12206_s4 + $0x110] sm:$0xff] }
 0x16c   :  { %v2050_v44 = vadd.f32 %v2049_v34, %v2043_v57  ;;  %v2332_v40 = vadd.f32 %v2326_v42, %v2325_v3  ;;  %v2330_v39 = vadd.f32 %v2329_v46, %v2323_v53 }
 0x16d   :  { %v2053_v60 = vadd.f32 %v2052_v41, %v2047_v4  ;;  %v2328_v50 = vmul.f32 %v2312_v12, %v2230_v47 }
 0x16e   :  { %v2333_v49 = vadd.f32 %v2332_v40, %v2327_v38  ;;  %v2054_v34 = vadd.f32 %v2050_v44, %v1773_v16  ;;  %v2331_v53 = vadd.f32 %v2330_v39, %v2324_v11 }
 0x16f   :  { %v2055_v12 = vadd.f32 %v2053_v60, %v1774_v20  ;;  %v6544_v60 = vld [vmem:[%s12210_s8 + $0x8] sm:$0xff] }
 0x170   :  { %v2335_v40 = vadd.f32 %v2331_v53, %v2054_v34 }
 0x173   :  { %v8179_v59 = vpop.f32.mrf.mxu0 }
 0x175   :  { %v8180_v22 = vpop.f32.mrf.mxu0 }
 0x176   :  { %v8181_v1 = vadd.f32 %v8180_v22, %v8179_v59 }
 0x178   :  { %v2513_v54 = vcombine.high %v8181_v1, %v8181_v1  ;;  %v2520_v30 = vrot.slane %v8181_v1, %v9965_v55 }
 0x17a   :  { %v2527_v58 = vrot.slane %v2513_v54, %v9965_v55  ;;  %v2528_v28 = vcombine.high %v2520_v30, %v2520_v30  ;;  %v2536_v45 = vrot.slane %v2520_v30, %v9965_v55  ;;  %v2511_v54 = vld [vmem:[%s12206_s4 + $0x118] sm:$0xff] }
 0x17c   :  { %v2529_v56 = vcombine.high %v2527_v58, %v2527_v58  ;;  %v2543_v62 = vrot.slane %v2527_v58, %v9965_v55  ;;  %v2550_v51 = vrot.slane %v2528_v28, %v9965_v55  ;;  %v2558_v26 = vcombine.high %v2536_v45, %v2536_v45 }
 0x17d   :  { %v2565_v59 = vrot.slane %v2536_v45, %v9972_v37  ;;  %v2334_v58 = vadd.f32 %v2333_v49, %v2328_v50  ;;  %v10243_v50 = vld [vmem:[%s12204_s2] ss:$0 sm:$0xff] }
 0x17e   :  { %v2557_v18 = vrot.slane %v2529_v56, %v9965_v55  ;;  %v2559_v63 = vcombine.high %v2543_v62, %v2543_v62  ;;  %v2560_v0 = vcombine.high %v2550_v51, %v2550_v51  ;;  %v2569_v14 = vrot.slane %v2550_v51, %v9972_v37 }
 0x17f   :  { %v2573_v48 = vrot.slane %v2558_v26, %v9972_v37  ;;  %v2581_v22 = vrot.slane %v2543_v62, %v9972_v37  ;;  %v2602_v32 = vmul.f32 %v2565_v59, %v2508_v52  ;;  %v2336_v56 = vadd.f32 %v2334_v58, %v2055_v12  ;;  %v6545_v12 = vld [vmem:[%s12210_s8 + $0x10] sm:$0xff]  ;;  %v6546_v58 = vld [vmem:[%s12210_s8 + $0x18] sm:$0xff] }
 0x180   :  { %v2561_v1 = vcombine.high %v2557_v18, %v2557_v18  ;;  %v2585_v24 = vrot.slane %v2557_v18, %v9972_v37  ;;  %v2589_v43 = vrot.slane %v2559_v63, %v9972_v37  ;;  %v2603_v3 = vmul.f32 %v2569_v14, %v2509_v36  ;;  %v10248_v18 = vld [vmem:[%s12204_s2 + $0x1] ss:$0 sm:$0xff] }
 0x181   :  { %v2606_v42 = vmul.f32 %v2581_v22, %v2508_v52  ;;  %v2577_v30 = vrot.slane %v2560_v0, %v9972_v37  ;;  %v2604_v46 = vmul.f32 %v2573_v48, %v2510_v61  ;;  %v2622_v52 = vpop.permute.xlu0 %2621  ;;  %vm2686_vm0 = vcmp.eq.s32.totalorder %v8952_v6, %v10243_v50 }
 0x182   :  { %v2593_v47 = vrot.slane %v2561_v1, %v9972_v37  ;;  %v2607_v57 = vmul.f32 %v2585_v24, %v2509_v36  ;;  %v2610_v41 = vadd.f32 %v2603_v3, %v2602_v32  ;;  %v2608_v45 = vmul.f32 %v2589_v43, %v2510_v61 }
 0x183   :  { %v2605_v28 = vmul.f32 %v2577_v30, %v2511_v54  ;;  %vm3034_vm1 = vcmp.eq.s32.totalorder %v8952_v6, %v10248_v18  ;;  %vm2685_vm2 = vcmp.eq.s32.totalorder %v8958_v8, %v10243_v50  ;;  %vm3033_vm3 = vcmp.eq.s32.totalorder %v8958_v8, %v10248_v18 }
 0x184   :  { %v2611_v4 = vadd.f32 %v2610_v41, %v2604_v46  ;;  %v2613_v38 = vadd.f32 %v2607_v57, %v2606_v42  ;;  %v2609_v16 = vmul.f32 %v2593_v47, %v2511_v54  ;;  %v12263_v63 = vmov 1.0   ;;  %v2626_v42 = vld [vmem:[%s12212_s10] sm:$0xff] }
 0x185   :  { %8484 = vmatprep.subr.msk.mxu1 %vm2686_vm0, %v12263_v63  ;;  %8519 = vmatprep.subr.msk.mxu0 %vm3034_vm1, %v12263_v63  ;;  %vm2684_vm4 = vcmp.eq.s32.totalorder %v8964_v10, %v10243_v50  ;;  %vm3032_vm5 = vcmp.eq.s32.totalorder %v8964_v10, %v10248_v18  ;;  %vm2683_vm6 = vcmp.eq.s32.totalorder %v8986_v13, %v10243_v50  ;;  %v2627_v54 = vld [vmem:[%s12213_s11] sm:$0xff] }
 0x186   :  { %v2612_v44 = vadd.f32 %v2611_v4, %v2605_v28  ;;  %v2614_v11 = vadd.f32 %v2613_v38, %v2608_v45  ;;  %8485 = vmatpush3.msk.msra.mxu1 %vm2686_vm0, %v12263_v63  ;;  %8520 = vmatpush3.msk.msra.mxu0 %vm3034_vm1, %v12263_v63  ;;  %vm3031_vm7 = vcmp.eq.s32.totalorder %v8986_v13, %v10248_v18  ;;  %v10382_v46 = vld [vmem:[%s12204_s2 + $0x2] ss:$0 sm:$0xff]  ;;  %v10387_v57 = vld [vmem:[%s12204_s2 + $0x3] ss:$0 sm:$0xff] }
 0x187   :  { %8486 = vmatprep.subr.msk.mxu1 %vm2685_vm2, %v12263_v63  ;;  %8521 = vmatprep.subr.msk.mxu0 %vm3033_vm3, %v12263_v63  ;;  %vm2682_vm8 = vcmp.eq.s32.totalorder %v9006_v15, %v10243_v50  ;;  %vm3030_vm9 = vcmp.eq.s32.totalorder %v9006_v15, %v10248_v18  ;;  %vm2681_vm10 = vcmp.eq.s32.totalorder %v9024_v17, %v10243_v50  ;;  %v6543_v41 = vld [vmem:[%s12210_s8] sm:$0xff] }
 0x188   :  { %v2615_v62 = vadd.f32 %v2614_v11, %v2609_v16  ;;  %v2616_v51 = vadd.f32 %v2612_v44, %v2335_v40  ;;  %8487 = vmatpush3.msk.msra.mxu1 %vm2685_vm2, %v12263_v63  ;;  %8522 = vmatpush3.msk.msra.mxu0 %vm3033_vm3, %v12263_v63  ;;  %vm3029_vm11 = vcmp.eq.s32.totalorder %v9024_v17, %v10248_v18  ;;  %v5798_v28 = vld [vmem:[%s12209_s7] sm:$0xff] }
 0x189   :  { %8488 = vmatprep.subr.msk.mxu1 %vm2684_vm4, %v12263_v63  ;;  %8523 = vmatprep.subr.msk.mxu0 %vm3032_vm5, %v12263_v63  ;;  %vm2680_vm12 = vcmp.eq.s32.totalorder %v9042_v19, %v10243_v50  ;;  %vm3028_vm13 = vcmp.eq.s32.totalorder %v9042_v19, %v10248_v18  ;;  %vm2679_vm14 = vcmp.eq.s32.totalorder %v9060_v21, %v10243_v50  ;;  %v6621_v45 = vld [vmem:[%s12211_s9] sm:$0xff] }
 0x18a   :  { %v2617_v26 = vadd.f32 %v2615_v62, %v2336_v56  ;;  %v10227_v59 = vadd.f32 %v2622_v52, %v2616_v51  ;;  %8489 = vmatpush3.msk.msra.mxu1 %vm2684_vm4, %v12263_v63  ;;  %8524 = vmatpush3.msk.msra.mxu0 %vm3032_vm5, %v12263_v63  ;;  %vm3027_vm15 = vcmp.eq.s32.totalorder %v9060_v21, %v10248_v18  ;;  %v10556_v62 = vld [vmem:[%s12204_s2 + $0x4] ss:$0 sm:$0xff]  ;;  %v10561_v51 = vld [vmem:[%s12204_s2 + $0x5] ss:$0 sm:$0xff] }
 0x18b   :  { %8490 = vmatprep.subr.msk.mxu1 %vm2683_vm6, %v12263_v63  ;;  %8525 = vmatprep.subr.msk.mxu0 %vm3031_vm7, %v12263_v63  ;;  %vm2678_vm0 = vcmp.eq.s32.totalorder %v9078_v23, %v10243_v50  ;;  %vm3026_vm1 = vcmp.eq.s32.totalorder %v9078_v23, %v10248_v18  ;;  %vm2677_vm2 = vcmp.eq.s32.totalorder %v9096_v25, %v10243_v50 }
 0x18c   :  { %v10229_v39 = vadd.f32 %v2622_v52, %v2617_v26  ;;  %2628 = vadd.xlane.f32.xlu0 %v10227_v59  ;;  %v2633_v20 = vmul.f32 %v10227_v59, %v10227_v59  ;;  %8491 = vmatpush3.msk.msra.mxu1 %vm2683_vm6, %v12263_v63  ;;  %vm3025_vm3 = vcmp.eq.s32.totalorder %v9096_v25, %v10248_v18  ;;  %v10698_v26 = vld [vmem:[%s12204_s2 + $0x6] ss:$0 sm:$0xff] }
 0x18d   :  { %8526 = vmatpush3.msk.msra.mxu0 %vm3031_vm7, %v12263_v63  ;;  %8492 = vmatprep.subr.msk.mxu1 %vm2682_vm8, %v12263_v63  ;;  %vm2676_vm4 = vcmp.eq.s32.totalorder %v9114_v27, %v10243_v50  ;;  %vm3024_vm5 = vcmp.eq.s32.totalorder %v9114_v27, %v10248_v18  ;;  %vm2675_vm6 = vcmp.eq.s32.totalorder %v9132_v29, %v10243_v50 }
 0x18e   :  { %2630 = vadd.xlane.f32.xlu1 %v10229_v39  ;;  %v2634_v36 = vmul.f32 %v10229_v39, %v10229_v39  ;;  %8527 = vmatprep.subr.msk.mxu0 %vm3030_vm9, %v12263_v63  ;;  %vm3023_vm7 = vcmp.eq.s32.totalorder %v9132_v29, %v10248_v18 }
 0x18f   :  { %8493 = vmatpush3.msk.msra.mxu1 %vm2682_vm8, %v12263_v63  ;;  %8528 = vmatpush3.msk.msra.mxu0 %vm3030_vm9, %v12263_v63  ;;  %vm2674_vm8 = vcmp.eq.s32.totalorder %v9150_v31, %v10243_v50  ;;  %vm3022_vm9 = vcmp.eq.s32.totalorder %v9150_v31, %v10248_v18 }
 0x190   :  { %8494 = vmatprep.subr.msk.mxu1 %vm2681_vm10, %v12263_v63  ;;  %8529 = vmatprep.subr.msk.mxu0 %vm3029_vm11, %v12263_v63 }
 0x191   :  { %8495 = vmatpush3.msk.msra.mxu1 %vm2681_vm10, %v12263_v63  ;;  %8530 = vmatpush3.msk.msra.mxu0 %vm3029_vm11, %v12263_v63  ;;  %vm2673_vm10 = vcmp.eq.s32.totalorder %v9168_v33, %v10243_v50  ;;  %vm3021_vm11 = vcmp.eq.s32.totalorder %v9168_v33, %v10248_v18 }
 0x192   :  { %2635 = vadd.xlane.f32.xlu1 %v2633_v20  ;;  %8496 = vmatprep.subr.msk.mxu1 %vm2680_vm12, %v12263_v63  ;;  %v10847_v20 = vld [vmem:[%s12205_s3 + $0x1] ss:$0 sm:$0xff] }
 0x193   :  { %8531 = vmatprep.subr.msk.mxu0 %vm3028_vm13, %v12263_v63  ;;  %8497 = vmatpush3.msk.msra.mxu1 %vm2680_vm12, %v12263_v63  ;;  %vm2672_vm12 = vcmp.eq.s32.totalorder %v9186_v35, %v10243_v50 }
 0x194   :  { %8532 = vmatpush3.msk.msra.mxu0 %vm3028_vm13, %v12263_v63  ;;  %8498 = vmatprep.subr.msk.mxu1 %vm2679_vm14, %v12263_v63  ;;  %vm3020_vm13 = vcmp.eq.s32.totalorder %v9186_v35, %v10248_v18 }
 0x195   :  { %8533 = vmatprep.subr.msk.mxu0 %vm3027_vm15, %v12263_v63  ;;  %8499 = vmatpush3.msk.msra.mxu1 %vm2679_vm14, %v12263_v63  ;;  %vm2671_vm14 = vcmp.eq.s32.totalorder %v8936_v2, %v10243_v50  ;;  %v12266_v50 = vld [vmem:[#allocation7_spill] sm:$0xff] }
 0x196   :  { %2637 = vadd.xlane.f32.xlu1 %v2634_v36  ;;  %8534 = vmatpush3.msk.msra.mxu0 %vm3027_vm15, %v12263_v63  ;;  %vm3019_vm15 = vcmp.eq.s32.totalorder %v8936_v2, %v10248_v18  ;;  %v12264_v36 = vld [vmem:[#allocation5_spill] sm:$0xff]  ;;  %v12267_v18 = vld [vmem:[#allocation8_spill] sm:$0xff] }
 0x197   :  { %8500 = vmatprep.subr.msk.mxu1 %vm2678_vm0, %v12263_v63  ;;  %8535 = vmatprep.subr.msk.mxu0 %vm3026_vm1, %v12263_v63 }
 0x198   :  { %8501 = vmatpush3.msk.msra.mxu1 %vm2678_vm0, %v12263_v63  ;;  %8536 = vmatpush3.msk.msra.mxu0 %vm3026_vm1, %v12263_v63  ;;  %vm3382_vm0 = vcmp.eq.s32.totalorder %v8952_v6, %v10382_v46  ;;  %vm3730_vm1 = vcmp.eq.s32.totalorder %v8952_v6, %v10387_v57 }
 0x199   :  { %8502 = vmatprep.subr.msk.mxu1 %vm2677_vm2, %v12263_v63  ;;  %8537 = vmatprep.subr.msk.mxu0 %vm3025_vm3, %v12263_v63 }
 0x19a   :  { %8503 = vmatpush3.msk.msra.mxu1 %vm2677_vm2, %v12263_v63  ;;  %8538 = vmatpush3.msk.msra.mxu0 %vm3025_vm3, %v12263_v63  ;;  %vm3381_vm2 = vcmp.eq.s32.totalorder %v8958_v8, %v10382_v46  ;;  %vm3729_vm3 = vcmp.eq.s32.totalorder %v8958_v8, %v10387_v57 }
 0x19b   :  { %8504 = vmatprep.subr.msk.mxu1 %vm2676_vm4, %v12263_v63  ;;  %8539 = vmatprep.subr.msk.mxu0 %vm3024_vm5, %v12263_v63 }
 0x19c   :  { %8505 = vmatpush3.msk.msra.mxu1 %vm2676_vm4, %v12263_v63  ;;  %8540 = vmatpush3.msk.msra.mxu0 %vm3024_vm5, %v12263_v63  ;;  %vm3380_vm4 = vcmp.eq.s32.totalorder %v8964_v10, %v10382_v46  ;;  %vm3728_vm5 = vcmp.eq.s32.totalorder %v8964_v10, %v10387_v57 }
 0x19d   :  { %8506 = vmatprep.subr.msk.mxu1 %vm2675_vm6, %v12263_v63  ;;  %8541 = vmatprep.subr.msk.mxu0 %vm3023_vm7, %v12263_v63 }
 0x19e   :  { %8507 = vmatpush3.msk.msra.mxu1 %vm2675_vm6, %v12263_v63  ;;  %8542 = vmatpush3.msk.msra.mxu0 %vm3023_vm7, %v12263_v63  ;;  %vm3379_vm6 = vcmp.eq.s32.totalorder %v8986_v13, %v10382_v46  ;;  %vm3727_vm7 = vcmp.eq.s32.totalorder %v8986_v13, %v10387_v57 }
 0x19f   :  { %8508 = vmatprep.subr.msk.mxu1 %vm2674_vm8, %v12263_v63  ;;  %8543 = vmatprep.subr.msk.mxu0 %vm3022_vm9, %v12263_v63 }
 0x1a0   :  { %8509 = vmatpush3.msk.msra.mxu1 %vm2674_vm8, %v12263_v63  ;;  %8544 = vmatpush3.msk.msra.mxu0 %vm3022_vm9, %v12263_v63  ;;  %vm3378_vm8 = vcmp.eq.s32.totalorder %v9006_v15, %v10382_v46  ;;  %vm3726_vm9 = vcmp.eq.s32.totalorder %v9006_v15, %v10387_v57 }
 0x1a1   :  { %8510 = vmatprep.subr.msk.mxu1 %vm2673_vm10, %v12263_v63  ;;  %8545 = vmatprep.subr.msk.mxu0 %vm3021_vm11, %v12263_v63 }
 0x1a2   :  { %6594 = vperm.xlu0 %8805, %v6544_v60   ;;  %8511 = vmatpush3.msk.msra.mxu1 %vm2673_vm10, %v12263_v63  ;;  %vm3377_vm10 = vcmp.eq.s32.totalorder %v9024_v17, %v10382_v46  ;;  %v12265_v60 = vld [vmem:[#allocation6_spill] sm:$0xff] }
 0x1a3   :  { %8546 = vmatpush3.msk.msra.mxu0 %vm3021_vm11, %v12263_v63  ;;  %8512 = vmatprep.subr.msk.mxu1 %vm2672_vm12, %v12263_v63  ;;  %vm3725_vm11 = vcmp.eq.s32.totalorder %v9024_v17, %v10387_v57 }
 0x1a4   :  { %8547 = vmatprep.subr.msk.mxu0 %vm3020_vm13, %v12263_v63  ;;  %8513 = vmatpush3.msk.msra.mxu1 %vm2672_vm12, %v12263_v63  ;;  %vm3376_vm12 = vcmp.eq.s32.totalorder %v9042_v19, %v10382_v46 }
 0x1a5   :  { %8548 = vmatpush3.msk.msra.mxu0 %vm3020_vm13, %v12263_v63  ;;  %8514 = vmatprep.subr.msk.mxu1 %vm2671_vm14, %v12263_v63  ;;  %vm3724_vm13 = vcmp.eq.s32.totalorder %v9042_v19, %v10387_v57 }
 0x1a6   :  { %8549 = vmatprep.subr.msk.mxu0 %vm3019_vm15, %v12263_v63  ;;  %8515 = vmatpush3.msk.msra.mxu1 %vm2671_vm14, %v12263_v63  ;;  %vm3375_vm14 = vcmp.eq.s32.totalorder %v9060_v21, %v10382_v46 }
 0x1a7   :  { %8550 = vmatpush3.msk.msra.mxu0 %vm3019_vm15, %v12263_v63  ;;  %8554 = vmatprep.subr.msk.mxu1 %vm3382_vm0, %v12263_v63  ;;  %vm3723_vm15 = vcmp.eq.s32.totalorder %v9060_v21, %v10387_v57 }
 0x1a8   :  { %8589 = vmatprep.subr.msk.mxu0 %vm3730_vm1, %v12263_v63 }
 0x215   :  { %v2629_v14 = vpop.xlane.xlu0 %2628 }
 0x217   :  { %v2631_v0 = vpop.xlane.xlu1 %2630 }
 0x218   :  { %v2632_v48 = vadd.f32 %v2631_v0, %v2629_v14  ;;  %v12268_v0 = vld [vmem:[#allocation9_spill] sm:$0xff]  ;;  %v12269_v14 = vld [vmem:[#allocation10_spill] sm:$0xff] }
 0x21a   :  { %v2641_v32 = vmul.f32 0.00390625, %v2632_v48  ;;  %v12270_v48 = vld [vmem:[#allocation11_spill] sm:$0xff] }
 0x21b   :  { %v2636_v22 = vpop.xlane.xlu1 %2635 }
 0x21c   :  { %v2643_v1 = vmul.f32 %v2641_v32, %v2641_v32 }
 0x21f   :  { %v2638_v49 = vpop.xlane.xlu1 %2637 }
 0x220   :  { %v2639_v61 = vadd.f32 %v2638_v49, %v2636_v22  ;;  %v12271_v22 = vld [vmem:[#allocation12_spill] sm:$0xff]  ;;  %v12273_v49 = vld [vmem:[#allocation14_spill] sm:$0xff] }
 0x222   :  { %v2642_v24 = vmul.f32 0.00390625, %v2639_v61  ;;  %v12274_v61 = vld [vmem:[#allocation15_spill] sm:$0xff] }
 0x224   :  { %v2644_v43 = vsub.f32 %v2642_v24, %v2643_v1  ;;  %v12275_v1 = vld [vmem:[#allocation16_spill] sm:$0xff]  ;;  %v11002_v24 = vld [vmem:[%s12205_s3] ss:$0 sm:$0xff] }
 0x226   :  { %v2645_v3 = vadd.f32 1e-05, %v2644_v43  ;;  %v12276_v43 = vld [vmem:[#allocation17_spill] sm:$0xff] }
 0x228   :  { %8807 = vrsqrt.f32 %v2645_v3  ;;  %v11021_v3 = vld [vmem:[%s12205_s3 + $0x2] ss:$0 sm:$0xff] }
 0x235   :  { %v8808_v34 = vpop.eup %8807 }
 0x236   :  { %v2647_v53 = vmul.f32 %v8808_v34, %v2626_v42  ;;  %v11046_v42 = vld [vmem:[%s12249_s23 + $0x8] sm:$0xff]  ;;  %v11058_v34 = vld [vmem:[%s12249_s23] sm:$0xff] }
 0x238   :  { %2652 = vperm.xlu1 %8806, %v2647_v53   ;;  %v2648_v30 = vmul.f32 %v2647_v53, %v2641_v32  ;;  %v12272_v32 = vld [vmem:[#allocation13_spill] sm:$0xff]  ;;  %v11218_v53 = vld [vmem:[%s12205_s3 + $0x3] ss:$0 sm:$0xff] }
 0x23a   :  { %v2649_v47 = vsub.f32 %v2627_v54, %v2648_v30  ;;  %v11358_v54 = vld [vmem:[%s12208_s6 + $0x8] sm:$0xff] }
 0x23c   :  { %2659 = vperm.xlu1 %8806, %v2649_v47  }
 0x240   :  { %6589 = vperm.xlu1 %8806, %v6543_v41  }
 0x244   :  { %6599 = vperm.xlu1 %8806, %v6545_v12  }
 0x248   :  { %6604 = vperm.xlu1 %8806, %v6546_v58  }
 0x24c   :  { %5801 = vperm.xlu1 %8806, %v5798_v28  }
 0x250   :  { %6624 = vperm.xlu1 %8806, %v6621_v45   ;;  %v11372_v45 = vld [vmem:[%s12208_s6 + $0x10] sm:$0xff] }
 0x2b3   :  { %v2653_v4 = vpop.permute.xlu1 %2652 }
 0x2b4   :  { %v2655_v38 = vmul.f32 %v2653_v4, %v10227_v59  ;;  %v2656_v40 = vmul.f32 %v2653_v4, %v10229_v39  ;;  %v10703_v59 = vld [vmem:[%s12204_s2 + $0x7] ss:$0 sm:$0xff]  ;;  %v10840_v39 = vld [vmem:[%s12204_s2 + $0x8] ss:$0 sm:$0xff] }
 0x2b7   :  { %v2660_v16 = vpop.permute.xlu1 %2659 }
 0x2b8   :  { %v2662_v44 = vadd.f32 %v2660_v16, %v2655_v38  ;;  %v2663_v11 = vadd.f32 %v2660_v16, %v2656_v40 }
 0x2ba   :  { %v10423_v52 = vmax.f32 %v2662_v44, 0.0  ;;  %v10425_v56 = vmax.f32 %v2663_v11, 0.0  ;;  %v11382_v44 = vld [vmem:[%s12208_s6 + $0x18] sm:$0xff]  ;;  %v11387_v11 = vld [vmem:[%s12208_s6 + $0x20] sm:$0xff] }
 0x2bc   :  { %8516 = vmatprep.mubr.f32.mxu1 %v10423_v52  ;;  %8551 = vmatprep.mubr.f32.mxu0 %v10423_v52 }
 0x2bd   :  { %8517 = vmatmul.mubr.f32.vlgmr.msra.gmra.mxu1 %v10425_v56  ;;  %8552 = vmatmul.mubr.f32.vlgmr.msra.gmra.mxu0 %v10425_v56 }
 0x2be   :  { %8555 = vmatpush3.msk.msra.mxu1 %vm3382_vm0, %v12263_v63  ;;  %8590 = vmatpush3.msk.msra.mxu0 %vm3730_vm1, %v12263_v63  ;;  %vm3374_vm0 = vcmp.eq.s32.totalorder %v9078_v23, %v10382_v46  ;;  %vm3722_vm1 = vcmp.eq.s32.totalorder %v9078_v23, %v10387_v57 }
 0x2bf   :  { %8556 = vmatprep.subr.msk.mxu1 %vm3381_vm2, %v12263_v63  ;;  %8586 = vmatprep.mubr.f32.mxu1 %v10423_v52 }
 0x2c0   :  { %8591 = vmatprep.subr.msk.mxu0 %vm3729_vm3, %v12263_v63  ;;  %8621 = vmatprep.mubr.f32.mxu0 %v10423_v52 }
 0x2c1   :  { %8557 = vmatpush3.msk.msra.mxu1 %vm3381_vm2, %v12263_v63  ;;  %8592 = vmatpush3.msk.msra.mxu0 %vm3729_vm3, %v12263_v63  ;;  %vm3373_vm2 = vcmp.eq.s32.totalorder %v9096_v25, %v10382_v46  ;;  %vm3721_vm3 = vcmp.eq.s32.totalorder %v9096_v25, %v10387_v57 }
 0x2c2   :  { %8558 = vmatprep.subr.msk.mxu1 %vm3380_vm4, %v12263_v63  ;;  %8593 = vmatprep.subr.msk.mxu0 %vm3728_vm5, %v12263_v63 }
 0x2c3   :  { %8559 = vmatpush3.msk.msra.mxu1 %vm3380_vm4, %v12263_v63  ;;  %8594 = vmatpush3.msk.msra.mxu0 %vm3728_vm5, %v12263_v63  ;;  %vm3372_vm4 = vcmp.eq.s32.totalorder %v9114_v27, %v10382_v46  ;;  %vm3720_vm5 = vcmp.eq.s32.totalorder %v9114_v27, %v10387_v57 }
 0x2c4   :  { %8560 = vmatprep.subr.msk.mxu1 %vm3379_vm6, %v12263_v63  ;;  %8595 = vmatprep.subr.msk.mxu0 %vm3727_vm7, %v12263_v63 }
 0x2c5   :  { %8561 = vmatpush3.msk.msra.mxu1 %vm3379_vm6, %v12263_v63  ;;  %8596 = vmatpush3.msk.msra.mxu0 %vm3727_vm7, %v12263_v63  ;;  %vm3371_vm6 = vcmp.eq.s32.totalorder %v9132_v29, %v10382_v46  ;;  %vm3719_vm7 = vcmp.eq.s32.totalorder %v9132_v29, %v10387_v57 }
 0x2c6   :  { %8562 = vmatprep.subr.msk.mxu1 %vm3378_vm8, %v12263_v63  ;;  %8597 = vmatprep.subr.msk.mxu0 %vm3726_vm9, %v12263_v63 }
 0x2c7   :  { %8563 = vmatpush3.msk.msra.mxu1 %vm3378_vm8, %v12263_v63  ;;  %8598 = vmatpush3.msk.msra.mxu0 %vm3726_vm9, %v12263_v63  ;;  %vm3370_vm8 = vcmp.eq.s32.totalorder %v9150_v31, %v10382_v46  ;;  %vm3718_vm9 = vcmp.eq.s32.totalorder %v9150_v31, %v10387_v57 }
 0x2c8   :  { %8564 = vmatprep.subr.msk.mxu1 %vm3377_vm10, %v12263_v63  ;;  %8599 = vmatprep.subr.msk.mxu0 %vm3725_vm11, %v12263_v63 }
 0x2c9   :  { %8565 = vmatpush3.msk.msra.mxu1 %vm3377_vm10, %v12263_v63  ;;  %8600 = vmatpush3.msk.msra.mxu0 %vm3725_vm11, %v12263_v63  ;;  %vm3369_vm10 = vcmp.eq.s32.totalorder %v9168_v33, %v10382_v46  ;;  %vm3717_vm11 = vcmp.eq.s32.totalorder %v9168_v33, %v10387_v57 }
 0x2ca   :  { %8566 = vmatprep.subr.msk.mxu1 %vm3376_vm12, %v12263_v63  ;;  %8601 = vmatprep.subr.msk.mxu0 %vm3724_vm13, %v12263_v63 }
 0x2cb   :  { %8567 = vmatpush3.msk.msra.mxu1 %vm3376_vm12, %v12263_v63  ;;  %8602 = vmatpush3.msk.msra.mxu0 %vm3724_vm13, %v12263_v63  ;;  %vm3368_vm12 = vcmp.eq.s32.totalorder %v9186_v35, %v10382_v46  ;;  %vm3716_vm13 = vcmp.eq.s32.totalorder %v9186_v35, %v10387_v57 }
 0x2cc   :  { %8568 = vmatprep.subr.msk.mxu1 %vm3375_vm14, %v12263_v63  ;;  %8603 = vmatprep.subr.msk.mxu0 %vm3723_vm15, %v12263_v63 }
 0x2cd   :  { %8569 = vmatpush3.msk.msra.mxu1 %vm3375_vm14, %v12263_v63  ;;  %8604 = vmatpush3.msk.msra.mxu0 %vm3723_vm15, %v12263_v63  ;;  %vm3367_vm14 = vcmp.eq.s32.totalorder %v8936_v2, %v10382_v46  ;;  %vm3715_vm15 = vcmp.eq.s32.totalorder %v8936_v2, %v10387_v57 }
 0x2ce   :  { %8570 = vmatprep.subr.msk.mxu1 %vm3374_vm0, %v12263_v63  ;;  %8605 = vmatprep.subr.msk.mxu0 %vm3722_vm1, %v12263_v63 }
 0x2cf   :  { %8571 = vmatpush3.msk.msra.mxu1 %vm3374_vm0, %v12263_v63  ;;  %8606 = vmatpush3.msk.msra.mxu0 %vm3722_vm1, %v12263_v63  ;;  %vm4078_vm0 = vcmp.eq.s32.totalorder %v8952_v6, %v10556_v62  ;;  %vm4426_vm1 = vcmp.eq.s32.totalorder %v8952_v6, %v10561_v51 }
 0x2d0   :  { %8572 = vmatprep.subr.msk.mxu1 %vm3373_vm2, %v12263_v63  ;;  %8607 = vmatprep.subr.msk.mxu0 %vm3721_vm3, %v12263_v63 }
 0x2d1   :  { %8573 = vmatpush3.msk.msra.mxu1 %vm3373_vm2, %v12263_v63  ;;  %8608 = vmatpush3.msk.msra.mxu0 %vm3721_vm3, %v12263_v63  ;;  %vm4077_vm2 = vcmp.eq.s32.totalorder %v8958_v8, %v10556_v62  ;;  %vm4425_vm3 = vcmp.eq.s32.totalorder %v8958_v8, %v10561_v51 }
 0x2d2   :  { %8574 = vmatprep.subr.msk.mxu1 %vm3372_vm4, %v12263_v63  ;;  %8609 = vmatprep.subr.msk.mxu0 %vm3720_vm5, %v12263_v63 }
 0x2d3   :  { %8575 = vmatpush3.msk.msra.mxu1 %vm3372_vm4, %v12263_v63  ;;  %8610 = vmatpush3.msk.msra.mxu0 %vm3720_vm5, %v12263_v63  ;;  %vm4076_vm4 = vcmp.eq.s32.totalorder %v8964_v10, %v10556_v62  ;;  %vm4424_vm5 = vcmp.eq.s32.totalorder %v8964_v10, %v10561_v51 }
 0x2d4   :  { %8576 = vmatprep.subr.msk.mxu1 %vm3371_vm6, %v12263_v63  ;;  %8611 = vmatprep.subr.msk.mxu0 %vm3719_vm7, %v12263_v63 }
 0x2d5   :  { %8577 = vmatpush3.msk.msra.mxu1 %vm3371_vm6, %v12263_v63  ;;  %8612 = vmatpush3.msk.msra.mxu0 %vm3719_vm7, %v12263_v63  ;;  %vm4075_vm6 = vcmp.eq.s32.totalorder %v8986_v13, %v10556_v62  ;;  %vm4423_vm7 = vcmp.eq.s32.totalorder %v8986_v13, %v10561_v51 }
 0x2d6   :  { %8578 = vmatprep.subr.msk.mxu1 %vm3370_vm8, %v12263_v63  ;;  %8613 = vmatprep.subr.msk.mxu0 %vm3718_vm9, %v12263_v63 }
 0x2d7   :  { %8579 = vmatpush3.msk.msra.mxu1 %vm3370_vm8, %v12263_v63  ;;  %8614 = vmatpush3.msk.msra.mxu0 %vm3718_vm9, %v12263_v63  ;;  %vm4074_vm8 = vcmp.eq.s32.totalorder %v9006_v15, %v10556_v62  ;;  %vm4422_vm9 = vcmp.eq.s32.totalorder %v9006_v15, %v10561_v51 }
 0x2d8   :  { %8580 = vmatprep.subr.msk.mxu1 %vm3369_vm10, %v12263_v63  ;;  %8615 = vmatprep.subr.msk.mxu0 %vm3717_vm11, %v12263_v63 }
 0x2d9   :  { %8581 = vmatpush3.msk.msra.mxu1 %vm3369_vm10, %v12263_v63  ;;  %8616 = vmatpush3.msk.msra.mxu0 %vm3717_vm11, %v12263_v63  ;;  %vm4073_vm10 = vcmp.eq.s32.totalorder %v9024_v17, %v10556_v62  ;;  %vm4421_vm11 = vcmp.eq.s32.totalorder %v9024_v17, %v10561_v51 }
 0x2da   :  { %8582 = vmatprep.subr.msk.mxu1 %vm3368_vm12, %v12263_v63  ;;  %8617 = vmatprep.subr.msk.mxu0 %vm3716_vm13, %v12263_v63 }
 0x2db   :  { %8583 = vmatpush3.msk.msra.mxu1 %vm3368_vm12, %v12263_v63  ;;  %8618 = vmatpush3.msk.msra.mxu0 %vm3716_vm13, %v12263_v63  ;;  %vm4072_vm12 = vcmp.eq.s32.totalorder %v9042_v19, %v10556_v62  ;;  %vm4420_vm13 = vcmp.eq.s32.totalorder %v9042_v19, %v10561_v51 }
 0x2dc   :  { %8584 = vmatprep.subr.msk.mxu1 %vm3367_vm14, %v12263_v63  ;;  %8619 = vmatprep.subr.msk.mxu0 %vm3715_vm15, %v12263_v63 }
 0x2dd   :  { %8585 = vmatpush3.msk.msra.mxu1 %vm3367_vm14, %v12263_v63  ;;  %8620 = vmatpush3.msk.msra.mxu0 %vm3715_vm15, %v12263_v63  ;;  %vm4071_vm14 = vcmp.eq.s32.totalorder %v9060_v21, %v10556_v62  ;;  %vm4419_vm15 = vcmp.eq.s32.totalorder %v9060_v21, %v10561_v51 }
 0x2de   :  { %8587 = vmatmul.mubr.f32.vlgmr.msra.gmra.mxu1 %v10425_v56  ;;  %8622 = vmatmul.mubr.f32.vlgmr.msra.gmra.mxu0 %v10425_v56 }
 0x2df   :  { %8624 = vmatprep.subr.msk.mxu1 %vm4078_vm0, %v12263_v63  ;;  %8659 = vmatprep.subr.msk.mxu0 %vm4426_vm1, %v12263_v63 }
 0x2e0   :  { %8625 = vmatpush3.msk.msra.mxu1 %vm4078_vm0, %v12263_v63  ;;  %8656 = vmatprep.mubr.f32.mxu1 %v10423_v52  ;;  %vm4070_vm0 = vcmp.eq.s32.totalorder %v9078_v23, %v10556_v62 }
 0x2e1   :  { %8660 = vmatpush3.msk.msra.mxu0 %vm4426_vm1, %v12263_v63  ;;  %8691 = vmatprep.mubr.f32.mxu0 %v10423_v52  ;;  %vm4418_vm1 = vcmp.eq.s32.totalorder %v9078_v23, %v10561_v51 }
 0x2e2   :  { %8626 = vmatprep.subr.msk.mxu1 %vm4077_vm2, %v12263_v63  ;;  %8661 = vmatprep.subr.msk.mxu0 %vm4425_vm3, %v12263_v63 }
 0x2e3   :  { %8627 = vmatpush3.msk.msra.mxu1 %vm4077_vm2, %v12263_v63  ;;  %8662 = vmatpush3.msk.msra.mxu0 %vm4425_vm3, %v12263_v63  ;;  %vm4069_vm2 = vcmp.eq.s32.totalorder %v9096_v25, %v10556_v62  ;;  %vm4417_vm3 = vcmp.eq.s32.totalorder %v9096_v25, %v10561_v51 }
 0x2e4   :  { %8628 = vmatprep.subr.msk.mxu1 %vm4076_vm4, %v12263_v63  ;;  %8663 = vmatprep.subr.msk.mxu0 %vm4424_vm5, %v12263_v63 }
 0x2e5   :  { %8629 = vmatpush3.msk.msra.mxu1 %vm4076_vm4, %v12263_v63  ;;  %8664 = vmatpush3.msk.msra.mxu0 %vm4424_vm5, %v12263_v63  ;;  %vm4068_vm4 = vcmp.eq.s32.totalorder %v9114_v27, %v10556_v62  ;;  %vm4416_vm5 = vcmp.eq.s32.totalorder %v9114_v27, %v10561_v51 }
 0x2e6   :  { %8630 = vmatprep.subr.msk.mxu1 %vm4075_vm6, %v12263_v63  ;;  %8665 = vmatprep.subr.msk.mxu0 %vm4423_vm7, %v12263_v63 }
 0x2e7   :  { %8631 = vmatpush3.msk.msra.mxu1 %vm4075_vm6, %v12263_v63  ;;  %8666 = vmatpush3.msk.msra.mxu0 %vm4423_vm7, %v12263_v63  ;;  %vm4067_vm6 = vcmp.eq.s32.totalorder %v9132_v29, %v10556_v62  ;;  %vm4415_vm7 = vcmp.eq.s32.totalorder %v9132_v29, %v10561_v51 }
 0x2e8   :  { %8632 = vmatprep.subr.msk.mxu1 %vm4074_vm8, %v12263_v63  ;;  %8667 = vmatprep.subr.msk.mxu0 %vm4422_vm9, %v12263_v63 }
 0x2e9   :  { %8633 = vmatpush3.msk.msra.mxu1 %vm4074_vm8, %v12263_v63  ;;  %8668 = vmatpush3.msk.msra.mxu0 %vm4422_vm9, %v12263_v63  ;;  %vm4066_vm8 = vcmp.eq.s32.totalorder %v9150_v31, %v10556_v62  ;;  %vm4414_vm9 = vcmp.eq.s32.totalorder %v9150_v31, %v10561_v51 }
 0x2ea   :  { %8634 = vmatprep.subr.msk.mxu1 %vm4073_vm10, %v12263_v63  ;;  %8669 = vmatprep.subr.msk.mxu0 %vm4421_vm11, %v12263_v63 }
 0x2eb   :  { %8635 = vmatpush3.msk.msra.mxu1 %vm4073_vm10, %v12263_v63  ;;  %8670 = vmatpush3.msk.msra.mxu0 %vm4421_vm11, %v12263_v63  ;;  %vm4065_vm10 = vcmp.eq.s32.totalorder %v9168_v33, %v10556_v62  ;;  %vm4413_vm11 = vcmp.eq.s32.totalorder %v9168_v33, %v10561_v51 }
 0x2ec   :  { %8636 = vmatprep.subr.msk.mxu1 %vm4072_vm12, %v12263_v63  ;;  %8671 = vmatprep.subr.msk.mxu0 %vm4420_vm13, %v12263_v63 }
 0x2ed   :  { %8637 = vmatpush3.msk.msra.mxu1 %vm4072_vm12, %v12263_v63  ;;  %8672 = vmatpush3.msk.msra.mxu0 %vm4420_vm13, %v12263_v63  ;;  %vm4064_vm12 = vcmp.eq.s32.totalorder %v9186_v35, %v10556_v62  ;;  %vm4412_vm13 = vcmp.eq.s32.totalorder %v9186_v35, %v10561_v51 }
 0x2ee   :  { %8638 = vmatprep.subr.msk.mxu1 %vm4071_vm14, %v12263_v63  ;;  %8673 = vmatprep.subr.msk.mxu0 %vm4419_vm15, %v12263_v63 }
 0x2ef   :  { %8639 = vmatpush3.msk.msra.mxu1 %vm4071_vm14, %v12263_v63  ;;  %8674 = vmatpush3.msk.msra.mxu0 %vm4419_vm15, %v12263_v63  ;;  %vm4063_vm14 = vcmp.eq.s32.totalorder %v8936_v2, %v10556_v62  ;;  %vm4411_vm15 = vcmp.eq.s32.totalorder %v8936_v2, %v10561_v51 }
 0x2f0   :  { %8640 = vmatprep.subr.msk.mxu1 %vm4070_vm0, %v12263_v63  ;;  %8675 = vmatprep.subr.msk.mxu0 %vm4418_vm1, %v12263_v63 }
 0x2f1   :  { %8641 = vmatpush3.msk.msra.mxu1 %vm4070_vm0, %v12263_v63  ;;  %8676 = vmatpush3.msk.msra.mxu0 %vm4418_vm1, %v12263_v63  ;;  %vm4774_vm0 = vcmp.eq.s32.totalorder %v8952_v6, %v10698_v26  ;;  %vm5122_vm1 = vcmp.eq.s32.totalorder %v8952_v6, %v10703_v59 }
 0x2f2   :  { %8642 = vmatprep.subr.msk.mxu1 %vm4069_vm2, %v12263_v63  ;;  %8677 = vmatprep.subr.msk.mxu0 %vm4417_vm3, %v12263_v63 }
 0x2f3   :  { %8643 = vmatpush3.msk.msra.mxu1 %vm4069_vm2, %v12263_v63  ;;  %8678 = vmatpush3.msk.msra.mxu0 %vm4417_vm3, %v12263_v63  ;;  %vm4773_vm2 = vcmp.eq.s32.totalorder %v8958_v8, %v10698_v26  ;;  %vm5121_vm3 = vcmp.eq.s32.totalorder %v8958_v8, %v10703_v59 }
 0x2f4   :  { %8644 = vmatprep.subr.msk.mxu1 %vm4068_vm4, %v12263_v63  ;;  %8679 = vmatprep.subr.msk.mxu0 %vm4416_vm5, %v12263_v63 }
 0x2f5   :  { %8645 = vmatpush3.msk.msra.mxu1 %vm4068_vm4, %v12263_v63  ;;  %8680 = vmatpush3.msk.msra.mxu0 %vm4416_vm5, %v12263_v63  ;;  %vm4772_vm4 = vcmp.eq.s32.totalorder %v8964_v10, %v10698_v26  ;;  %vm5120_vm5 = vcmp.eq.s32.totalorder %v8964_v10, %v10703_v59 }
 0x2f6   :  { %8646 = vmatprep.subr.msk.mxu1 %vm4067_vm6, %v12263_v63  ;;  %8681 = vmatprep.subr.msk.mxu0 %vm4415_vm7, %v12263_v63 }
 0x2f7   :  { %8647 = vmatpush3.msk.msra.mxu1 %vm4067_vm6, %v12263_v63  ;;  %8682 = vmatpush3.msk.msra.mxu0 %vm4415_vm7, %v12263_v63  ;;  %vm4771_vm6 = vcmp.eq.s32.totalorder %v8986_v13, %v10698_v26  ;;  %vm5119_vm7 = vcmp.eq.s32.totalorder %v8986_v13, %v10703_v59 }
 0x2f8   :  { %8648 = vmatprep.subr.msk.mxu1 %vm4066_vm8, %v12263_v63  ;;  %8683 = vmatprep.subr.msk.mxu0 %vm4414_vm9, %v12263_v63 }
 0x2f9   :  { %8649 = vmatpush3.msk.msra.mxu1 %vm4066_vm8, %v12263_v63  ;;  %8684 = vmatpush3.msk.msra.mxu0 %vm4414_vm9, %v12263_v63  ;;  %vm4770_vm8 = vcmp.eq.s32.totalorder %v9006_v15, %v10698_v26  ;;  %vm5118_vm9 = vcmp.eq.s32.totalorder %v9006_v15, %v10703_v59 }
 0x2fa   :  { %8650 = vmatprep.subr.msk.mxu1 %vm4065_vm10, %v12263_v63  ;;  %8685 = vmatprep.subr.msk.mxu0 %vm4413_vm11, %v12263_v63 }
 0x2fb   :  { %8651 = vmatpush3.msk.msra.mxu1 %vm4065_vm10, %v12263_v63  ;;  %8686 = vmatpush3.msk.msra.mxu0 %vm4413_vm11, %v12263_v63  ;;  %vm4769_vm10 = vcmp.eq.s32.totalorder %v9024_v17, %v10698_v26  ;;  %vm5117_vm11 = vcmp.eq.s32.totalorder %v9024_v17, %v10703_v59 }
 0x2fc   :  { %8652 = vmatprep.subr.msk.mxu1 %vm4064_vm12, %v12263_v63  ;;  %8687 = vmatprep.subr.msk.mxu0 %vm4412_vm13, %v12263_v63 }
 0x2fd   :  { %8653 = vmatpush3.msk.msra.mxu1 %vm4064_vm12, %v12263_v63  ;;  %8688 = vmatpush3.msk.msra.mxu0 %vm4412_vm13, %v12263_v63  ;;  %vm4768_vm12 = vcmp.eq.s32.totalorder %v9042_v19, %v10698_v26  ;;  %vm5116_vm13 = vcmp.eq.s32.totalorder %v9042_v19, %v10703_v59 }
 0x2fe   :  { %8654 = vmatprep.subr.msk.mxu1 %vm4063_vm14, %v12263_v63  ;;  %8689 = vmatprep.subr.msk.mxu0 %vm4411_vm15, %v12263_v63 }
 0x2ff   :  { %8655 = vmatpush3.msk.msra.mxu1 %vm4063_vm14, %v12263_v63  ;;  %8690 = vmatpush3.msk.msra.mxu0 %vm4411_vm15, %v12263_v63  ;;  %vm4767_vm14 = vcmp.eq.s32.totalorder %v9060_v21, %v10698_v26  ;;  %vm5115_vm15 = vcmp.eq.s32.totalorder %v9060_v21, %v10703_v59 }
 0x300   :  { %8657 = vmatmul.mubr.f32.vlgmr.msra.gmra.mxu1 %v10425_v56  ;;  %8692 = vmatmul.mubr.f32.vlgmr.msra.gmra.mxu0 %v10425_v56 }
 0x301   :  { %8694 = vmatprep.subr.msk.mxu1 %vm4774_vm0, %v12263_v63  ;;  %8729 = vmatprep.subr.msk.mxu0 %vm5122_vm1, %v12263_v63 }
 0x302   :  { %8695 = vmatpush3.msk.msra.mxu1 %vm4774_vm0, %v12263_v63  ;;  %8726 = vmatprep.mubr.f32.mxu1 %v10423_v52  ;;  %vm4766_vm0 = vcmp.eq.s32.totalorder %v9078_v23, %v10698_v26 }
 0x303   :  { %8730 = vmatpush3.msk.msra.mxu0 %vm5122_vm1, %v12263_v63  ;;  %8761 = vmatprep.mubr.f32.mxu0 %v10423_v52  ;;  %vm5114_vm1 = vcmp.eq.s32.totalorder %v9078_v23, %v10703_v59 }
 0x304   :  { %8696 = vmatprep.subr.msk.mxu1 %vm4773_vm2, %v12263_v63  ;;  %8731 = vmatprep.subr.msk.mxu0 %vm5121_vm3, %v12263_v63 }
 0x305   :  { %8697 = vmatpush3.msk.msra.mxu1 %vm4773_vm2, %v12263_v63  ;;  %8732 = vmatpush3.msk.msra.mxu0 %vm5121_vm3, %v12263_v63  ;;  %vm4765_vm2 = vcmp.eq.s32.totalorder %v9096_v25, %v10698_v26  ;;  %vm5113_vm3 = vcmp.eq.s32.totalorder %v9096_v25, %v10703_v59 }
 0x306   :  { %8698 = vmatprep.subr.msk.mxu1 %vm4772_vm4, %v12263_v63  ;;  %8733 = vmatprep.subr.msk.mxu0 %vm5120_vm5, %v12263_v63 }
 0x307   :  { %8699 = vmatpush3.msk.msra.mxu1 %vm4772_vm4, %v12263_v63  ;;  %8734 = vmatpush3.msk.msra.mxu0 %vm5120_vm5, %v12263_v63  ;;  %vm4764_vm4 = vcmp.eq.s32.totalorder %v9114_v27, %v10698_v26  ;;  %vm5112_vm5 = vcmp.eq.s32.totalorder %v9114_v27, %v10703_v59 }
 0x308   :  { %8700 = vmatprep.subr.msk.mxu1 %vm4771_vm6, %v12263_v63  ;;  %8735 = vmatprep.subr.msk.mxu0 %vm5119_vm7, %v12263_v63 }
 0x309   :  { %8701 = vmatpush3.msk.msra.mxu1 %vm4771_vm6, %v12263_v63  ;;  %8736 = vmatpush3.msk.msra.mxu0 %vm5119_vm7, %v12263_v63  ;;  %vm4763_vm6 = vcmp.eq.s32.totalorder %v9132_v29, %v10698_v26  ;;  %vm5111_vm7 = vcmp.eq.s32.totalorder %v9132_v29, %v10703_v59 }
 0x30a   :  { %8702 = vmatprep.subr.msk.mxu1 %vm4770_vm8, %v12263_v63  ;;  %8737 = vmatprep.subr.msk.mxu0 %vm5118_vm9, %v12263_v63 }
 0x30b   :  { %8703 = vmatpush3.msk.msra.mxu1 %vm4770_vm8, %v12263_v63  ;;  %8738 = vmatpush3.msk.msra.mxu0 %vm5118_vm9, %v12263_v63  ;;  %vm4762_vm8 = vcmp.eq.s32.totalorder %v9150_v31, %v10698_v26  ;;  %vm5110_vm9 = vcmp.eq.s32.totalorder %v9150_v31, %v10703_v59 }
 0x30c   :  { %8704 = vmatprep.subr.msk.mxu1 %vm4769_vm10, %v12263_v63  ;;  %8739 = vmatprep.subr.msk.mxu0 %vm5117_vm11, %v12263_v63 }
 0x30d   :  { %8705 = vmatpush3.msk.msra.mxu1 %vm4769_vm10, %v12263_v63  ;;  %8740 = vmatpush3.msk.msra.mxu0 %vm5117_vm11, %v12263_v63  ;;  %vm4761_vm10 = vcmp.eq.s32.totalorder %v9168_v33, %v10698_v26  ;;  %vm5109_vm11 = vcmp.eq.s32.totalorder %v9168_v33, %v10703_v59 }
 0x30e   :  { %8706 = vmatprep.subr.msk.mxu1 %vm4768_vm12, %v12263_v63  ;;  %8741 = vmatprep.subr.msk.mxu0 %vm5116_vm13, %v12263_v63 }
 0x30f   :  { %8707 = vmatpush3.msk.msra.mxu1 %vm4768_vm12, %v12263_v63  ;;  %8742 = vmatpush3.msk.msra.mxu0 %vm5116_vm13, %v12263_v63  ;;  %vm4760_vm12 = vcmp.eq.s32.totalorder %v9186_v35, %v10698_v26  ;;  %vm5108_vm13 = vcmp.eq.s32.totalorder %v9186_v35, %v10703_v59 }
 0x310   :  { %8708 = vmatprep.subr.msk.mxu1 %vm4767_vm14, %v12263_v63  ;;  %8743 = vmatprep.subr.msk.mxu0 %vm5115_vm15, %v12263_v63 }
 0x311   :  { %8709 = vmatpush3.msk.msra.mxu1 %vm4767_vm14, %v12263_v63  ;;  %8744 = vmatpush3.msk.msra.mxu0 %vm5115_vm15, %v12263_v63  ;;  %vm4759_vm14 = vcmp.eq.s32.totalorder %v8936_v2, %v10698_v26  ;;  %vm5107_vm15 = vcmp.eq.s32.totalorder %v8936_v2, %v10703_v59 }
 0x312   :  { %8710 = vmatprep.subr.msk.mxu1 %vm4766_vm0, %v12263_v63  ;;  %8745 = vmatprep.subr.msk.mxu0 %vm5114_vm1, %v12263_v63 }
 0x313   :  { %8711 = vmatpush3.msk.msra.mxu1 %vm4766_vm0, %v12263_v63  ;;  %8746 = vmatpush3.msk.msra.mxu0 %vm5114_vm1, %v12263_v63  ;;  %vm5470_vm0 = vcmp.eq.s32.totalorder %v8952_v6, %v10840_v39  ;;  %vm5943_vm1 = vcmp.eq.s32.totalorder %v8949_v5, %v10847_v20 }
 0x314   :  { %8712 = vmatprep.subr.msk.mxu1 %vm4765_vm2, %v12263_v63  ;;  %8747 = vmatprep.subr.msk.mxu0 %vm5113_vm3, %v12263_v63 }
 0x315   :  { %8713 = vmatpush3.msk.msra.mxu1 %vm4765_vm2, %v12263_v63  ;;  %8748 = vmatpush3.msk.msra.mxu0 %vm5113_vm3, %v12263_v63  ;;  %vm5469_vm2 = vcmp.eq.s32.totalorder %v8958_v8, %v10840_v39  ;;  %vm5927_vm3 = vcmp.eq.s32.totalorder %v8952_v6, %v10847_v20 }
 0x316   :  { %8714 = vmatprep.subr.msk.mxu1 %vm4764_vm4, %v12263_v63  ;;  %8749 = vmatprep.subr.msk.mxu0 %vm5112_vm5, %v12263_v63 }
 0x317   :  { %8715 = vmatpush3.msk.msra.mxu1 %vm4764_vm4, %v12263_v63  ;;  %8750 = vmatpush3.msk.msra.mxu0 %vm5112_vm5, %v12263_v63  ;;  %vm5942_vm4 = vcmp.eq.s32.totalorder %v8955_v7, %v10847_v20  ;;  %vm5468_vm5 = vcmp.eq.s32.totalorder %v8964_v10, %v10840_v39 }
 0x318   :  { %8716 = vmatprep.subr.msk.mxu1 %vm4763_vm6, %v12263_v63  ;;  %8751 = vmatprep.subr.msk.mxu0 %vm5111_vm7, %v12263_v63 }
 0x319   :  { %8717 = vmatpush3.msk.msra.mxu1 %vm4763_vm6, %v12263_v63  ;;  %8752 = vmatpush3.msk.msra.mxu0 %vm5111_vm7, %v12263_v63  ;;  %vm5926_vm6 = vcmp.eq.s32.totalorder %v8958_v8, %v10847_v20  ;;  %vm5941_vm7 = vcmp.eq.s32.totalorder %v8961_v9, %v10847_v20 }
 0x31a   :  { %8718 = vmatprep.subr.msk.mxu1 %vm4762_vm8, %v12263_v63  ;;  %8753 = vmatprep.subr.msk.mxu0 %vm5110_vm9, %v12263_v63 }
 0x31b   :  { %8719 = vmatpush3.msk.msra.mxu1 %vm4762_vm8, %v12263_v63  ;;  %8754 = vmatpush3.msk.msra.mxu0 %vm5110_vm9, %v12263_v63  ;;  %vm5467_vm8 = vcmp.eq.s32.totalorder %v8986_v13, %v10840_v39  ;;  %vm5925_vm9 = vcmp.eq.s32.totalorder %v8964_v10, %v10847_v20 }
 0x31c   :  { %8720 = vmatprep.subr.msk.mxu1 %vm4761_vm10, %v12263_v63  ;;  %8755 = vmatprep.subr.msk.mxu0 %vm5109_vm11, %v12263_v63 }
 0x31d   :  { %8721 = vmatpush3.msk.msra.mxu1 %vm4761_vm10, %v12263_v63  ;;  %8756 = vmatpush3.msk.msra.mxu0 %vm5109_vm11, %v12263_v63  ;;  %vm5940_vm10 = vcmp.eq.s32.totalorder %v12264_v36, %v10847_v20  ;;  %vm5466_vm11 = vcmp.eq.s32.totalorder %v9006_v15, %v10840_v39 }
 0x31e   :  { %8722 = vmatprep.subr.msk.mxu1 %vm4760_vm12, %v12263_v63  ;;  %8757 = vmatprep.subr.msk.mxu0 %vm5108_vm13, %v12263_v63 }
 0x31f   :  { %8723 = vmatpush3.msk.msra.mxu1 %vm4760_vm12, %v12263_v63  ;;  %8758 = vmatpush3.msk.msra.mxu0 %vm5108_vm13, %v12263_v63  ;;  %vm5924_vm12 = vcmp.eq.s32.totalorder %v8986_v13, %v10847_v20  ;;  %vm5939_vm13 = vcmp.eq.s32.totalorder %v12265_v60, %v10847_v20 }
 0x320   :  { %8724 = vmatprep.subr.msk.mxu1 %vm4759_vm14, %v12263_v63  ;;  %8759 = vmatprep.subr.msk.mxu0 %vm5107_vm15, %v12263_v63 }
 0x321   :  { %8725 = vmatpush3.msk.msra.mxu1 %vm4759_vm14, %v12263_v63  ;;  %8760 = vmatpush3.msk.msra.mxu0 %vm5107_vm15, %v12263_v63  ;;  %vm5465_vm14 = vcmp.eq.s32.totalorder %v9024_v17, %v10840_v39  ;;  %vm5923_vm15 = vcmp.eq.s32.totalorder %v9006_v15, %v10847_v20 }
 0x322   :  { %8727 = vmatmul.mubr.f32.vlgmr.msra.gmra.mxu1 %v10425_v56  ;;  %8762 = vmatmul.mubr.f32.vlgmr.msra.gmra.mxu0 %v10425_v56 }
 0x323   :  { %8764 = vmatprep.subr.msk.mxu1 %vm5470_vm0, %v12263_v63  ;;  %8796 = vmatprep.mubr.f32.mxu1 %v10423_v52 }
 0x324   :  { %8765 = vmatpush3.msk.msra.mxu1 %vm5470_vm0, %v12263_v63  ;;  %8344 = vmatprep.subr.msk.mxu0 %vm5943_vm1, %v12263_v63  ;;  %vm5938_vm0 = vcmp.eq.s32.totalorder %v12266_v50, %v10847_v20  ;;  %vm5464_vm1 = vcmp.eq.s32.totalorder %v9042_v19, %v10840_v39 }
 0x325   :  { %8766 = vmatprep.subr.msk.mxu1 %vm5469_vm2, %v12263_v63  ;;  %8345 = vmatpush3.msk.msra.mxu0 %vm5927_vm3, %v12263_v63  ;;  %vm5937_vm3 = vcmp.eq.s32.totalorder %v12267_v18, %v10847_v20 }
 0x326   :  { %8767 = vmatpush3.msk.msra.mxu1 %vm5469_vm2, %v12263_v63  ;;  %8346 = vmatprep.subr.msk.mxu0 %vm5942_vm4, %v12263_v63  ;;  %vm5922_vm2 = vcmp.eq.s32.totalorder %v9024_v17, %v10847_v20  ;;  %vm5463_vm4 = vcmp.eq.s32.totalorder %v9060_v21, %v10840_v39 }
 0x327   :  { %8768 = vmatprep.subr.msk.mxu1 %vm5468_vm5, %v12263_v63  ;;  %8347 = vmatpush3.msk.msra.mxu0 %vm5926_vm6, %v12263_v63  ;;  %vm5936_vm6 = vcmp.eq.s32.totalorder %v12268_v0, %v10847_v20 }
 0x328   :  { %8769 = vmatpush3.msk.msra.mxu1 %vm5468_vm5, %v12263_v63  ;;  %8348 = vmatprep.subr.msk.mxu0 %vm5941_vm7, %v12263_v63  ;;  %vm5921_vm5 = vcmp.eq.s32.totalorder %v9042_v19, %v10847_v20  ;;  %vm5462_vm7 = vcmp.eq.s32.totalorder %v9078_v23, %v10840_v39 }
 0x329   :  { %8770 = vmatprep.subr.msk.mxu1 %vm5467_vm8, %v12263_v63  ;;  %8349 = vmatpush3.msk.msra.mxu0 %vm5925_vm9, %v12263_v63  ;;  %vm5935_vm9 = vcmp.eq.s32.totalorder %v12269_v14, %v10847_v20 }
 0x32a   :  { %8771 = vmatpush3.msk.msra.mxu1 %vm5467_vm8, %v12263_v63  ;;  %8350 = vmatprep.subr.msk.mxu0 %vm5940_vm10, %v12263_v63  ;;  %vm5920_vm8 = vcmp.eq.s32.totalorder %v9060_v21, %v10847_v20  ;;  %vm5461_vm10 = vcmp.eq.s32.totalorder %v9096_v25, %v10840_v39 }
 0x32b   :  { %8772 = vmatprep.subr.msk.mxu1 %vm5466_vm11, %v12263_v63  ;;  %8351 = vmatpush3.msk.msra.mxu0 %vm5924_vm12, %v12263_v63  ;;  %vm5934_vm12 = vcmp.eq.s32.totalorder %v12270_v48, %v10847_v20 }
 0x32c   :  { %8773 = vmatpush3.msk.msra.mxu1 %vm5466_vm11, %v12263_v63  ;;  %8352 = vmatprep.subr.msk.mxu0 %vm5939_vm13, %v12263_v63  ;;  %vm5919_vm11 = vcmp.eq.s32.totalorder %v9078_v23, %v10847_v20  ;;  %vm5460_vm13 = vcmp.eq.s32.totalorder %v9114_v27, %v10840_v39 }
 0x32d   :  { %8774 = vmatprep.subr.msk.mxu1 %vm5465_vm14, %v12263_v63  ;;  %8353 = vmatpush3.msk.msra.mxu0 %vm5923_vm15, %v12263_v63  ;;  %vm5933_vm15 = vcmp.eq.s32.totalorder %v12271_v22, %v10847_v20 }
 0x32e   :  { %8775 = vmatpush3.msk.msra.mxu1 %vm5465_vm14, %v12263_v63  ;;  %8354 = vmatprep.subr.msk.mxu0 %vm5938_vm0, %v12263_v63  ;;  %vm5918_vm14 = vcmp.eq.s32.totalorder %v9096_v25, %v10847_v20  ;;  %vm5459_vm0 = vcmp.eq.s32.totalorder %v9132_v29, %v10840_v39 }
 0x32f   :  { %8776 = vmatprep.subr.msk.mxu1 %vm5464_vm1, %v12263_v63  ;;  %8355 = vmatpush3.msk.msra.mxu0 %vm5922_vm2, %v12263_v63  ;;  %vm5932_vm2 = vcmp.eq.s32.totalorder %v12272_v32, %v10847_v20 }
 0x330   :  { %8777 = vmatpush3.msk.msra.mxu1 %vm5464_vm1, %v12263_v63  ;;  %8356 = vmatprep.subr.msk.mxu0 %vm5937_vm3, %v12263_v63  ;;  %vm5917_vm1 = vcmp.eq.s32.totalorder %v9114_v27, %v10847_v20  ;;  %vm5458_vm3 = vcmp.eq.s32.totalorder %v9150_v31, %v10840_v39 }
 0x331   :  { %8778 = vmatprep.subr.msk.mxu1 %vm5463_vm4, %v12263_v63  ;;  %8357 = vmatpush3.msk.msra.mxu0 %vm5921_vm5, %v12263_v63  ;;  %vm5931_vm5 = vcmp.eq.s32.totalorder %v12273_v49, %v10847_v20 }
 0x332   :  { %8779 = vmatpush3.msk.msra.mxu1 %vm5463_vm4, %v12263_v63  ;;  %8358 = vmatprep.subr.msk.mxu0 %vm5936_vm6, %v12263_v63  ;;  %vm5916_vm4 = vcmp.eq.s32.totalorder %v9132_v29, %v10847_v20  ;;  %vm5457_vm6 = vcmp.eq.s32.totalorder %v9168_v33, %v10840_v39 }
 0x333   :  { %8780 = vmatprep.subr.msk.mxu1 %vm5462_vm7, %v12263_v63  ;;  %8359 = vmatpush3.msk.msra.mxu0 %vm5920_vm8, %v12263_v63  ;;  %vm5930_vm8 = vcmp.eq.s32.totalorder %v12274_v61, %v10847_v20 }
 0x334   :  { %8781 = vmatpush3.msk.msra.mxu1 %vm5462_vm7, %v12263_v63  ;;  %8360 = vmatprep.subr.msk.mxu0 %vm5935_vm9, %v12263_v63  ;;  %vm5915_vm7 = vcmp.eq.s32.totalorder %v9150_v31, %v10847_v20  ;;  %vm5456_vm9 = vcmp.eq.s32.totalorder %v9186_v35, %v10840_v39 }
 0x335   :  { %8782 = vmatprep.subr.msk.mxu1 %vm5461_vm10, %v12263_v63  ;;  %8361 = vmatpush3.msk.msra.mxu0 %vm5919_vm11, %v12263_v63  ;;  %vm5929_vm11 = vcmp.eq.s32.totalorder %v12275_v1, %v10847_v20 }
 0x336   :  { %8783 = vmatpush3.msk.msra.mxu1 %vm5461_vm10, %v12263_v63  ;;  %8362 = vmatprep.subr.msk.mxu0 %vm5934_vm12, %v12263_v63  ;;  %vm5914_vm10 = vcmp.eq.s32.totalorder %v9168_v33, %v10847_v20  ;;  %vm5455_vm12 = vcmp.eq.s32.totalorder %v8936_v2, %v10840_v39 }
 0x337   :  { %8784 = vmatprep.subr.msk.mxu1 %vm5460_vm13, %v12263_v63  ;;  %8363 = vmatpush3.msk.msra.mxu0 %vm5918_vm14, %v12263_v63  ;;  %vm5928_vm14 = vcmp.eq.s32.totalorder %v12276_v43, %v10847_v20 }
 0x338   :  { %8785 = vmatpush3.msk.msra.mxu1 %vm5460_vm13, %v12263_v63  ;;  %8364 = vmatprep.subr.msk.mxu0 %vm5933_vm15, %v12263_v63  ;;  %vm5913_vm13 = vcmp.eq.s32.totalorder %v9186_v35, %v10847_v20  ;;  %vm5842_vm15 = vcmp.eq.s32.totalorder %v8949_v5, %v11002_v24 }
 0x339   :  { %8786 = vmatprep.subr.msk.mxu1 %vm5459_vm0, %v12263_v63  ;;  %8365 = vmatpush3.msk.msra.mxu0 %vm5917_vm1, %v12263_v63  ;;  %vm5826_vm1 = vcmp.eq.s32.totalorder %v8952_v6, %v11002_v24 }
 0x33a   :  { %8787 = vmatpush3.msk.msra.mxu1 %vm5459_vm0, %v12263_v63  ;;  %8366 = vmatprep.subr.msk.mxu0 %vm5932_vm2, %v12263_v63  ;;  %vm5912_vm0 = vcmp.eq.s32.totalorder %v8936_v2, %v10847_v20  ;;  %vm5841_vm2 = vcmp.eq.s32.totalorder %v8955_v7, %v11002_v24  ;;  %v11396_v20 = vld [vmem:[%s12208_s6 + $0x40] sm:$0xff] }
 0x33b   :  { %8788 = vmatprep.subr.msk.mxu1 %vm5458_vm3, %v12263_v63  ;;  %8367 = vmatpush3.msk.msra.mxu0 %vm5916_vm4, %v12263_v63  ;;  %vm5825_vm4 = vcmp.eq.s32.totalorder %v8958_v8, %v11002_v24 }
 0x33c   :  { %8789 = vmatpush3.msk.msra.mxu1 %vm5458_vm3, %v12263_v63  ;;  %8368 = vmatprep.subr.msk.mxu0 %vm5931_vm5, %v12263_v63  ;;  %vm6184_vm3 = vcmp.eq.s32.totalorder %v8949_v5, %v11021_v3  ;;  %vm6168_vm5 = vcmp.eq.s32.totalorder %v8952_v6, %v11021_v3 }
 0x33d   :  { %8790 = vmatprep.subr.msk.mxu1 %vm5457_vm6, %v12263_v63  ;;  %8369 = vmatpush3.msk.msra.mxu0 %vm5915_vm7, %v12263_v63  ;;  %vm6183_vm7 = vcmp.eq.s32.totalorder %v8955_v7, %v11021_v3 }
 0x33e   :  { %8791 = vmatpush3.msk.msra.mxu1 %vm5457_vm6, %v12263_v63  ;;  %8370 = vmatprep.subr.msk.mxu0 %vm5930_vm8, %v12263_v63  ;;  %vm5840_vm6 = vcmp.eq.s32.totalorder %v8961_v9, %v11002_v24  ;;  %vm5824_vm8 = vcmp.eq.s32.totalorder %v8964_v10, %v11002_v24 }
 0x33f   :  { %8792 = vmatprep.subr.msk.mxu1 %vm5456_vm9, %v12263_v63  ;;  %8371 = vmatpush3.msk.msra.mxu0 %vm5914_vm10, %v12263_v63  ;;  %vm5839_vm10 = vcmp.eq.s32.totalorder %v12264_v36, %v11002_v24 }
 0x340   :  { %8793 = vmatpush3.msk.msra.mxu1 %vm5456_vm9, %v12263_v63  ;;  %8372 = vmatprep.subr.msk.mxu0 %vm5929_vm11, %v12263_v63  ;;  %vm6167_vm9 = vcmp.eq.s32.totalorder %v8958_v8, %v11021_v3  ;;  %vm6182_vm11 = vcmp.eq.s32.totalorder %v8961_v9, %v11021_v3 }
 0x341   :  { %8794 = vmatprep.subr.msk.mxu1 %vm5455_vm12, %v12263_v63  ;;  %8373 = vmatpush3.msk.msra.mxu0 %vm5913_vm13, %v12263_v63  ;;  %vm6166_vm13 = vcmp.eq.s32.totalorder %v8964_v10, %v11021_v3 }
 0x342   :  { %8795 = vmatpush3.msk.msra.mxu1 %vm5455_vm12, %v12263_v63  ;;  %8374 = vmatprep.subr.msk.mxu0 %vm5928_vm14, %v12263_v63  ;;  %vm5823_vm12 = vcmp.eq.s32.totalorder %v8986_v13, %v11002_v24  ;;  %vm5838_vm14 = vcmp.eq.s32.totalorder %v12265_v60, %v11002_v24 }
 0x343   :  { %8797 = vmatmul.mubr.f32.vlgmr.msra.gmra.mxu1 %v10425_v56  ;;  %8379 = vmatprep.subr.msk.mxu1 %vm5842_vm15, %v12263_v63  ;;  %vm6181_vm15 = vcmp.eq.s32.totalorder %v12264_v36, %v11021_v3 }
 0x344   :  { %8375 = vmatpush3.msk.msra.mxu0 %vm5912_vm0, %v12263_v63  ;;  %8380 = vmatpush3.msk.msra.mxu1 %vm5826_vm1, %v12263_v63  ;;  %vm5822_vm0 = vcmp.eq.s32.totalorder %v9006_v15, %v11002_v24  ;;  %vm6165_vm1 = vcmp.eq.s32.totalorder %v8986_v13, %v11021_v3 }
 0x345   :  { %6072 = vmatprep.mubr.f32.mxu0 %v11046_v42  ;;  %8381 = vmatprep.subr.msk.mxu1 %vm5841_vm2, %v12263_v63  ;;  %vm5837_vm2 = vcmp.eq.s32.totalorder %v12266_v50, %v11002_v24 }
 0x346   :  { %8414 = vmatprep.subr.msk.mxu0 %vm6184_vm3, %v12263_v63  ;;  %6073 = vmatmul.mubr.f32.vlgmr.msra.gmra.mxu0 %v11058_v34  ;;  %vm6180_vm3 = vcmp.eq.s32.totalorder %v12265_v60, %v11021_v3 }
 0x347   :  { %8382 = vmatpush3.msk.msra.mxu1 %vm5825_vm4, %v12263_v63  ;;  %8415 = vmatpush3.msk.msra.mxu0 %vm6168_vm5, %v12263_v63  ;;  %vm5821_vm4 = vcmp.eq.s32.totalorder %v9024_v17, %v11002_v24  ;;  %vm6164_vm5 = vcmp.eq.s32.totalorder %v9006_v15, %v11021_v3 }
 0x348   :  { %8383 = vmatprep.subr.msk.mxu1 %vm5840_vm6, %v12263_v63  ;;  %8416 = vmatprep.subr.msk.mxu0 %vm6183_vm7, %v12263_v63  ;;  %vm5836_vm6 = vcmp.eq.s32.totalorder %v12267_v18, %v11002_v24  ;;  %vm6179_vm7 = vcmp.eq.s32.totalorder %v12266_v50, %v11021_v3 }
 0x349   :  { %8384 = vmatpush3.msk.msra.mxu1 %vm5824_vm8, %v12263_v63  ;;  %8417 = vmatpush3.msk.msra.mxu0 %vm6167_vm9, %v12263_v63  ;;  %vm5820_vm8 = vcmp.eq.s32.totalorder %v9042_v19, %v11002_v24  ;;  %vm6163_vm9 = vcmp.eq.s32.totalorder %v9024_v17, %v11021_v3 }
 0x34a   :  { %8385 = vmatprep.subr.msk.mxu1 %vm5839_vm10, %v12263_v63  ;;  %8418 = vmatprep.subr.msk.mxu0 %vm6182_vm11, %v12263_v63  ;;  %vm5835_vm10 = vcmp.eq.s32.totalorder %v12268_v0, %v11002_v24  ;;  %vm6178_vm11 = vcmp.eq.s32.totalorder %v12267_v18, %v11021_v3 }
 0x34b   :  { %8386 = vmatpush3.msk.msra.mxu1 %vm5823_vm12, %v12263_v63  ;;  %8419 = vmatpush3.msk.msra.mxu0 %vm6166_vm13, %v12263_v63  ;;  %vm5819_vm12 = vcmp.eq.s32.totalorder %v9060_v21, %v11002_v24  ;;  %vm6162_vm13 = vcmp.eq.s32.totalorder %v9042_v19, %v11021_v3 }
 0x34c   :  { %8387 = vmatprep.subr.msk.mxu1 %vm5838_vm14, %v12263_v63  ;;  %8420 = vmatprep.subr.msk.mxu0 %vm6181_vm15, %v12263_v63  ;;  %vm5834_vm14 = vcmp.eq.s32.totalorder %v12269_v14, %v11002_v24  ;;  %vm6177_vm15 = vcmp.eq.s32.totalorder %v12268_v0, %v11021_v3 }
 0x34d   :  { %8388 = vmatpush3.msk.msra.mxu1 %vm5822_vm0, %v12263_v63  ;;  %8421 = vmatpush3.msk.msra.mxu0 %vm6165_vm1, %v12263_v63  ;;  %vm5818_vm0 = vcmp.eq.s32.totalorder %v9078_v23, %v11002_v24  ;;  %vm6161_vm1 = vcmp.eq.s32.totalorder %v9060_v21, %v11021_v3 }
 0x34e   :  { %8389 = vmatprep.subr.msk.mxu1 %vm5837_vm2, %v12263_v63  ;;  %8422 = vmatprep.subr.msk.mxu0 %vm6180_vm3, %v12263_v63  ;;  %vm5833_vm2 = vcmp.eq.s32.totalorder %v12270_v48, %v11002_v24  ;;  %vm6176_vm3 = vcmp.eq.s32.totalorder %v12269_v14, %v11021_v3 }
 0x34f   :  { %8390 = vmatpush3.msk.msra.mxu1 %vm5821_vm4, %v12263_v63  ;;  %8423 = vmatpush3.msk.msra.mxu0 %vm6164_vm5, %v12263_v63  ;;  %vm5817_vm4 = vcmp.eq.s32.totalorder %v9096_v25, %v11002_v24  ;;  %vm6160_vm5 = vcmp.eq.s32.totalorder %v9078_v23, %v11021_v3 }
 0x350   :  { %8391 = vmatprep.subr.msk.mxu1 %vm5836_vm6, %v12263_v63  ;;  %8424 = vmatprep.subr.msk.mxu0 %vm6179_vm7, %v12263_v63  ;;  %vm5832_vm6 = vcmp.eq.s32.totalorder %v12271_v22, %v11002_v24  ;;  %vm6175_vm7 = vcmp.eq.s32.totalorder %v12270_v48, %v11021_v3 }
 0x351   :  { %8392 = vmatpush3.msk.msra.mxu1 %vm5820_vm8, %v12263_v63  ;;  %8425 = vmatpush3.msk.msra.mxu0 %vm6163_vm9, %v12263_v63  ;;  %vm5816_vm8 = vcmp.eq.s32.totalorder %v9114_v27, %v11002_v24  ;;  %vm6159_vm9 = vcmp.eq.s32.totalorder %v9096_v25, %v11021_v3 }
 0x352   :  { %8393 = vmatprep.subr.msk.mxu1 %vm5835_vm10, %v12263_v63  ;;  %8426 = vmatprep.subr.msk.mxu0 %vm6178_vm11, %v12263_v63  ;;  %vm5831_vm10 = vcmp.eq.s32.totalorder %v12272_v32, %v11002_v24  ;;  %vm6174_vm11 = vcmp.eq.s32.totalorder %v12271_v22, %v11021_v3 }
 0x353   :  { %8394 = vmatpush3.msk.msra.mxu1 %vm5819_vm12, %v12263_v63  ;;  %8427 = vmatpush3.msk.msra.mxu0 %vm6162_vm13, %v12263_v63  ;;  %vm5815_vm12 = vcmp.eq.s32.totalorder %v9132_v29, %v11002_v24  ;;  %vm6158_vm13 = vcmp.eq.s32.totalorder %v9114_v27, %v11021_v3 }
 0x354   :  { %8395 = vmatprep.subr.msk.mxu1 %vm5834_vm14, %v12263_v63  ;;  %8428 = vmatprep.subr.msk.mxu0 %vm6177_vm15, %v12263_v63  ;;  %vm5830_vm14 = vcmp.eq.s32.totalorder %v12273_v49, %v11002_v24  ;;  %vm6173_vm15 = vcmp.eq.s32.totalorder %v12272_v32, %v11021_v3 }
 0x355   :  { %8396 = vmatpush3.msk.msra.mxu1 %vm5818_vm0, %v12263_v63  ;;  %8429 = vmatpush3.msk.msra.mxu0 %vm6161_vm1, %v12263_v63  ;;  %vm5814_vm0 = vcmp.eq.s32.totalorder %v9150_v31, %v11002_v24  ;;  %vm6157_vm1 = vcmp.eq.s32.totalorder %v9132_v29, %v11021_v3 }
 0x356   :  { %8397 = vmatprep.subr.msk.mxu1 %vm5833_vm2, %v12263_v63  ;;  %8430 = vmatprep.subr.msk.mxu0 %vm6176_vm3, %v12263_v63  ;;  %vm5829_vm2 = vcmp.eq.s32.totalorder %v12274_v61, %v11002_v24  ;;  %vm6172_vm3 = vcmp.eq.s32.totalorder %v12273_v49, %v11021_v3 }
 0x357   :  { %8398 = vmatpush3.msk.msra.mxu1 %vm5817_vm4, %v12263_v63  ;;  %8431 = vmatpush3.msk.msra.mxu0 %vm6160_vm5, %v12263_v63  ;;  %vm5813_vm4 = vcmp.eq.s32.totalorder %v9168_v33, %v11002_v24  ;;  %vm6156_vm5 = vcmp.eq.s32.totalorder %v9150_v31, %v11021_v3 }
 0x358   :  { %8399 = vmatprep.subr.msk.mxu1 %vm5832_vm6, %v12263_v63  ;;  %8432 = vmatprep.subr.msk.mxu0 %vm6175_vm7, %v12263_v63  ;;  %vm5828_vm6 = vcmp.eq.s32.totalorder %v12275_v1, %v11002_v24  ;;  %vm6171_vm7 = vcmp.eq.s32.totalorder %v12274_v61, %v11021_v3 }
 0x359   :  { %8400 = vmatpush3.msk.msra.mxu1 %vm5816_vm8, %v12263_v63  ;;  %8433 = vmatpush3.msk.msra.mxu0 %vm6159_vm9, %v12263_v63  ;;  %vm5812_vm8 = vcmp.eq.s32.totalorder %v9186_v35, %v11002_v24  ;;  %vm6155_vm9 = vcmp.eq.s32.totalorder %v9168_v33, %v11021_v3 }
 0x35a   :  { %8401 = vmatprep.subr.msk.mxu1 %vm5831_vm10, %v12263_v63  ;;  %8434 = vmatprep.subr.msk.mxu0 %vm6174_vm11, %v12263_v63  ;;  %vm5827_vm10 = vcmp.eq.s32.totalorder %v12276_v43, %v11002_v24  ;;  %vm6170_vm11 = vcmp.eq.s32.totalorder %v12275_v1, %v11021_v3 }
 0x35b   :  { %8402 = vmatpush3.msk.msra.mxu1 %vm5815_vm12, %v12263_v63  ;;  %8435 = vmatpush3.msk.msra.mxu0 %vm6158_vm13, %v12263_v63  ;;  %vm5811_vm12 = vcmp.eq.s32.totalorder %v8936_v2, %v11002_v24  ;;  %vm6154_vm13 = vcmp.eq.s32.totalorder %v9186_v35, %v11021_v3 }
 0x35c   :  { %8403 = vmatprep.subr.msk.mxu1 %vm5830_vm14, %v12263_v63  ;;  %8436 = vmatprep.subr.msk.mxu0 %vm6173_vm15, %v12263_v63  ;;  %vm6169_vm14 = vcmp.eq.s32.totalorder %v12276_v43, %v11021_v3  ;;  %vm6356_vm15 = vcmp.eq.s32.totalorder %v8949_v5, %v11218_v53 }
 0x35d   :  { %8404 = vmatpush3.msk.msra.mxu1 %vm5814_vm0, %v12263_v63  ;;  %8437 = vmatpush3.msk.msra.mxu0 %vm6157_vm1, %v12263_v63  ;;  %vm6153_vm0 = vcmp.eq.s32.totalorder %v8936_v2, %v11021_v3  ;;  %vm6340_vm1 = vcmp.eq.s32.totalorder %v8952_v6, %v11218_v53 }
 0x35e   :  { %8405 = vmatprep.subr.msk.mxu1 %vm5829_vm2, %v12263_v63  ;;  %8438 = vmatprep.subr.msk.mxu0 %vm6172_vm3, %v12263_v63  ;;  %vm6355_vm2 = vcmp.eq.s32.totalorder %v8955_v7, %v11218_v53  ;;  %vm6339_vm3 = vcmp.eq.s32.totalorder %v8958_v8, %v11218_v53 }
 0x35f   :  { %8406 = vmatpush3.msk.msra.mxu1 %vm5813_vm4, %v12263_v63  ;;  %8439 = vmatpush3.msk.msra.mxu0 %vm6156_vm5, %v12263_v63  ;;  %vm6354_vm4 = vcmp.eq.s32.totalorder %v8961_v9, %v11218_v53  ;;  %vm6338_vm5 = vcmp.eq.s32.totalorder %v8964_v10, %v11218_v53 }
 0x360   :  { %8407 = vmatprep.subr.msk.mxu1 %vm5828_vm6, %v12263_v63  ;;  %8440 = vmatprep.subr.msk.mxu0 %vm6171_vm7, %v12263_v63  ;;  %vm6353_vm6 = vcmp.eq.s32.totalorder %v12264_v36, %v11218_v53  ;;  %vm6337_vm7 = vcmp.eq.s32.totalorder %v8986_v13, %v11218_v53  ;;  %v11401_v36 = vld [vmem:[%s12208_s6 + $0x48] sm:$0xff] }
 0x361   :  { %8408 = vmatpush3.msk.msra.mxu1 %vm5812_vm8, %v12263_v63  ;;  %8441 = vmatpush3.msk.msra.mxu0 %vm6155_vm9, %v12263_v63  ;;  %vm6352_vm8 = vcmp.eq.s32.totalorder %v12265_v60, %v11218_v53  ;;  %vm6336_vm9 = vcmp.eq.s32.totalorder %v9006_v15, %v11218_v53 }
 0x362   :  { %8409 = vmatprep.subr.msk.mxu1 %vm5827_vm10, %v12263_v63  ;;  %8442 = vmatprep.subr.msk.mxu0 %vm6170_vm11, %v12263_v63  ;;  %vm6351_vm10 = vcmp.eq.s32.totalorder %v12266_v50, %v11218_v53  ;;  %vm6335_vm11 = vcmp.eq.s32.totalorder %v9024_v17, %v11218_v53  ;;  %v11406_v50 = vld [vmem:[%s12208_s6 + $0x28] sm:$0xff] }
 0x363   :  { %8410 = vmatpush3.msk.msra.mxu1 %vm5811_vm12, %v12263_v63  ;;  %6142 = vmatprep.mubr.f32.mxu1 %v11046_v42  ;;  %vm6350_vm12 = vcmp.eq.s32.totalorder %v12267_v18, %v11218_v53  ;;  %v11411_v18 = vld [vmem:[%s12208_s6 + $0x30] sm:$0xff] }
 0x364   :  { %8443 = vmatpush3.msk.msra.mxu0 %vm6154_vm13, %v12263_v63  ;;  %6143 = vmatmul.mubr.f32.vlgmr.msra.gmra.mxu1 %v11058_v34  ;;  %vm6334_vm13 = vcmp.eq.s32.totalorder %v9042_v19, %v11218_v53 }
 0x365   :  { %8444 = vmatprep.subr.msk.mxu0 %vm6169_vm14, %v12263_v63  ;;  %8449 = vmatprep.subr.msk.mxu1 %vm6356_vm15, %v12263_v63  ;;  %vm6349_vm14 = vcmp.eq.s32.totalorder %v12268_v0, %v11218_v53  ;;  %vm6333_vm15 = vcmp.eq.s32.totalorder %v9060_v21, %v11218_v53 }
 0x366   :  { %8445 = vmatpush3.msk.msra.mxu0 %vm6153_vm0, %v12263_v63  ;;  %6313 = vmatprep.mubr.f32.mxu0 %v11046_v42  ;;  %vm6348_vm0 = vcmp.eq.s32.totalorder %v12269_v14, %v11218_v53 }
 0x367   :  { %8450 = vmatpush3.msk.msra.mxu1 %vm6340_vm1, %v12263_v63  ;;  %6314 = vmatmul.mubr.f32.vlgmr.msra.gmra.mxu0 %v11058_v34  ;;  %vm6332_vm1 = vcmp.eq.s32.totalorder %v9078_v23, %v11218_v53 }
 0x368   :  { %8451 = vmatprep.subr.msk.mxu1 %vm6355_vm2, %v12263_v63  ;;  %6485 = vmatprep.mubr.f32.mxu1 %v11046_v42  ;;  %vm6347_vm2 = vcmp.eq.s32.totalorder %v12270_v48, %v11218_v53 }
 0x369   :  { %8452 = vmatpush3.msk.msra.mxu1 %vm6339_vm3, %v12263_v63  ;;  %vm6331_vm3 = vcmp.eq.s32.totalorder %v9096_v25, %v11218_v53 }
 0x36a   :  { %8453 = vmatprep.subr.msk.mxu1 %vm6354_vm4, %v12263_v63  ;;  %vm6346_vm4 = vcmp.eq.s32.totalorder %v12271_v22, %v11218_v53 }
 0x36b   :  { %8454 = vmatpush3.msk.msra.mxu1 %vm6338_vm5, %v12263_v63  ;;  %vm6330_vm5 = vcmp.eq.s32.totalorder %v9114_v27, %v11218_v53 }
 0x36c   :  { %8455 = vmatprep.subr.msk.mxu1 %vm6353_vm6, %v12263_v63  ;;  %vm6345_vm6 = vcmp.eq.s32.totalorder %v12272_v32, %v11218_v53 }
 0x36d   :  { %8456 = vmatpush3.msk.msra.mxu1 %vm6337_vm7, %v12263_v63  ;;  %vm6329_vm7 = vcmp.eq.s32.totalorder %v9132_v29, %v11218_v53 }
 0x36e   :  { %8457 = vmatprep.subr.msk.mxu1 %vm6352_vm8, %v12263_v63  ;;  %vm6344_vm8 = vcmp.eq.s32.totalorder %v12273_v49, %v11218_v53 }
 0x36f   :  { %8458 = vmatpush3.msk.msra.mxu1 %vm6336_vm9, %v12263_v63  ;;  %vm6328_vm9 = vcmp.eq.s32.totalorder %v9150_v31, %v11218_v53 }
 0x370   :  { %8459 = vmatprep.subr.msk.mxu1 %vm6351_vm10, %v12263_v63  ;;  %vm6343_vm10 = vcmp.eq.s32.totalorder %v12274_v61, %v11218_v53 }
 0x371   :  { %8460 = vmatpush3.msk.msra.mxu1 %vm6335_vm11, %v12263_v63  ;;  %vm6327_vm11 = vcmp.eq.s32.totalorder %v9168_v33, %v11218_v53 }
 0x372   :  { %8461 = vmatprep.subr.msk.mxu1 %vm6350_vm12, %v12263_v63  ;;  %vm6342_vm12 = vcmp.eq.s32.totalorder %v12275_v1, %v11218_v53  ;;  %v11422_v1 = vld [vmem:[%s12208_s6 + $0x50] sm:$0xff] }
 0x373   :  { %8462 = vmatpush3.msk.msra.mxu1 %vm6334_vm13, %v12263_v63  ;;  %vm6326_vm13 = vcmp.eq.s32.totalorder %v9186_v35, %v11218_v53  ;;  %v11353_v35 = vld [vmem:[%s12208_s6] sm:$0xff] }
 0x374   :  { %8463 = vmatprep.subr.msk.mxu1 %vm6349_vm14, %v12263_v63  ;;  %vm6341_vm14 = vcmp.eq.s32.totalorder %v12276_v43, %v11218_v53 }
 0x375   :  { %8464 = vmatpush3.msk.msra.mxu1 %vm6333_vm15, %v12263_v63  ;;  %vm6325_vm15 = vcmp.eq.s32.totalorder %v8936_v2, %v11218_v53 }
 0x376   :  { %8465 = vmatprep.subr.msk.mxu1 %vm6348_vm0, %v12263_v63 }
 0x377   :  { %8466 = vmatpush3.msk.msra.mxu1 %vm6332_vm1, %v12263_v63 }
 0x378   :  { %8467 = vmatprep.subr.msk.mxu1 %vm6347_vm2, %v12263_v63 }
 0x379   :  { %8468 = vmatpush3.msk.msra.mxu1 %vm6331_vm3, %v12263_v63 }
 0x37a   :  { %8469 = vmatprep.subr.msk.mxu1 %vm6346_vm4, %v12263_v63 }
 0x37b   :  { %8470 = vmatpush3.msk.msra.mxu1 %vm6330_vm5, %v12263_v63 }
 0x37c   :  { %8471 = vmatprep.subr.msk.mxu1 %vm6345_vm6, %v12263_v63 }
 0x37d   :  { %8472 = vmatpush3.msk.msra.mxu1 %vm6329_vm7, %v12263_v63  ;;  %v8518_v5 = vpop.f32.mrf.mxu1  ;;  %v8553_v6 = vpop.f32.mrf.mxu0 }
 0x37e   :  { %8473 = vmatprep.subr.msk.mxu1 %vm6344_vm8, %v12263_v63  ;;  %v2853_v7 = vcombine.high %v8518_v5, %v8518_v5  ;;  %v2860_v8 = vrot.slane %v8518_v5, %v9965_v55  ;;  %v3201_v9 = vcombine.high %v8553_v6, %v8553_v6  ;;  %v3208_v10 = vrot.slane %v8553_v6, %v9965_v55 }
 0x37f   :  { %8474 = vmatpush3.msk.msra.mxu1 %vm6328_vm9, %v12263_v63  ;;  %v2785_v28 = vpop.f32.mrf.mxu1 }
 0x380   :  { %8475 = vmatprep.subr.msk.mxu1 %vm6343_vm10, %v12263_v63  ;;  %v2867_v13 = vrot.slane %v2853_v7, %v9965_v55  ;;  %v2868_v15 = vcombine.high %v2860_v8, %v2860_v8  ;;  %v2876_v17 = vrot.slane %v2860_v8, %v9965_v55  ;;  %v3215_v19 = vrot.slane %v3201_v9, %v9965_v55  ;;  %v11433_v8 = vld [vmem:[%s12208_s6 + $0x58] sm:$0xff] }
 0x381   :  { %8476 = vmatpush3.msk.msra.mxu1 %vm6327_vm11, %v12263_v63  ;;  %v3216_v21 = vcombine.high %v3208_v10, %v3208_v10  ;;  %v3224_v33 = vrot.slane %v3208_v10, %v9965_v55  ;;  %v2804_v51 = vcombine.high %v2785_v28, %v2785_v28  ;;  %v2811_v22 = vrot.slane %v2785_v28, %v9965_v55 }
 0x382   :  { %8477 = vmatprep.subr.msk.mxu1 %vm6342_vm12, %v12263_v63  ;;  %v2869_v23 = vcombine.high %v2867_v13, %v2867_v13  ;;  %v2883_v25 = vrot.slane %v2867_v13, %v9965_v55  ;;  %v2890_v27 = vrot.slane %v2868_v15, %v9965_v55  ;;  %v2898_v29 = vcombine.high %v2876_v17, %v2876_v17 }
 0x383   :  { %8478 = vmatpush3.msk.msra.mxu1 %vm6326_vm13, %v12263_v63  ;;  %v2937_v31 = vrot.slane %v2876_v17, %v9972_v37  ;;  %v3217_v57 = vcombine.high %v3215_v19, %v3215_v19  ;;  %v3238_v58 = vrot.slane %v3216_v21, %v9965_v55  ;;  %v3231_v38 = vrot.slane %v3215_v19, %v9965_v55  ;;  %v3133_v17 = vpop.f32.mrf.mxu0  ;;  %v11441_v21 = vld [vmem:[%s12208_s6 + $0x60] sm:$0xff] }
 0x384   :  { %8479 = vmatprep.subr.msk.mxu1 %vm6341_vm14, %v12263_v63  ;;  %v2897_v30 = vrot.slane %v2869_v23, %v9965_v55  ;;  %v2900_v47 = vcombine.high %v2890_v27, %v2890_v27  ;;  %v2941_v46 = vrot.slane %v2890_v27, %v9972_v37  ;;  %v2899_v41 = vcombine.high %v2883_v25, %v2883_v25 }
 0x385   :  { %8480 = vmatpush3.msk.msra.mxu1 %vm6325_vm15, %v12263_v63  ;;  %v2945_v12 = vrot.slane %v2898_v29, %v9972_v37  ;;  %v2953_v4 = vrot.slane %v2883_v25, %v9972_v37  ;;  %v2990_v63 = vmul.f32 %v2937_v31, %v11353_v35  ;;  %v3246_v16 = vcombine.high %v3224_v33, %v3224_v33  ;;  %v11448_v29 = vld [vmem:[%s12208_s6 + $0x68] sm:$0xff] }
 0x386   :  { %6486 = vmatmul.mubr.f32.vlgmr.msra.gmra.mxu1 %v11058_v34  ;;  %v2949_v2 = vrot.slane %v2900_v47, %v9972_v37  ;;  %v2991_v40 = vmul.f32 %v2941_v46, %v11358_v54  ;;  %v2901_v52 = vcombine.high %v2897_v30, %v2897_v30  ;;  %v2957_v56 = vrot.slane %v2897_v30, %v9972_v37 }
 0x387   :  { %v3245_v62 = vrot.slane %v3217_v57, %v9965_v55  ;;  %v2961_v26 = vrot.slane %v2899_v41, %v9972_v37  ;;  %v2992_v59 = vmul.f32 %v2945_v12, %v11372_v45  ;;  %v3248_v60 = vcombine.high %v3238_v58, %v3238_v58 }
 0x388   :  { %v3005_v39 = vadd.f32 %v2991_v40, %v2990_v63  ;;  %v3285_v0 = vrot.slane %v3224_v33, %v9972_v37  ;;  %v3289_v14 = vrot.slane %v3238_v58, %v9972_v37  ;;  %v3293_v48 = vrot.slane %v3246_v16, %v9972_v37  ;;  %v2801_v58 = vld [vmem:[%s12208_s6 + $0x38] sm:$0xff] }
 0x389   :  { %v2993_v32 = vmul.f32 %v2949_v2, %v11382_v44  ;;  %v2994_v49 = vmul.f32 %v2953_v4, %v11387_v11  ;;  %v3247_v24 = vcombine.high %v3231_v38, %v3231_v38  ;;  %v3249_v43 = vcombine.high %v3245_v62, %v3245_v62 }
 0x38a   :  { %v3006_v61 = vadd.f32 %v3005_v39, %v2992_v59  ;;  %v3297_v3 = vrot.slane %v3248_v60, %v9972_v37  ;;  %v3338_v42 = vmul.f32 %v3285_v0, %v11396_v20  ;;  %v3339_v34 = vmul.f32 %v3289_v14, %v11401_v36 }
 0x38b   :  { %v2965_v53 = vrot.slane %v2901_v52, %v9972_v37  ;;  %v2995_v5 = vmul.f32 %v2957_v56, %v11406_v50  ;;  %v2996_v6 = vmul.f32 %v2961_v26, %v11411_v18  ;;  %v3301_v9 = vrot.slane %v3231_v38, %v9972_v37  ;;  %v11464_v56 = vld [vmem:[%s12208_s6 + $0x70] sm:$0xff] }
 0x38c   :  { %v3007_v7 = vadd.f32 %v3006_v61, %v2993_v32  ;;  %v3305_v10 = vrot.slane %v3245_v62, %v9972_v37  ;;  %v3340_v13 = vmul.f32 %v3293_v48, %v11422_v1  ;;  %v3353_v15 = vadd.f32 %v3339_v34, %v3338_v42  ;;  %v11469_v62 = vld [vmem:[%s12208_s6 + $0x78] sm:$0xff] }
 0x38d   :  { %v2818_v23 = vrot.slane %v2804_v51, %v9965_v55  ;;  %v2819_v25 = vcombine.high %v2811_v22, %v2811_v22  ;;  %v2827_v27 = vrot.slane %v2811_v22, %v9965_v55  ;;  %v3309_v31 = vrot.slane %v3247_v24, %v9972_v37 }
 0x38e   :  { %v3008_v19 = vadd.f32 %v3007_v7, %v2994_v49  ;;  %v3313_v33 = vrot.slane %v3249_v43, %v9972_v37  ;;  %v3341_v30 = vmul.f32 %v3297_v3, %v11433_v8  ;;  %v3354_v47 = vadd.f32 %v3353_v15, %v3340_v13 }
 0x38f   :  { %v2820_v57 = vcombine.high %v2818_v23, %v2818_v23  ;;  %v2841_v41 = vrot.slane %v2819_v25, %v9965_v55  ;;  %v3152_v12 = vcombine.high %v3133_v17, %v3133_v17  ;;  %v3342_v28 = vmul.f32 %v3301_v9, %v11441_v21 }
 0x390   :  { %v3009_v46 = vadd.f32 %v3008_v19, %v2995_v5  ;;  %v3355_v4 = vadd.f32 %v3354_v47, %v3341_v30  ;;  %v2849_v38 = vcombine.high %v2827_v27, %v2827_v27  ;;  %v2905_v2 = vrot.slane %v2827_v27, %v9972_v37 }
 0x391   :  { %v3343_v40 = vmul.f32 %v3305_v10, %v11448_v29  ;;  %v2834_v16 = vrot.slane %v2818_v23, %v9965_v55  ;;  %v2851_v52 = vcombine.high %v2841_v41, %v2841_v41  ;;  %v2848_v26 = vrot.slane %v2820_v57, %v9965_v55 }
 0x392   :  { %v3010_v63 = vadd.f32 %v3009_v46, %v2996_v6  ;;  %v3356_v51 = vadd.f32 %v3355_v4, %v3342_v28  ;;  %v2909_v59 = vrot.slane %v2841_v41, %v9972_v37  ;;  %v2913_v39 = vrot.slane %v2849_v38, %v9972_v37 }
 0x393   :  { %v2997_v60 = vmul.f32 %v2965_v53, %v2801_v58  ;;  %v3159_v0 = vrot.slane %v3133_v17, %v9965_v55  ;;  %v3166_v14 = vrot.slane %v3152_v12, %v9965_v55  ;;  %v2917_v22 = vrot.slane %v2851_v52, %v9972_v37 }
 0x394   :  { %v3357_v48 = vadd.f32 %v3356_v51, %v3343_v40  ;;  %v2982_v32 = vmul.f32 %v2905_v2, %v11353_v35  ;;  %v2983_v49 = vmul.f32 %v2909_v59, %v11358_v54  ;;  %v3344_v61 = vmul.f32 %v3309_v31, %v11464_v56 }
 0x395   :  { %v3345_v24 = vmul.f32 %v3313_v33, %v11469_v62  ;;  %v2850_v43 = vcombine.high %v2834_v16, %v2834_v16  ;;  %v2921_v3 = vrot.slane %v2834_v16, %v9972_v37  ;;  %v3011_v42 = vadd.f32 %v3010_v63, %v2997_v60 }
 0x396   :  { %v2852_v34 = vcombine.high %v2848_v26, %v2848_v26  ;;  %v2984_v53 = vmul.f32 %v2913_v39, %v11372_v45  ;;  %v2998_v5 = vadd.f32 %v2983_v49, %v2982_v32  ;;  %v3358_v6 = vadd.f32 %v3357_v48, %v3344_v61 }
 0x397   :  { %v3167_v7 = vcombine.high %v3159_v0, %v3159_v0  ;;  %v3168_v9 = vcombine.high %v3166_v14, %v3166_v14  ;;  %v3175_v10 = vrot.slane %v3159_v0, %v9965_v55  ;;  %v2925_v35 = vrot.slane %v2848_v26, %v9972_v37 }
 0x398   :  { %v2985_v54 = vmul.f32 %v2917_v22, %v11382_v44  ;;  %v2999_v13 = vadd.f32 %v2998_v5, %v2984_v53  ;;  %v3182_v15 = vrot.slane %v3166_v14, %v9965_v55  ;;  %v2929_v25 = vrot.slane %v2850_v43, %v9972_v37 }
 0x399   :  { %v3189_v17 = vrot.slane %v3167_v7, %v9965_v55  ;;  %v3196_v19 = vrot.slane %v3168_v9, %v9965_v55  ;;  %v3197_v23 = vcombine.high %v3175_v10, %v3175_v10  ;;  %v3253_v45 = vrot.slane %v3175_v10, %v9972_v37 }
 0x39a   :  { %v2933_v27 = vrot.slane %v2852_v34, %v9972_v37  ;;  %v2986_v31 = vmul.f32 %v2921_v3, %v11387_v11  ;;  %v3000_v33 = vadd.f32 %v2999_v13, %v2985_v54  ;;  %v3359_v30 = vadd.f32 %v3358_v6, %v3345_v24  ;;  %v11526_v6 = vld [vmem:[%s12208_s6 + $0x88] sm:$0xff] }
 0x39b   :  { %v3199_v47 = vcombine.high %v3189_v17, %v3189_v17  ;;  %v3257_v44 = vrot.slane %v3189_v17, %v9972_v37  ;;  %v3261_v46 = vrot.slane %v3197_v23, %v9972_v37  ;;  %v3198_v41 = vcombine.high %v3182_v15, %v3182_v15  ;;  %v11538_v17 = vld [vmem:[%s12208_s6 + $0x90] sm:$0xff] }
 0x39c   :  { %v3001_v57 = vadd.f32 %v3000_v33, %v2986_v31  ;;  %v3200_v12 = vcombine.high %v3196_v19, %v3196_v19  ;;  %v2987_v4 = vmul.f32 %v2925_v35, %v11406_v50  ;;  %v3330_v2 = vmul.f32 %v3253_v45, %v11396_v20 }
 0x39d   :  { %v3265_v38 = vrot.slane %v3199_v47, %v9972_v37  ;;  %v3331_v63 = vmul.f32 %v3257_v44, %v11401_v36  ;;  %v2988_v11 = vmul.f32 %v2929_v25, %v11411_v18  ;;  %v2989_v40 = vmul.f32 %v2933_v27, %v2801_v58  ;;  %v11543_v25 = vld [vmem:[%s12208_s6 + $0x98] sm:$0xff] }
 0x39e   :  { %v8588_v28 = vpop.f32.mrf.mxu1  ;;  %v3269_v16 = vrot.slane %v3182_v15, %v9972_v37  ;;  %v3273_v52 = vrot.slane %v3196_v19, %v9972_v37  ;;  %v8623_v51 = vpop.f32.mrf.mxu0  ;;  %v11502_v26 = vadd.f32 %v3359_v30, %v3011_v42  ;;  %v3332_v59 = vmul.f32 %v3261_v46, %v11422_v1 }
 0x39f   :  { %v3346_v39 = vadd.f32 %v3331_v63, %v3330_v2  ;;  %v3549_v50 = vcombine.high %v8588_v28, %v8588_v28  ;;  %v3002_v60 = vadd.f32 %v3001_v57, %v2987_v4  ;;  %v3277_v0 = vrot.slane %v3198_v41, %v9972_v37  ;;  %v11557_v4 = vld [vmem:[%s12208_s6 + $0xa0] sm:$0xff] }
 0x3a0   :  { %v3281_v20 = vrot.slane %v3200_v12, %v9972_v37  ;;  %v3556_v36 = vrot.slane %v8588_v28, %v9965_v55  ;;  %v3333_v18 = vmul.f32 %v3265_v38, %v11433_v8  ;;  %v3897_v48 = vcombine.high %v8623_v51, %v8623_v51  ;;  %v11530_v9 = vpop.f32.mrf.mxu1 }
 0x3a1   :  { %v3347_v58 = vadd.f32 %v3346_v39, %v3332_v59  ;;  %v3563_v14 = vrot.slane %v3549_v50, %v9965_v55  ;;  %v3334_v22 = vmul.f32 %v3269_v16, %v11441_v21  ;;  %v3335_v32 = vmul.f32 %v3273_v52, %v11448_v29  ;;  %v11521_v29 = vld [vmem:[%s12208_s6 + $0x80] sm:$0xff]  ;;  %v11571_v16 = vld [vmem:[%s12208_s6 + $0xb0] sm:$0xff]  ;;  %v11576_v52 = vld [vmem:[%s12208_s6 + $0xb8] sm:$0xff] }
 0x3a2   :  { %v3564_v1 = vcombine.high %v3556_v36, %v3556_v36  ;;  %v3572_v49 = vrot.slane %v3556_v36, %v9965_v55  ;;  %v3904_v3 = vrot.slane %v8623_v51, %v9965_v55  ;;  %v3336_v42 = vmul.f32 %v3277_v0, %v11464_v56  ;;  %v11583_v0 = vld [vmem:[%s12208_s6 + $0xc0] sm:$0xff] }
 0x3a3   :  { %v3348_v61 = vadd.f32 %v3347_v58, %v3333_v18  ;;  %v3565_v24 = vcombine.high %v3563_v14, %v3563_v14  ;;  %v3579_v43 = vrot.slane %v3563_v14, %v9965_v55  ;;  %v3003_v5 = vadd.f32 %v3002_v60, %v2988_v11 }
 0x3a4   :  { %v3586_v8 = vrot.slane %v3564_v1, %v9965_v55  ;;  %v3594_v34 = vcombine.high %v3572_v49, %v3572_v49  ;;  %v3633_v53 = vrot.slane %v3572_v49, %v9972_v37  ;;  %v3911_v56 = vrot.slane %v3897_v48, %v9965_v55 }
 0x3a5   :  { %v3349_v21 = vadd.f32 %v3348_v61, %v3334_v22  ;;  %v3593_v7 = vrot.slane %v3565_v24, %v9965_v55  ;;  %v3337_v10 = vmul.f32 %v3281_v20, %v11469_v62  ;;  %v3595_v19 = vcombine.high %v3579_v43, %v3579_v43  ;;  %v11588_v20 = vld [vmem:[%s12208_s6 + $0xc8] sm:$0xff]  ;;  %v11596_v22 = vld [vmem:[%s12208_s6 + $0xd0] sm:$0xff] }
 0x3a6   :  { %v3596_v35 = vcombine.high %v3586_v8, %v3586_v8  ;;  %v3637_v54 = vrot.slane %v3586_v8, %v9972_v37  ;;  %v3641_v13 = vrot.slane %v3594_v34, %v9972_v37  ;;  %v3912_v45 = vcombine.high %v3904_v3, %v3904_v3 }
 0x3a7   :  { %v3350_v15 = vadd.f32 %v3349_v21, %v3335_v32  ;;  %v3597_v23 = vcombine.high %v3593_v7, %v3593_v7  ;;  %v3686_v27 = vmul.f32 %v3633_v53, %v11521_v29  ;;  %v3500_v33 = vcombine.high %v11530_v9, %v11530_v9 }
 0x3a8   :  { %v3645_v62 = vrot.slane %v3596_v35, %v9972_v37  ;;  %v3687_v31 = vmul.f32 %v3637_v54, %v11526_v6  ;;  %v3004_v30 = vadd.f32 %v3003_v5, %v2989_v40  ;;  %v3649_v44 = vrot.slane %v3579_v43, %v9972_v37  ;;  %v11566_v40 = vld [vmem:[%s12208_s6 + $0xa8] sm:$0xff]  ;;  %v3829_v5 = vpop.f32.mrf.mxu0 }
 0x3a9   :  { %v3351_v47 = vadd.f32 %v3350_v15, %v3336_v42  ;;  %v3913_v46 = vcombine.high %v3911_v56, %v3911_v56  ;;  %v3653_v57 = vrot.slane %v3593_v7, %v9972_v37  ;;  %v3688_v41 = vmul.f32 %v3641_v13, %v11538_v17  ;;  %v11608_v42 = vld [vmem:[%s12208_s6 + $0xd8] sm:$0xff]  ;;  %v11620_v15 = vld [vmem:[%s12208_s6 + $0xe0] sm:$0xff] }
 0x3aa   :  { %v3701_v12 = vadd.f32 %v3687_v31, %v3686_v27  ;;  %v3920_v28 = vrot.slane %v3904_v3, %v9965_v55  ;;  %v3657_v38 = vrot.slane %v3595_v19, %v9972_v37  ;;  %v3661_v2 = vrot.slane %v3597_v23, %v9972_v37 }
 0x3ab   :  { %v3689_v63 = vmul.f32 %v3645_v62, %v11543_v25  ;;  %v3934_v11 = vrot.slane %v3912_v45, %v9965_v55  ;;  %v3927_v59 = vrot.slane %v3911_v56, %v9965_v55  ;;  %v3352_v60 = vadd.f32 %v3351_v47, %v3337_v10 }
 0x3ac   :  { %v3702_v51 = vadd.f32 %v3701_v12, %v3688_v41  ;;  %v3942_v39 = vcombine.high %v3920_v28, %v3920_v28  ;;  %v3981_v50 = vrot.slane %v3920_v28, %v9972_v37  ;;  %v3941_v36 = vrot.slane %v3913_v46, %v9965_v55  ;;  %v11632_v41 = vld [vmem:[%s12208_s6 + $0xe8] sm:$0xff] }
 0x3ad   :  { %v3944_v18 = vcombine.high %v3934_v11, %v3934_v11  ;;  %v3985_v58 = vrot.slane %v3934_v11, %v9972_v37  ;;  %v3690_v14 = vmul.f32 %v3649_v44, %v11557_v4  ;;  %v3507_v1 = vrot.slane %v11530_v9, %v9965_v55  ;;  %v11640_v11 = vld [vmem:[%s12208_s6 + $0xf0] sm:$0xff] }
 0x3ae   :  { %v3703_v48 = vadd.f32 %v3702_v51, %v3689_v63  ;;  %v3989_v32 = vrot.slane %v3942_v39, %v9972_v37  ;;  %v3691_v49 = vmul.f32 %v3653_v57, %v11566_v40  ;;  %v3692_v61 = vmul.f32 %v3657_v38, %v11571_v16  ;;  %v11645_v51 = vld [vmem:[%s12208_s6 + $0xf8] sm:$0xff] }
 0x3af   :  { %v3693_v24 = vmul.f32 %v3661_v2, %v11576_v52  ;;  %v3993_v43 = vrot.slane %v3944_v18, %v9972_v37  ;;  %v3943_v8 = vcombine.high %v3927_v59, %v3927_v59  ;;  %v4034_v34 = vmul.f32 %v3981_v50, %v11583_v0 }
 0x3b0   :  { %v3704_v3 = vadd.f32 %v3703_v48, %v3690_v14  ;;  %v4035_v53 = vmul.f32 %v3985_v58, %v11588_v20  ;;  %v11612_v21 = vadd.f32 %v3352_v60, %v3004_v30  ;;  %v3945_v7 = vcombine.high %v3941_v36, %v3941_v36 }
 0x3b1   :  { %v3997_v56 = vrot.slane %v3927_v59, %v9972_v37  ;;  %v4036_v9 = vmul.f32 %v3989_v32, %v11596_v22  ;;  %v3514_v54 = vrot.slane %v3500_v33, %v9965_v55  ;;  %v3515_v13 = vcombine.high %v3507_v1, %v3507_v1 }
 0x3b2   :  { %v3705_v10 = vadd.f32 %v3704_v3, %v3691_v49  ;;  %v4049_v35 = vadd.f32 %v4035_v53, %v4034_v34  ;;  %v4001_v19 = vrot.slane %v3941_v36, %v9972_v37  ;;  %v4037_v23 = vmul.f32 %v3993_v43, %v11608_v42 }
 0x3b3   :  { %v3523_v45 = vrot.slane %v3507_v1, %v9965_v55  ;;  %v3848_v62 = vcombine.high %v3829_v5, %v3829_v5  ;;  %v3516_v30 = vcombine.high %v3514_v54, %v3514_v54  ;;  %v3530_v47 = vrot.slane %v3514_v54, %v9965_v55 }
 0x3b4   :  { %v3706_v27 = vadd.f32 %v3705_v10, %v3692_v61  ;;  %v4050_v31 = vadd.f32 %v4049_v35, %v4036_v9  ;;  %v4005_v33 = vrot.slane %v3943_v8, %v9972_v37  ;;  %v3537_v44 = vrot.slane %v3515_v13, %v9965_v55 }
 0x3b5   :  { %v3545_v46 = vcombine.high %v3523_v45, %v3523_v45  ;;  %v3601_v57 = vrot.slane %v3523_v45, %v9972_v37  ;;  %v4009_v12 = vrot.slane %v3945_v7, %v9972_v37  ;;  %v4038_v28 = vmul.f32 %v3997_v56, %v11620_v15 }
 0x3b6   :  { %v4051_v38 = vadd.f32 %v4050_v31, %v4037_v23  ;;  %v3544_v2 = vrot.slane %v3516_v30, %v9965_v55  ;;  %v3707_v63 = vadd.f32 %v3706_v27, %v3693_v24  ;;  %v3547_v59 = vcombine.high %v3537_v44, %v3537_v44 }
 0x3b7   :  { %v3605_v39 = vrot.slane %v3537_v44, %v9972_v37  ;;  %v3609_v50 = vrot.slane %v3545_v46, %v9972_v37  ;;  %v3546_v36 = vcombine.high %v3530_v47, %v3530_v47  ;;  %v3855_v18 = vrot.slane %v3829_v5, %v9965_v55 }
 0x3b8   :  { %v4052_v60 = vadd.f32 %v4051_v38, %v4038_v28  ;;  %v3862_v58 = vrot.slane %v3848_v62, %v9965_v55  ;;  %v4039_v14 = vmul.f32 %v4001_v19, %v11632_v41  ;;  %v3613_v48 = vrot.slane %v3547_v59, %v9972_v37 }
 0x3b9   :  { %v3678_v32 = vmul.f32 %v3601_v57, %v11521_v29  ;;  %v3679_v1 = vmul.f32 %v3605_v39, %v11526_v6  ;;  %v4040_v49 = vmul.f32 %v4005_v33, %v11640_v11  ;;  %v4041_v61 = vmul.f32 %v4009_v12, %v11645_v51 }
 0x3ba   :  { %v3548_v24 = vcombine.high %v3544_v2, %v3544_v2  ;;  %v3617_v43 = vrot.slane %v3530_v47, %v9972_v37  ;;  %v11659_v3 = vadd.f32 %v3707_v63, %v11502_v26  ;;  %v3621_v8 = vrot.slane %v3544_v2, %v9972_v37 }
 0x3bb   :  { %v3680_v34 = vmul.f32 %v3609_v50, %v11538_v17  ;;  %v3694_v53 = vadd.f32 %v3679_v1, %v3678_v32  ;;  %v4053_v5 = vadd.f32 %v4052_v60, %v4039_v14  ;;  %v3625_v29 = vrot.slane %v3546_v36, %v9972_v37 }
 0x3bc   :  { %v3863_v7 = vcombine.high %v3855_v18, %v3855_v18  ;;  %v3864_v6 = vcombine.high %v3862_v58, %v3862_v58  ;;  %v3681_v56 = vmul.f32 %v3613_v48, %v11543_v25  ;;  %v3871_v10 = vrot.slane %v3855_v18, %v9965_v55 }
 0x3bd   :  { %v3695_v9 = vadd.f32 %v3694_v53, %v3680_v34  ;;  %v3878_v35 = vrot.slane %v3862_v58, %v9965_v55  ;;  %v3629_v26 = vrot.slane %v3548_v24, %v9972_v37  ;;  %v3682_v54 = vmul.f32 %v3617_v43, %v11557_v4 }
 0x3be   :  { %v3885_v13 = vrot.slane %v3863_v7, %v9965_v55  ;;  %v3892_v17 = vrot.slane %v3864_v6, %v9965_v55  ;;  %v3893_v23 = vcombine.high %v3871_v10, %v3871_v10  ;;  %v3949_v62 = vrot.slane %v3871_v10, %v9972_v37 }
 0x3bf   :  { %v3696_v19 = vadd.f32 %v3695_v9, %v3681_v56  ;;  %v3894_v45 = vcombine.high %v3878_v35, %v3878_v35  ;;  %v4054_v27 = vadd.f32 %v4053_v5, %v4040_v49  ;;  %v3683_v47 = vmul.f32 %v3621_v8, %v11566_v40  ;;  %v11712_v56 = vld [vmem:[%s12208_s6 + $0x108] sm:$0xff] }
 0x3c0   :  { %v3895_v25 = vcombine.high %v3885_v13, %v3885_v13  ;;  %v3896_v31 = vcombine.high %v3892_v17, %v3892_v17  ;;  %v3953_v30 = vrot.slane %v3885_v13, %v9972_v37  ;;  %v3957_v44 = vrot.slane %v3893_v23, %v9972_v37  ;;  %v8658_v46 = vpop.f32.mrf.mxu1  ;;  %v8693_v2 = vpop.f32.mrf.mxu0  ;;  %v11719_v13 = vld [vmem:[%s12208_s6 + $0x110] sm:$0xff] }
 0x3c1   :  { %v3697_v33 = vadd.f32 %v3696_v19, %v3682_v54  ;;  %v3965_v4 = vrot.slane %v3878_v35, %v9972_v37  ;;  %v3969_v12 = vrot.slane %v3892_v17, %v9972_v37  ;;  %v4026_v28 = vmul.f32 %v3949_v62, %v11583_v0 }
 0x3c2   :  { %v3961_v57 = vrot.slane %v3895_v25, %v9972_v37  ;;  %v4027_v38 = vmul.f32 %v3953_v30, %v11588_v20  ;;  %v3684_v63 = vmul.f32 %v3625_v29, %v11571_v16  ;;  %v3685_v59 = vmul.f32 %v3629_v26, %v11576_v52  ;;  %v11689_v48 = vpop.f32.mrf.mxu1  ;;  %v11734_v30 = vld [vmem:[%s12208_s6 + $0x118] sm:$0xff] }
 0x3c3   :  { %v3698_v40 = vadd.f32 %v3697_v33, %v3683_v47  ;;  %v3973_v39 = vrot.slane %v3894_v45, %v9972_v37  ;;  %v11683_v50 = vadd.f32 %v4054_v27, %v4041_v61  ;;  %v3977_v60 = vrot.slane %v3896_v31, %v9972_v37 }
 0x3c4   :  { %v4028_v36 = vmul.f32 %v3957_v44, %v11596_v22  ;;  %v4042_v18 = vadd.f32 %v4027_v38, %v4026_v28  ;;  %v4030_v58 = vmul.f32 %v3965_v4, %v11620_v15  ;;  %v4245_v0 = vcombine.high %v8658_v46, %v8658_v46  ;;  %v11750_v28 = vld [vmem:[%s12208_s6 + $0x128] sm:$0xff] }
 0x3c5   :  { %v4252_v20 = vrot.slane %v8658_v46, %v9965_v55  ;;  %v4593_v14 = vcombine.high %v8693_v2, %v8693_v2  ;;  %v3699_v16 = vadd.f32 %v3698_v40, %v3684_v63  ;;  %v4029_v52 = vmul.f32 %v3961_v57, %v11608_v42  ;;  %v11758_v40 = vld [vmem:[%s12208_s6 + $0x130] sm:$0xff] }
 0x3c6   :  { %v4031_v32 = vmul.f32 %v3969_v12, %v11632_v41  ;;  %v4043_v1 = vadd.f32 %v4042_v18, %v4028_v36  ;;  %v4032_v49 = vmul.f32 %v3973_v39, %v11640_v11  ;;  %v4259_v61 = vrot.slane %v4245_v0, %v9965_v55 }
 0x3c7   :  { %v4260_v22 = vcombine.high %v4252_v20, %v4252_v20  ;;  %v4268_v24 = vrot.slane %v4252_v20, %v9965_v55  ;;  %v4033_v15 = vmul.f32 %v3977_v60, %v11645_v51  ;;  %v4600_v8 = vrot.slane %v8693_v2, %v9965_v55  ;;  %v11707_v51 = vld [vmem:[%s12208_s6 + $0x100] sm:$0xff] }
 0x3c8   :  { %v4044_v43 = vadd.f32 %v4043_v1, %v4029_v52  ;;  %v4196_v34 = vcombine.high %v11689_v48, %v11689_v48  ;;  %v4261_v53 = vcombine.high %v4259_v61, %v4259_v61  ;;  %v4275_v42 = vrot.slane %v4259_v61, %v9965_v55  ;;  %v11771_v20 = vld [vmem:[%s12208_s6 + $0x140] sm:$0xff] }
 0x3c9   :  { %v4282_v41 = vrot.slane %v4260_v22, %v9965_v55  ;;  %v4607_v11 = vrot.slane %v4593_v14, %v9965_v55  ;;  %v3700_v5 = vadd.f32 %v3699_v16, %v3685_v59  ;;  %v4290_v7 = vcombine.high %v4268_v24, %v4268_v24  ;;  %v11776_v14 = vld [vmem:[%s12208_s6 + $0x148] sm:$0xff] }
 0x3ca   :  { %v4045_v29 = vadd.f32 %v4044_v43, %v4030_v58  ;;  %v4329_v6 = vrot.slane %v4268_v24, %v9972_v37  ;;  %v4289_v9 = vrot.slane %v4261_v53, %v9965_v55  ;;  %v4291_v10 = vcombine.high %v4275_v42, %v4275_v42  ;;  %v11766_v58 = vld [vmem:[%s12208_s6 + $0x138] sm:$0xff]  ;;  %v11788_v53 = vld [vmem:[%s12208_s6 + $0x150] sm:$0xff] }
 0x3cb   :  { %v4292_v35 = vcombine.high %v4282_v41, %v4282_v41  ;;  %v4333_v26 = vrot.slane %v4282_v41, %v9972_v37  ;;  %v4337_v17 = vrot.slane %v4290_v7, %v9972_v37  ;;  %v4608_v19 = vcombine.high %v4600_v8, %v4600_v8  ;;  %v4525_v7 = vpop.f32.mrf.mxu0 }
 0x3cc   :  { %v4046_v54 = vadd.f32 %v4045_v29, %v4031_v32  ;;  %v11724_v23 = vrot.slane %v11689_v48, %v9965_v55  ;;  %v4293_v45 = vcombine.high %v4289_v9, %v4289_v9  ;;  %v4609_v27 = vcombine.high %v4607_v11, %v4607_v11 }
 0x3cd   :  { %v4341_v62 = vrot.slane %v4292_v35, %v9972_v37  ;;  %v4616_v25 = vrot.slane %v4600_v8, %v9965_v55  ;;  %v11729_v31 = vadd.f32 %v3700_v5, %v11612_v21  ;;  %v4345_v47 = vrot.slane %v4275_v42, %v9972_v37  ;;  %v11745_v21 = vld [vmem:[%s12208_s6 + $0x120] sm:$0xff] }
 0x3ce   :  { %v4382_v33 = vmul.f32 %v4329_v6, %v11707_v51  ;;  %v4383_v44 = vmul.f32 %v4333_v26, %v11712_v56  ;;  %v4047_v4 = vadd.f32 %v4046_v54, %v4032_v49  ;;  %v4349_v46 = vrot.slane %v4289_v9, %v9972_v37  ;;  %v11806_v26 = vld [vmem:[%s12208_s6 + $0x160] sm:$0xff] }
 0x3cf   :  { %v4353_v57 = vrot.slane %v4291_v10, %v9972_v37  ;;  %v4384_v12 = vmul.f32 %v4337_v17, %v11719_v13  ;;  %v4357_v38 = vrot.slane %v4293_v45, %v9972_v37  ;;  %v4623_v63 = vrot.slane %v4607_v11, %v9965_v55  ;;  %v11795_v11 = vld [vmem:[%s12208_s6 + $0x158] sm:$0xff] }
 0x3d0   :  { %v4397_v2 = vadd.f32 %v4383_v44, %v4382_v33  ;;  %v4630_v59 = vrot.slane %v4608_v19, %v9965_v55  ;;  %v4385_v39 = vmul.f32 %v4341_v62, %v11734_v30  ;;  %v4637_v60 = vrot.slane %v4609_v27, %v9965_v55  ;;  %v11821_v33 = vld [vmem:[%s12208_s6 + $0x168] sm:$0xff] }
 0x3d1   :  { %v4638_v36 = vcombine.high %v4616_v25, %v4616_v25  ;;  %v4677_v18 = vrot.slane %v4616_v25, %v9972_v37  ;;  %v4639_v16 = vcombine.high %v4623_v63, %v4623_v63  ;;  %v4386_v1 = vmul.f32 %v4345_v47, %v11745_v21 }
 0x3d2   :  { %v4398_v0 = vadd.f32 %v4397_v2, %v4384_v12  ;;  %v4640_v52 = vcombine.high %v4630_v59, %v4630_v59  ;;  %v4681_v32 = vrot.slane %v4630_v59, %v9972_v37  ;;  %v4387_v49 = vmul.f32 %v4349_v46, %v11750_v28 }
 0x3d3   :  { %v4641_v61 = vcombine.high %v4637_v60, %v4637_v60  ;;  %v4685_v22 = vrot.slane %v4638_v36, %v9972_v37  ;;  %v11782_v24 = vadd.f32 %v4047_v4, %v4033_v15  ;;  %v4388_v43 = vmul.f32 %v4353_v57, %v11758_v40 }
 0x3d4   :  { %v4399_v8 = vadd.f32 %v4398_v0, %v4385_v39  ;;  %v4689_v42 = vrot.slane %v4640_v52, %v9972_v37  ;;  %v4389_v41 = vmul.f32 %v4357_v38, %v11766_v58  ;;  %v4693_v15 = vrot.slane %v4623_v63, %v9972_v37 }
 0x3d5   :  { %v4730_v5 = vmul.f32 %v4677_v18, %v11771_v20  ;;  %v4731_v29 = vmul.f32 %v4681_v32, %v11776_v14  ;;  %v4697_v9 = vrot.slane %v4637_v60, %v9972_v37  ;;  %v4701_v10 = vrot.slane %v4639_v16, %v9972_v37  ;;  %v11836_v60 = vld [vmem:[%s12208_s6 + $0x178] sm:$0xff] }
 0x3d6   :  { %v4400_v6 = vadd.f32 %v4399_v8, %v4386_v1  ;;  %v4705_v35 = vrot.slane %v4641_v61, %v9972_v37  ;;  %v4732_v54 = vmul.f32 %v4685_v22, %v11788_v53  ;;  %v4210_v19 = vrot.slane %v4196_v34, %v9965_v55 }
 0x3d7   :  { %v4745_v17 = vadd.f32 %v4731_v29, %v4730_v5  ;;  %v4211_v45 = vcombine.high %v11724_v23, %v11724_v23  ;;  %v4733_v27 = vmul.f32 %v4689_v42, %v11795_v11  ;;  %v4219_v25 = vrot.slane %v11724_v23, %v9965_v55  ;;  %v11830_v23 = vld [vmem:[%s12208_s6 + $0x170] sm:$0xff] }
 0x3d8   :  { %v4401_v62 = vadd.f32 %v4400_v6, %v4387_v49  ;;  %v4544_v47 = vcombine.high %v4525_v7, %v4525_v7  ;;  %v4212_v4 = vcombine.high %v4210_v19, %v4210_v19  ;;  %v4226_v48 = vrot.slane %v4210_v19, %v9965_v55 }
 0x3d9   :  { %v4746_v44 = vadd.f32 %v4745_v17, %v4732_v54  ;;  %v4233_v34 = vrot.slane %v4211_v45, %v9965_v55  ;;  %v4734_v57 = vmul.f32 %v4693_v15, %v11806_v26  ;;  %v4241_v12 = vcombine.high %v4219_v25, %v4219_v25 }
 0x3da   :  { %v4402_v46 = vadd.f32 %v4401_v62, %v4388_v43  ;;  %v4297_v38 = vrot.slane %v4219_v25, %v9972_v37  ;;  %v4240_v63 = vrot.slane %v4212_v4, %v9965_v55  ;;  %v4242_v59 = vcombine.high %v4226_v48, %v4226_v48 }
 0x3db   :  { %v4747_v2 = vadd.f32 %v4746_v44, %v4733_v27  ;;  %v4243_v39 = vcombine.high %v4233_v34, %v4233_v34  ;;  %v4735_v36 = vmul.f32 %v4697_v9, %v11821_v33  ;;  %v4301_v18 = vrot.slane %v4233_v34, %v9972_v37 }
 0x3dc   :  { %v4305_v0 = vrot.slane %v4241_v12, %v9972_v37  ;;  %v4551_v16 = vrot.slane %v4525_v7, %v9965_v55  ;;  %v4244_v32 = vcombine.high %v4240_v63, %v4240_v63  ;;  %v4558_v49 = vrot.slane %v4544_v47, %v9965_v55 }
 0x3dd   :  { %v4748_v52 = vadd.f32 %v4747_v2, %v4734_v57  ;;  %v4309_v1 = vrot.slane %v4243_v39, %v9972_v37  ;;  %v4736_v61 = vmul.f32 %v4701_v10, %v11830_v23  ;;  %v4313_v22 = vrot.slane %v4226_v48, %v9972_v37 }
 0x3de   :  { %v4374_v43 = vmul.f32 %v4297_v38, %v11707_v51  ;;  %v4375_v8 = vmul.f32 %v4301_v18, %v11712_v56  ;;  %v11848_v42 = vadd.f32 %v4402_v46, %v4389_v41  ;;  %v11851_v15 = vmul.f32 %v4705_v35, %v11836_v60 }
 0x3df   :  { %v4317_v5 = vrot.slane %v4240_v63, %v9972_v37  ;;  %v4321_v29 = vrot.slane %v4242_v59, %v9972_v37  ;;  %v4749_v7 = vadd.f32 %v4748_v52, %v4735_v36  ;;  %v4376_v6 = vmul.f32 %v4305_v0, %v11719_v13 }
 0x3e0   :  { %v4390_v9 = vadd.f32 %v4375_v8, %v4374_v43  ;;  %v4559_v10 = vcombine.high %v4551_v16, %v4551_v16  ;;  %v4325_v54 = vrot.slane %v4244_v32, %v9972_v37  ;;  %v4377_v51 = vmul.f32 %v4309_v1, %v11734_v30 }
 0x3e1   :  { %v4560_v17 = vcombine.high %v4558_v49, %v4558_v49  ;;  %v4567_v56 = vrot.slane %v4551_v16, %v9965_v55  ;;  %v4378_v41 = vmul.f32 %v4313_v22, %v11745_v21  ;;  %v4574_v19 = vrot.slane %v4558_v49, %v9965_v55 }
 0x3e2   :  { %v4391_v35 = vadd.f32 %v4390_v9, %v4376_v6  ;;  %v4581_v45 = vrot.slane %v4559_v10, %v9965_v55  ;;  %v8728_v62 = vpop.f32.mrf.mxu1  ;;  %v4379_v27 = vmul.f32 %v4317_v5, %v11750_v28  ;;  %v4380_v12 = vmul.f32 %v4321_v29, %v11758_v40  ;;  %v8763_v18 = vpop.f32.mrf.mxu0 }
 0x3e3   :  { %v4588_v13 = vrot.slane %v4560_v17, %v9965_v55  ;;  %v4589_v25 = vcombine.high %v4567_v56, %v4567_v56  ;;  %v4645_v47 = vrot.slane %v4567_v56, %v9972_v37  ;;  %v4590_v30 = vcombine.high %v4574_v19, %v4574_v19  ;;  %v11902_v56 = vld [vmem:[%s12208_s6 + $0x190] sm:$0xff] }
 0x3e4   :  { %v4392_v44 = vadd.f32 %v4391_v35, %v4377_v51  ;;  %v4591_v4 = vcombine.high %v4581_v45, %v4581_v45  ;;  %v4649_v48 = vrot.slane %v4581_v45, %v9972_v37  ;;  %v4941_v46 = vcombine.high %v8728_v62, %v8728_v62 }
 0x3e5   :  { %v4592_v34 = vcombine.high %v4588_v13, %v4588_v13  ;;  %v4653_v21 = vrot.slane %v4589_v25, %v9972_v37  ;;  %v4948_v57 = vrot.slane %v8728_v62, %v9965_v55  ;;  %v4661_v2 = vrot.slane %v4574_v19, %v9972_v37  ;;  %v11913_v25 = vld [vmem:[%s12208_s6 + $0x1a0] sm:$0xff] }
 0x3e6   :  { %v4393_v38 = vadd.f32 %v4392_v44, %v4378_v41  ;;  %v4657_v28 = vrot.slane %v4591_v4, %v9972_v37  ;;  %v11871_v63 = vadd.f32 %v4749_v7, %v4736_v61  ;;  %v4381_v59 = vmul.f32 %v4325_v54, %v11766_v58 }
 0x3e7   :  { %v4722_v39 = vmul.f32 %v4645_v47, %v11771_v20  ;;  %v4723_v36 = vmul.f32 %v4649_v48, %v11776_v14  ;;  %v4665_v16 = vrot.slane %v4588_v13, %v9972_v37  ;;  %v4669_v52 = vrot.slane %v4590_v30, %v9972_v37 }
 0x3e8   :  { %v4394_v0 = vadd.f32 %v4393_v38, %v4379_v27  ;;  %v4673_v40 = vrot.slane %v4592_v34, %v9972_v37  ;;  %v4724_v32 = vmul.f32 %v4653_v21, %v11788_v53  ;;  %v4955_v49 = vrot.slane %v4941_v46, %v9965_v55  ;;  %v11934_v46 = vld [vmem:[%s12208_s6 + $0x1a8] sm:$0xff] }
 0x3e9   :  { %v4738_v1 = vadd.f32 %v4723_v36, %v4722_v39  ;;  %v4956_v61 = vcombine.high %v4948_v57, %v4948_v57  ;;  %v4725_v58 = vmul.f32 %v4657_v28, %v11795_v11  ;;  %v4726_v20 = vmul.f32 %v4661_v2, %v11806_v26  ;;  %v11891_v11 = vld [vmem:[%s12208_s6 + $0x180] sm:$0xff]  ;;  %v11896_v26 = vld [vmem:[%s12208_s6 + $0x188] sm:$0xff] }
 0x3ea   :  { %v4964_v14 = vrot.slane %v4948_v57, %v9965_v55  ;;  %v5289_v22 = vcombine.high %v8763_v18, %v8763_v18  ;;  %v4957_v8 = vcombine.high %v4955_v49, %v4955_v49  ;;  %v4971_v5 = vrot.slane %v4955_v49, %v9965_v55  ;;  %v11952_v49 = vld [vmem:[%s12208_s6 + $0x1c0] sm:$0xff] }
 0x3eb   :  { %v4739_v43 = vadd.f32 %v4738_v1, %v4724_v32  ;;  %v4978_v29 = vrot.slane %v4956_v61, %v9965_v55  ;;  %v4395_v7 = vadd.f32 %v4394_v0, %v4380_v12  ;;  %v5296_v9 = vrot.slane %v8763_v18, %v9965_v55  ;;  %v11946_v32 = vld [vmem:[%s12208_s6 + $0x1b0] sm:$0xff]  ;;  %v11957_v61 = vld [vmem:[%s12208_s6 + $0x1c8] sm:$0xff] }
 0x3ec   :  { %v4986_v6 = vcombine.high %v4964_v14, %v4964_v14  ;;  %v5025_v53 = vrot.slane %v4964_v14, %v9972_v37  ;;  %v4985_v54 = vrot.slane %v4957_v8, %v9965_v55  ;;  %v4987_v51 = vcombine.high %v4971_v5, %v4971_v5 }
 0x3ed   :  { %v4740_v10 = vadd.f32 %v4739_v43, %v4725_v58  ;;  %v4988_v17 = vcombine.high %v4978_v29, %v4978_v29  ;;  %v5029_v41 = vrot.slane %v4978_v29, %v9972_v37  ;;  %v5041_v19 = vrot.slane %v4971_v5, %v9972_v37 }
 0x3ee   :  { %v5033_v35 = vrot.slane %v4986_v6, %v9972_v37  ;;  %v5303_v45 = vrot.slane %v5289_v22, %v9965_v55  ;;  %v4727_v62 = vmul.f32 %v4665_v16, %v11821_v33  ;;  %v4728_v27 = vmul.f32 %v4669_v52, %v11830_v23  ;;  %v11926_v33 = vld [vmem:[%s12208_s6 + $0x198] sm:$0xff] }
 0x3ef   :  { %v4741_v13 = vadd.f32 %v4740_v10, %v4726_v20  ;;  %v4989_v47 = vcombine.high %v4985_v54, %v4985_v54  ;;  %v11916_v44 = vmul.f32 %v4673_v40, %v11836_v60  ;;  %v5037_v30 = vrot.slane %v4988_v17, %v9972_v37  ;;  %v4873_v40 = vpop.f32.mrf.mxu1  ;;  %v11963_v22 = vld [vmem:[%s12208_s6 + $0x1b8] sm:$0xff]  ;;  %v11983_v17 = vld [vmem:[%s12208_s6 + $0x1e8] sm:$0xff] }
 0x3f0   :  { %v5078_v4 = vmul.f32 %v5025_v53, %v11891_v11  ;;  %v5079_v48 = vmul.f32 %v5029_v41, %v11896_v26  ;;  %v11921_v34 = vadd.f32 %v4395_v7, %v4381_v59  ;;  %v5045_v23 = vrot.slane %v4985_v54, %v9972_v37  ;;  %v11969_v7 = vld [vmem:[%s12208_s6 + $0x1d0] sm:$0xff] }
 0x3f1   :  { %v5049_v21 = vrot.slane %v4987_v51, %v9972_v37  ;;  %v5080_v60 = vmul.f32 %v5033_v35, %v11902_v56  ;;  %v5082_v57 = vmul.f32 %v5041_v19, %v11913_v25  ;;  %v5304_v38 = vcombine.high %v5296_v9, %v5296_v9  ;;  %v11978_v51 = vld [vmem:[%s12208_s6 + $0x1e0] sm:$0xff] }
 0x3f2   :  { %v5093_v12 = vadd.f32 %v5079_v48, %v5078_v4  ;;  %v5305_v28 = vcombine.high %v5303_v45, %v5303_v45  ;;  %v4742_v2 = vadd.f32 %v4741_v13, %v4727_v62  ;;  %v5053_v59 = vrot.slane %v4989_v47, %v9972_v37 }
 0x3f3   :  { %v5312_v39 = vrot.slane %v5296_v9, %v9965_v55  ;;  %v5319_v36 = vrot.slane %v5303_v45, %v9965_v55  ;;  %v5081_v18 = vmul.f32 %v5037_v30, %v11926_v33  ;;  %v5326_v16 = vrot.slane %v5304_v38, %v9965_v55  ;;  %v5221_v45 = vpop.f32.mrf.mxu0  ;;  %v11996_v30 = vld [vmem:[%s12208_s6 + $0x1d8] sm:$0xff] }
 0x3f4   :  { %v5094_v0 = vadd.f32 %v5093_v12, %v5080_v60  ;;  %v5333_v52 = vrot.slane %v5305_v28, %v9965_v55  ;;  %v5083_v1 = vmul.f32 %v5045_v23, %v11934_v46  ;;  %v4892_v10 = vcombine.high %v4873_v40, %v4873_v40  ;;  %v12010_v28 = vld [vmem:[%s12208_s6 + $0x1f0] sm:$0xff] }
 0x3f5   :  { %v5334_v58 = vcombine.high %v5312_v39, %v5312_v39  ;;  %v5335_v20 = vcombine.high %v5319_v36, %v5319_v36  ;;  %v5373_v14 = vrot.slane %v5312_v39, %v9972_v37  ;;  %v5336_v8 = vcombine.high %v5326_v16, %v5326_v16 }
 0x3f6   :  { %v5095_v43 = vadd.f32 %v5094_v0, %v5081_v18  ;;  %v5337_v5 = vcombine.high %v5333_v52, %v5333_v52  ;;  %v5377_v29 = vrot.slane %v5326_v16, %v9972_v37  ;;  %v5389_v53 = vrot.slane %v5319_v36, %v9972_v37 }
 0x3f7   :  { %v5381_v6 = vrot.slane %v5334_v58, %v9972_v37  ;;  %v5393_v9 = vrot.slane %v5333_v52, %v9972_v37  ;;  %v5084_v54 = vmul.f32 %v5049_v21, %v11946_v32  ;;  %v5385_v41 = vrot.slane %v5336_v8, %v9972_v37 }
 0x3f8   :  { %v5426_v35 = vmul.f32 %v5373_v14, %v11952_v49  ;;  %v5427_v19 = vmul.f32 %v5377_v29, %v11957_v61  ;;  %v11988_v62 = vadd.f32 %v4742_v2, %v4728_v27  ;;  %v11991_v13 = vmul.f32 %v5053_v59, %v11963_v22 }
 0x3f9   :  { %v5096_v47 = vadd.f32 %v5095_v43, %v5082_v57  ;;  %v5397_v4 = vrot.slane %v5335_v20, %v9972_v37  ;;  %v12000_v48 = vrot.slane %v5337_v5, %v9972_v37  ;;  %v5428_v23 = vmul.f32 %v5381_v6, %v11969_v7 }
 0x3fa   :  { %v5441_v21 = vadd.f32 %v5427_v19, %v5426_v35  ;;  %v4899_v27 = vrot.slane %v4873_v40, %v9965_v55  ;;  %v5430_v60 = vmul.f32 %v5389_v53, %v11978_v51  ;;  %v5431_v12 = vmul.f32 %v5393_v9, %v11983_v17 }
 0x3fb   :  { %v4906_v57 = vrot.slane %v4892_v10, %v9965_v55  ;;  %v5240_v38 = vcombine.high %v5221_v45, %v5221_v45  ;;  %v5429_v2 = vmul.f32 %v5385_v41, %v11996_v30  ;;  %v5247_v16 = vrot.slane %v5221_v45, %v9965_v55 }
 0x3fc   :  { %v5442_v59 = vadd.f32 %v5441_v21, %v5428_v23  ;;  %v4907_v39 = vcombine.high %v4899_v27, %v4899_v27  ;;  %v4915_v36 = vrot.slane %v4899_v27, %v9965_v55  ;;  %v5097_v43 = vadd.f32 %v5096_v47, %v5083_v1 }
 0x3fd   :  { %v4908_v18 = vcombine.high %v4906_v57, %v4906_v57  ;;  %v4922_v0 = vrot.slane %v4906_v57, %v9965_v55  ;;  %v5254_v52 = vrot.slane %v5240_v38, %v9965_v55  ;;  %v12020_v8 = vmul.f32 %v5397_v4, %v12010_v28 }
 0x3fe   :  { %v5443_v40 = vadd.f32 %v5442_v59, %v5429_v2  ;;  %v4929_v58 = vrot.slane %v4907_v39, %v9965_v55  ;;  %v4937_v20 = vcombine.high %v4915_v36, %v4915_v36  ;;  %v4993_v14 = vrot.slane %v4915_v36, %v9972_v37 }
 0x3ff   :  { %v4936_v5 = vrot.slane %v4908_v18, %v9965_v55  ;;  %v4938_v29 = vcombine.high %v4922_v0, %v4922_v0  ;;  %v5009_v35 = vrot.slane %v4922_v0, %v9972_v37  ;;  %v5255_v19 = vcombine.high %v5247_v16, %v5247_v16 }
 0x400   :  { %v5444_v6 = vadd.f32 %v5443_v40, %v5430_v60  ;;  %v4939_v53 = vcombine.high %v4929_v58, %v4929_v58  ;;  %v4997_v9 = vrot.slane %v4929_v58, %v9972_v37  ;;  %v5001_v10 = vrot.slane %v4937_v20, %v9972_v37 }
 0x401   :  { %v4940_v41 = vcombine.high %v4936_v5, %v4936_v5  ;;  %v5256_v45 = vcombine.high %v5254_v52, %v5254_v52  ;;  %v5070_v1 = vmul.f32 %v4993_v14, %v11891_v11  ;;  %v12031_v4 = vadd.f32 %v11683_v50, %v11659_v3 }
 0x402   :  { %v5005_v23 = vrot.slane %v4939_v53, %v9972_v37  ;;  %v5071_v47 = vmul.f32 %v4997_v9, %v11896_v26  ;;  %v12033_v21 = vadd.f32 %v5097_v43, %v5084_v54  ;;  %v12035_v27 = vadd.f32 %v5444_v6, %v5431_v12 }
 0x403   :  { %v5013_v60 = vrot.slane %v4936_v5, %v9972_v37  ;;  %v5017_v57 = vrot.slane %v4938_v29, %v9972_v37  ;;  %v5072_v38 = vmul.f32 %v5001_v10, %v11902_v56  ;;  %v5263_v59 = vrot.slane %v5247_v16, %v9965_v55  ;;  %v8798_v26 = vpop.f32.mrf.mxu1 }
 0x404   :  { %v5086_v2 = vadd.f32 %v5071_v47, %v5070_v1  ;;  %v5270_v11 = vrot.slane %v5254_v52, %v9965_v55  ;;  %v5021_v39 = vrot.slane %v4940_v41, %v9972_v37  ;;  %v5074_v3 = vmul.f32 %v5009_v35, %v11913_v25 }
 0x405   :  { %v5277_v50 = vrot.slane %v5255_v19, %v9965_v55  ;;  %v5284_v54 = vrot.slane %v5256_v45, %v9965_v55  ;;  %v5073_v12 = vmul.f32 %v5005_v23, %v11926_v33  ;;  %v5285_v18 = vcombine.high %v5263_v59, %v5263_v59  ;;  %v5569_v6 = vpop.f32.mrf.mxu1 }
 0x406   :  { %v5087_v36 = vadd.f32 %v5086_v2, %v5072_v38  ;;  %v5341_v56 = vrot.slane %v5263_v59, %v9972_v37  ;;  %v5286_v0 = vcombine.high %v5270_v11, %v5270_v11  ;;  %v5637_v52 = vcombine.high %v8798_v26, %v8798_v26 }
 0x407   :  { %v5287_v40 = vcombine.high %v5277_v50, %v5277_v50  ;;  %v5345_v16 = vrot.slane %v5277_v50, %v9972_v37  ;;  %v5288_v20 = vcombine.high %v5284_v54, %v5284_v54  ;;  %v5349_v14 = vrot.slane %v5285_v18, %v9972_v37 }
 0x408   :  { %v5088_v58 = vadd.f32 %v5087_v36, %v5073_v12  ;;  %v5357_v25 = vrot.slane %v5270_v11, %v9972_v37  ;;  %v5075_v43 = vmul.f32 %v5013_v60, %v11934_v46  ;;  %v5418_v33 = vmul.f32 %v5341_v56, %v11952_v49 }
 0x409   :  { %v5353_v5 = vrot.slane %v5287_v40, %v9972_v37  ;;  %v5419_v29 = vmul.f32 %v5345_v16, %v11957_v61  ;;  %v5076_v53 = vmul.f32 %v5017_v57, %v11946_v32  ;;  %v12057_v9 = vmul.f32 %v5021_v39, %v11963_v22  ;;  %v5580_v40 = vld [vmem:[%s12208_s6 + $0x210] sm:$0xff] }
 0x40a   :  { %v5089_v10 = vadd.f32 %v5088_v58, %v5074_v3  ;;  %v5361_v41 = vrot.slane %v5284_v54, %v9972_v37  ;;  %v5365_v35 = vrot.slane %v5286_v0, %v9972_v37  ;;  %v5420_v19 = vmul.f32 %v5349_v14, %v11969_v7  ;;  %v5579_v3 = vld [vmem:[%s12208_s6 + $0x208] sm:$0xff] }
 0x40b   :  { %v5434_v46 = vadd.f32 %v5419_v29, %v5418_v33  ;;  %v5644_v45 = vrot.slane %v8798_v26, %v9965_v55  ;;  %v12064_v49 = vrot.slane %v5288_v20, %v9972_v37  ;;  %v5422_v61 = vmul.f32 %v5357_v25, %v11978_v51  ;;  %v12093_v20 = vpop.permute.xlu1 %6589  ;;  %v5581_v25 = vld [vmem:[%s12208_s6 + $0x218] sm:$0xff] }
 0x40c   :  { %v5651_v32 = vrot.slane %v5637_v52, %v9965_v55  ;;  %v5588_v23 = vcombine.high %v5569_v6, %v5569_v6  ;;  %v5421_v22 = vmul.f32 %v5353_v5, %v11996_v30  ;;  %v5090_v57 = vadd.f32 %v5089_v10, %v5075_v43  ;;  %v5578_v30 = vld [vmem:[%s12208_s6 + $0x200] sm:$0xff] }
 0x40d   :  { %v5435_v1 = vadd.f32 %v5434_v46, %v5420_v19  ;;  %v5652_v47 = vcombine.high %v5644_v45, %v5644_v45  ;;  %v5660_v60 = vrot.slane %v5644_v45, %v9965_v55  ;;  %v5595_v2 = vrot.slane %v5569_v6, %v9965_v55  ;;  %v5583_v19 = vld [vmem:[%s12208_s6 + $0x228] sm:$0xff] }
 0x40e   :  { %v5653_v38 = vcombine.high %v5651_v32, %v5651_v32  ;;  %v5667_v7 = vrot.slane %v5651_v32, %v9965_v55  ;;  %v5423_v39 = vmul.f32 %v5361_v41, %v11983_v17  ;;  %v5602_v12 = vrot.slane %v5588_v23, %v9965_v55  ;;  %v5584_v23 = vld [vmem:[%s12208_s6 + $0x230] sm:$0xff] }
 0x40f   :  { %v5436_v59 = vadd.f32 %v5435_v1, %v5421_v22  ;;  %v5674_v11 = vrot.slane %v5652_v47, %v9965_v55  ;;  %v5682_v26 = vcombine.high %v5660_v60, %v5660_v60  ;;  %v5721_v51 = vrot.slane %v5660_v60, %v9972_v37 }
 0x410   :  { %v5681_v50 = vrot.slane %v5653_v38, %v9965_v55  ;;  %v5683_v54 = vcombine.high %v5667_v7, %v5667_v7  ;;  %v12086_v17 = vmul.f32 %v5365_v35, %v12010_v28  ;;  %v5603_v52 = vcombine.high %v5595_v2, %v5595_v2 }
 0x411   :  { %v5437_v36 = vadd.f32 %v5436_v59, %v5422_v61  ;;  %v5684_v18 = vcombine.high %v5674_v11, %v5674_v11  ;;  %v5725_v56 = vrot.slane %v5674_v11, %v9972_v37  ;;  %v5729_v0 = vrot.slane %v5682_v26, %v9972_v37  ;;  %v12122_v59 = vpop.permute.xlu1 %6599 }
 0x412   :  { %v5685_v16 = vcombine.high %v5681_v50, %v5681_v50  ;;  %v4405_v58 = vadd.f32 %v11848_v42, %v12031_v4  ;;  %v12095_v14 = vadd.f32 %v5090_v57, %v5076_v53  ;;  %v5774_v43 = vmul.f32 %v5721_v51, %v5578_v30  ;;  %v5582_v4 = vld [vmem:[%s12208_s6 + $0x220] sm:$0xff] }
 0x413   :  { %v5733_v28 = vrot.slane %v5684_v18, %v9972_v37  ;;  %v5775_v5 = vmul.f32 %v5725_v56, %v5579_v3  ;;  %v12101_v33 = vadd.f32 %v5437_v36, %v5423_v39  ;;  %v5737_v29 = vrot.slane %v5667_v7, %v9972_v37  ;;  %v5237_v18 = vld [vmem:[%s12208_s6 + $0x1f8] sm:$0xff] }
 0x414   :  { %v5741_v6 = vrot.slane %v5681_v50, %v9972_v37  ;;  %v5745_v42 = vrot.slane %v5683_v54, %v9972_v37  ;;  %v5776_v53 = vmul.f32 %v5729_v0, %v5580_v40  ;;  %v5604_v41 = vcombine.high %v5602_v12, %v5602_v12 }
 0x415   :  { %v5789_v10 = vadd.f32 %v5775_v5, %v5774_v43  ;;  %v5611_v35 = vrot.slane %v5595_v2, %v9965_v55  ;;  %v5749_v46 = vrot.slane %v5685_v16, %v9972_v37  ;;  %v5777_v45 = vmul.f32 %v5733_v28, %v5581_v25 }
 0x416   :  { %v5618_v61 = vrot.slane %v5602_v12, %v9965_v55  ;;  %v5625_v32 = vrot.slane %v5603_v52, %v9965_v55  ;;  %v5632_v1 = vrot.slane %v5604_v41, %v9965_v55  ;;  %v5778_v57 = vmul.f32 %v5737_v29, %v5582_v4 }
 0x417   :  { %v5790_v22 = vadd.f32 %v5789_v10, %v5776_v53  ;;  %v5633_v47 = vcombine.high %v5611_v35, %v5611_v35  ;;  %v5689_v60 = vrot.slane %v5611_v35, %v9972_v37  ;;  %v5779_v11 = vmul.f32 %v5741_v6, %v5583_v19  ;;  %v12144_v10 = vpop.permute.xlu1 %6604 }
 0x418   :  { %v5634_v38 = vcombine.high %v5618_v61, %v5618_v61  ;;  %v5635_v7 = vcombine.high %v5625_v32, %v5625_v32  ;;  %v5693_v2 = vrot.slane %v5625_v32, %v9972_v37  ;;  %v5705_v39 = vrot.slane %v5618_v61, %v9972_v37 }
 0x419   :  { %v5791_v26 = vadd.f32 %v5790_v22, %v5777_v45  ;;  %v5697_v51 = vrot.slane %v5633_v47, %v9972_v37  ;;  %v5780_v50 = vmul.f32 %v5745_v42, %v5584_v23  ;;  %v5766_v12 = vmul.f32 %v5689_v60, %v5578_v30  ;;  %v5585_v30 = vld [vmem:[%s12208_s6 + $0x238] sm:$0xff] }
 0x41a   :  { %v5701_v54 = vrot.slane %v5635_v7, %v9972_v37  ;;  %v5767_v36 = vmul.f32 %v5693_v2, %v5579_v3  ;;  %v5636_v0 = vcombine.high %v5632_v1, %v5632_v1  ;;  %v4751_v16 = vadd.f32 %v11871_v63, %v11851_v15 }
 0x41b   :  { %v5792_v56 = vadd.f32 %v5791_v26, %v5778_v57  ;;  %v5099_v52 = vadd.f32 %v12033_v21, %v11991_v13  ;;  %v5709_v28 = vrot.slane %v5632_v1, %v9972_v37  ;;  %v5713_v43 = vrot.slane %v5634_v38, %v9972_v37 }
 0x41c   :  { %v5768_v5 = vmul.f32 %v5697_v51, %v5580_v40  ;;  %v5782_v29 = vadd.f32 %v5767_v36, %v5766_v12  ;;  %v5770_v3 = vmul.f32 %v5705_v39, %v5582_v4  ;;  %v4753_v6 = vadd.f32 %v4751_v16, %v4405_v58 }
 0x41d   :  { %v5433_v42 = vmul.f32 %v12000_v48, %v5237_v18  ;;  %v5446_v15 = vadd.f32 %v12035_v27, %v12020_v8  ;;  %v5769_v63 = vmul.f32 %v5701_v54, %v5581_v25  ;;  %v5793_v13 = vadd.f32 %v5792_v56, %v5779_v11 }
 0x41e   :  { %v5783_v53 = vadd.f32 %v5782_v29, %v5768_v5  ;;  %v4056_v21 = vadd.f32 %v11782_v24, %v11729_v31  ;;  %v5101_v40 = vadd.f32 %v5099_v52, %v4753_v6  ;;  %v5781_v35 = vmul.f32 %v5749_v46, %v5585_v30 }
 0x41f   :  { %v5447_v41 = vadd.f32 %v5446_v15, %v5433_v42  ;;  %v4744_v4 = vadd.f32 %v11988_v62, %v11916_v44  ;;  %v5794_v45 = vadd.f32 %v5793_v13, %v5780_v50  ;;  %v5092_v8 = vadd.f32 %v12095_v14, %v12057_v9 }
 0x420   :  { %v5784_v58 = vadd.f32 %v5783_v53, %v5769_v63  ;;  %v4404_v48 = vadd.f32 %v11921_v34, %v4056_v21  ;;  %v5717_v27 = vrot.slane %v5636_v0, %v9972_v37  ;;  %v5771_v25 = vmul.f32 %v5709_v28, %v5583_v19  ;;  %v5802_v34 = vpop.permute.xlu1 %5801 }
 0x421   :  { %v5449_v61 = vadd.f32 %v5447_v41, %v5101_v40  ;;  %v5795_v24 = vadd.f32 %v5794_v45, %v5781_v35  ;;  %v5439_v46 = vadd.f32 %v12101_v33, %v12086_v17  ;;  %v5772_v22 = vmul.f32 %v5713_v43, %v5584_v23  ;;  %v8376_v17 = vpop.f32.mrf.mxu0  ;;  %v6595_v40 = vpop.permute.xlu0 %6594 }
 0x422   :  { %v5785_v31 = vadd.f32 %v5784_v58, %v5770_v3  ;;  %v4752_v32 = vadd.f32 %v4744_v4, %v4404_v48  ;;  %v5425_v62 = vmul.f32 %v12064_v49, %v5237_v18  ;;  %v5773_v14 = vmul.f32 %v5717_v27, %v5585_v30 }
 0x423   :  { %v5797_v1 = vadd.f32 %v5795_v24, %v5449_v61  ;;  %v8377_v33 = vpop.f32.mrf.mxu0 }
 0x424   :  { %v5100_v44 = vadd.f32 %v5092_v8, %v4752_v32  ;;  %v5786_v47 = vadd.f32 %v5785_v31, %v5771_v25  ;;  %v5440_v9 = vadd.f32 %v5439_v46, %v5425_v62  ;;  %v8411_v23 = vpop.f32.mrf.mxu1  ;;  %v8378_v39 = vadd.f32 %v8377_v33, %v8376_v17 }
 0x425   :  { %v12155_v60 = vadd.f32 %v5802_v34, %v5797_v1 }
 0x426   :  { %v5787_v57 = vadd.f32 %v5786_v47, %v5772_v22  ;;  %v5448_v19 = vadd.f32 %v5440_v9, %v5100_v44  ;;  %v8412_v49 = vpop.f32.mrf.mxu1 }
 0x427   :  { %6670 = vadd.xlane.f32.xlu1 %v12155_v60  ;;  %v8446_v11 = vpop.f32.mrf.mxu0  ;;  %v8413_v26 = vadd.f32 %v8412_v49, %v8411_v23 }
 0x428   :  { %v5788_v38 = vadd.f32 %v5787_v57, %v5773_v14 }
 0x429   :  { %v8447_v51 = vpop.f32.mrf.mxu0  ;;  %v6145_v50 = vadd.f32 %v8413_v26, %v8378_v39 }
 0x42a   :  { %v5796_v7 = vadd.f32 %v5788_v38, %v5448_v19  ;;  %v8448_v54 = vadd.f32 %v8447_v51, %v8446_v11  ;;  %v6674_v19 = vmul.f32 %v12155_v60, %v12155_v60 }
 0x42c   :  { %v12158_v2 = vadd.f32 %v5802_v34, %v5796_v7  ;;  %v6319_v18 = vadd.f32 %v8448_v54, %v6145_v50  ;;  %v6625_v34 = vpop.permute.xlu1 %6624 }
 0x42e   :  { %6668 = vadd.xlane.f32.xlu0 %v12158_v2 }
 0x446   :  { %v8481_v12 = vpop.f32.mrf.mxu1 }
 0x448   :  { %v8482_v36 = vpop.f32.mrf.mxu1 }
 0x449   :  { %v8483_v56 = vadd.f32 %v8482_v36, %v8481_v12 }
 0x44b   :  { %v6491_v0 = vadd.f32 %v8483_v56, %v6319_v18 }
 0x44d   :  { %v6492_v16 = vmul.f32 0.25, %v6491_v0 }
 0x44f   :  { %v6494_v52 = vcombine.high %v6492_v16, %v6492_v16  ;;  %v6501_v28 = vrot.slane %v6492_v16, %v9965_v55 }
 0x451   :  { %v6508_v43 = vrot.slane %v6494_v52, %v9965_v55  ;;  %v6509_v5 = vcombine.high %v6501_v28, %v6501_v28  ;;  %v6517_v29 = vrot.slane %v6501_v28, %v9965_v55 }
 0x453   :  { %v6510_v30 = vcombine.high %v6508_v43, %v6508_v43  ;;  %v6524_v3 = vrot.slane %v6508_v43, %v9965_v55  ;;  %v6531_v6 = vrot.slane %v6509_v5, %v9965_v55  ;;  %v6539_v42 = vcombine.high %v6517_v29, %v6517_v29  ;;  %v6629_v5 = vld [vmem:[%s12216_s14] sm:$0xff] }
 0x454   :  { %v6550_v15 = vrot.slane %v6517_v29, %v9972_v37 }
 0x455   :  { %v6538_v63 = vrot.slane %v6510_v30, %v9965_v55  ;;  %v6540_v53 = vcombine.high %v6524_v3, %v6524_v3  ;;  %v6541_v13 = vcombine.high %v6531_v6, %v6531_v6  ;;  %v6554_v21 = vrot.slane %v6531_v6, %v9972_v37 }
 0x456   :  { %v6558_v41 = vrot.slane %v6539_v42, %v9972_v37  ;;  %v6566_v35 = vrot.slane %v6524_v3, %v9972_v37  ;;  %v6607_v4 = vmul.f32 %v12093_v20, %v6550_v15  ;;  %v6666_v3 = vld [vmem:[%s12214_s12] sm:$0xff]  ;;  %s8841_s12 = smov [#allocation2]  }
 0x457   :  { %v6570_v58 = vrot.slane %v6538_v63, %v9972_v37  ;;  %v6562_v45 = vrot.slane %v6541_v13, %v9972_v37  ;;  %v6608_v48 = vmul.f32 %v6595_v40, %v6554_v21  ;;  %v6542_v8 = vcombine.high %v6538_v63, %v6538_v63  ;;  %v6630_v63 = vld [vmem:[%s12217_s15] sm:$0xff] }
 0x458   :  { %v6609_v27 = vmul.f32 %v12122_v59, %v6558_v41  ;;  %v6574_v55 = vrot.slane %v6540_v53, %v9972_v37  ;;  %v6611_v31 = vmul.f32 %v12093_v20, %v6566_v35  ;;  %v6667_v53 = vld [vmem:[%s12215_s13] sm:$0xff]  ;;  %s6714_s13 = sshll.u32 %s8841_s12, 4  ;;  %s6715_s13 = int_to_ptr.vmem [resolvable:$true] %s6714_s13 }
 0x459   :  { %v6615_v25 = vadd.f32 %v6608_v48, %v6607_v4  ;;  %v6578_v61 = vrot.slane %v6542_v8, %v9972_v37  ;;  %v6612_v24 = vmul.f32 %v6595_v40, %v6570_v58  ;;  %v6610_v32 = vmul.f32 %v12144_v10, %v6562_v45  ;;  %s8816_s14 = scalar_lea.vmem %s6715_s13, 256  ;;  %p8821_p1 = scmp.lt.s32.totalorder %s6715_s13, %s6715_s13 }
 0x45a   :  { %v6613_v22 = vmul.f32 %v12122_v59, %v6574_v55  ;;  %v6673_v59 = vmul.f32 %v12158_v2, %v12158_v2  ;;  %p8817_p0 = scmp.ne.s32.totalorder %s6715_s13, %s8816_s14  ;;  %p8822_p2 = scmp.lt.s32.totalorder %s8816_s14, %s8816_s14 }
 0x45b   :  { %v6616_v46 = vadd.f32 %v6615_v25, %v6609_v27  ;;  %v6618_v1 = vadd.f32 %v6612_v24, %v6611_v31  ;;  %v6614_v62 = vmul.f32 %v12144_v10, %v6578_v61 }
 0x45c   :  { %p8823_p3 = por %p8822_p2, %p8821_p1 }
 0x45d   :  { %v6617_v44 = vadd.f32 %v6616_v46, %v6610_v32  ;;  %v6619_v47 = vadd.f32 %v6618_v1, %v6613_v22 }
 0x45e   :  { %p8824_p4 = pnand %p8823_p3, %p8817_p0 }
 0x45f   :  { %v6627_v9 = vadd.f32 %v6625_v34, %v6617_v44  ;;  %v6620_v14 = vadd.f32 %v6619_v47, %v6614_v62 }
 0x461   :  { %6631 = vadd.xlane.f32.xlu1 %v6627_v9  ;;  %v6628_v57 = vadd.f32 %v6625_v34, %v6620_v14  ;;  %v6636_v20 = vmul.f32 %v6627_v9, %v6627_v9 }
 0x463   :  { %6633 = vadd.xlane.f32.xlu0 %v6628_v57  ;;  %v6637_v37 = vmul.f32 %v6628_v57, %v6628_v57 }
 0x465   :  { %6640 = vadd.xlane.f32.xlu1 %v6637_v37 }
 0x467   :  { %6638 = vadd.xlane.f32.xlu0 %v6636_v20 }
 0x469   :  { %6677 = vadd.xlane.f32.xlu1 %v6674_v19 }
 0x46b   :  { %6675 = vadd.xlane.f32.xlu0 %v6673_v59 }
 0x4b0   :  { %v6671_v10 = vpop.xlane.xlu1 %6670 }
 0x4b7   :  { %v6669_v38 = vpop.xlane.xlu0 %6668 }
 0x4b8   :  { %v6672_v49 = vadd.f32 %v6671_v10, %v6669_v38 }
 0x4ba   :  { %v6680_v39 = vmul.f32 0.00390625, %v6672_v49 }
 0x4bc   :  { %v6682_v0 = vmul.f32 %v6680_v39, %v6680_v39 }
 0x4ea   :  { %v6632_v7 = vpop.xlane.xlu1 %6631 }
 0x4ec   :  { %v6634_v17 = vpop.xlane.xlu0 %6633 }
 0x4ed   :  { %v6635_v33 = vadd.f32 %v6634_v17, %v6632_v7 }
 0x4ee   :  { %v6641_v23 = vpop.xlane.xlu1 %6640 }
 0x4ef   :  { %v6643_v11 = vmul.f32 0.00390625, %v6635_v33 }
 0x4f0   :  { %v6639_v26 = vpop.xlane.xlu0 %6638 }
 0x4f1   :  { %v6642_v51 = vadd.f32 %v6641_v23, %v6639_v26  ;;  %v6645_v50 = vmul.f32 %v6643_v11, %v6643_v11 }
 0x4f2   :  { %v6678_v12 = vpop.xlane.xlu1 %6677 }
 0x4f3   :  { %v6644_v54 = vmul.f32 0.00390625, %v6642_v51 }
 0x4f4   :  { %v6676_v36 = vpop.xlane.xlu0 %6675 }
 0x4f5   :  { %v6646_v18 = vsub.f32 %v6644_v54, %v6645_v50  ;;  %v6679_v56 = vadd.f32 %v6678_v12, %v6676_v36 }
 0x4f7   :  { %v6647_v16 = vadd.f32 1e-05, %v6646_v18  ;;  %v6681_v52 = vmul.f32 0.00390625, %v6679_v56 }
 0x4f9   :  { %8809 = vrsqrt.f32 %v6647_v16  ;;  %v6683_v28 = vsub.f32 %v6681_v52, %v6682_v0 }
 0x4fb   :  { %v6684_v43 = vadd.f32 1e-05, %v6683_v28 }
 0x4fd   :  { %8811 = vrsqrt.f32 %v6684_v43 }
 0x506   :  { %v8810_v29 = vpop.eup %8809 }
 0x507   :  { %v6649_v30 = vmul.f32 %v8810_v29, %v6629_v5 }
 0x509   :  { %6654 = vperm.xlu0 %8805, %v6649_v30   ;;  %v6650_v15 = vmul.f32 %v6649_v30, %v6643_v11 }
 0x50a   :  { %v8812_v6 = vpop.eup %8811 }
 0x50b   :  { %v6686_v42 = vmul.f32 %v8812_v6, %v6666_v3  ;;  %v6651_v21 = vsub.f32 %v6630_v63, %v6650_v15 }
 0x50d   :  { %6691 = vperm.xlu1 %8806, %v6686_v42   ;;  %v6687_v13 = vmul.f32 %v6686_v42, %v6680_v39 }
 0x50f   :  { %v6688_v40 = vsub.f32 %v6667_v53, %v6687_v13 }
 0x511   :  { %6661 = vperm.xlu1 %8806, %v6651_v21   ;;  %6698 = vperm.xlu0 %8805, %v6688_v40  }
 0x584   :  { %v6655_v41 = vpop.permute.xlu0 %6654 }
 0x585   :  { %v6657_v4 = vmul.f32 %v6655_v41, %v6627_v9  ;;  %v6658_v58 = vmul.f32 %v6655_v41, %v6628_v57 }
 0x588   :  { %v6692_v35 = vpop.permute.xlu1 %6691 }
 0x589   :  { %v6694_v45 = vmul.f32 %v6692_v35, %v12158_v2  ;;  %v6695_v48 = vmul.f32 %v6692_v35, %v12155_v60 }
 0x58c   :  { %v6662_v8 = vpop.permute.xlu1 %6661  ;;  %v6699_v27 = vpop.permute.xlu0 %6698 }
 0x58d   :  { %v6664_v55 = vadd.f32 %v6662_v8, %v6657_v4  ;;  %v6665_v25 = vadd.f32 %v6662_v8, %v6658_v58  ;;  %v6701_v61 = vadd.f32 %v6699_v27, %v6694_v45  ;;  %v6702_v31 = vadd.f32 %v6699_v27, %v6695_v48 }
 0x58f   :  { %v6703_v24 = vadd.f32 %v6701_v61, %v6664_v55  ;;  %v6704_v32 = vadd.f32 %v6702_v31, %v6665_v25 }
 0x591   :  { %v6705_v46 = vmax.f32 %v6703_v24, 0.0  ;;  %v6706_v22 = vmax.f32 %v6704_v32, 0.0 }
 0x593   :  { %6707 = vst [vmem:[#allocation2] sm:$0xff] %v6705_v46  ;;  %6708 = vst [vmem:[#allocation2 + $0x8] sm:$0xff] %v6706_v22 }
 0x594   :  { %8827 = shalt.err (!%p8824_p4)
}
 0x595   :  { %s8842_s15 = smov 128   ;;  %s8843_s28 = smov 8  }
 0x596   :  { %6720 = dma.vmem_to_hbm [thread:$0]  %s6715_s13, 256, %s12218_s16, [#allocation3], %s8842_s15, %s8842_s15, %s8843_s28  }
 0x597   :  { %8836 = dma.done.wait [#allocation3], 256  }
 0x598   :  { %8837 = vsyncadd [#allocation3], 4294967040 }
 0x599   :  { %6724 = vsyncpa [#allocation3], 1 }

</bundles_post_ra>
